<compile_context>
chip_gen: v7x
topology: tpu7x:2x2x1
jax: 0.10.0
libtpu: 0.0.40
codegen_flags: <defaults>
</compile_context>

<pallas_src>
import functools

import jax
import jax.numpy as jnp
from jax.experimental import pallas as pl
from jax.experimental.pallas import tpu as pltpu

INPUT_DIM = 1
LSTM_HIDDEN_DIM = 256
DNN_HIDDEN_DIM = 64
OUTPUT_DIM = 1
QUANTILES = [0.1, 0.2, 0.3, 0.4, 0.5, 0.6, 0.7, 0.8, 0.9]
NUM_Q = len(QUANTILES)

DNN_PAD = 128   # lane-dense padding of the 64-wide MLP
Q_PAD = 128     # lane-dense padding of the 9-wide quantile output


def _lstm_dnn_quantile_kernel(
    x_ref,        # (T, B, 1)        float32, time-major
    w_ih_ref,     # (1, 4H)          W_ih^T, gate order (i, f, o, g)
    w_hh_ref,     # (H, 4H)          W_hh^T, bfloat16, gate order (i, f, o, g)
    b_lstm_ref,   # (1, 4H)          b_ih + b_hh, gate order (i, f, o, g)
    w1_ref,       # (H, 128)         dnn1 weight^T, zero-padded past col 64
    b1_ref,       # (1, 128)
    w2_ref,       # (128, 128)       dnn2 weight^T, zero-padded
    b2_ref,       # (1, 128)
    wq_ref,       # (128, 128)       stacked quantile heads^T, zero-padded
    bq_ref,       # (1, 128)
    out_ref,      # (B, 128)         lane-dense output slab; cols [0, 9) are the quantiles
):
    T, B, _ = x_ref.shape
    H = w_hh_ref.shape[0]

    # Hoist weight loads out of the recurrence.
    w_ih = w_ih_ref[...]
    w_hh = w_hh_ref[...]          # bf16
    b_lstm = b_lstm_ref[...]

    def step(t, carry):
        h, c = carry
        x_t = x_ref[t]            # (B, 1), cheap dynamic load on the leading axis
        # Input contribution + bias are h-independent -> overlap under unroll.
        gates = (
            x_t * w_ih
            + b_lstm
            + jnp.dot(h.astype(jnp.bfloat16), w_hh,
                      preferred_element_type=jnp.float32)
        )
        # Gate order (i, f, o, g): one sigmoid over a contiguous (B, 3H) slab, one tanh.
        ifo = jax.nn.sigmoid(gates[:, : 3 * H])
        g = jnp.tanh(gates[:, 3 * H:])
        i = ifo[:, 0 * H:1 * H]
        f = ifo[:, 1 * H:2 * H]
        o = ifo[:, 2 * H:3 * H]
        c_new = f * c + i * g
        h_new = o * jnp.tanh(c_new)
        return (h_new, c_new)

    h0 = jnp.zeros((B, H), jnp.float32)
    c0 = jnp.zeros((B, H), jnp.float32)

    # Unroll for LLO cross-iteration visibility (fully for small static T).
    if T <= 16:
        unroll = T
    elif T % 4 == 0:
        unroll = 4
    elif T % 2 == 0:
        unroll = 2
    else:
        unroll = 1
    h_last, _ = jax.lax.fori_loop(0, T, step, (h0, c0), unroll=unroll)

    # x = relu(dnn1(h_last)); x = relu(dnn2(x))   (all lane-dense 128-wide tiles)
    d1 = jnp.maximum(
        jnp.dot(h_last, w1_ref[...], preferred_element_type=jnp.float32) + b1_ref[...],
        0.0,
    )
    d2 = jnp.maximum(
        jnp.dot(d1, w2_ref[...], preferred_element_type=jnp.float32) + b2_ref[...],
        0.0,
    )
    # All 9 quantile heads fused into one lane-dense (128, 128) matmul.
    out_ref[...] = (
        jnp.dot(d2, wq_ref[...], preferred_element_type=jnp.float32) + bq_ref[...]
    )


@jax.jit
def lstm_dnn_quantile_forward(x, params):
    """x: (B, T, 1) float32. Returns list of NUM_Q arrays each (B, 1), like the PyTorch module."""
    B, T, D = x.shape
    assert D == INPUT_DIM
    x_tm = jnp.transpose(x, (1, 0, 2)).astype(jnp.float32)   # (T, B, 1) time-major

    vmem = pl.BlockSpec(memory_space=pltpu.MemorySpace.VMEM)
    out = pl.pallas_call(
        _lstm_dnn_quantile_kernel,
        out_shape=jax.ShapeDtypeStruct((B, Q_PAD), jnp.float32),
        in_specs=[vmem] * 10,
        out_specs=vmem,
    )(
        x_tm,
        params["w_ih_t"], params["w_hh_t"], params["b_lstm"],
        params["w1_t"], params["b1"],
        params["w2_t"], params["b2"],
        params["wq_t"], params["bq"],
    )
    out = out[:, :NUM_Q]
    return [out[:, i:i + 1] for i in range(NUM_Q)]


def init_raw_params(key):
    """Deterministic synthetic parameters, shapes/gate-order matching nn.LSTM / nn.Linear."""
    ks = jax.random.split(key, 10)
    H, D_in, D_dnn = LSTM_HIDDEN_DIM, INPUT_DIM, DNN_HIDDEN_DIM

    def u(k, shape, bound):
        return jax.random.uniform(k, shape, jnp.float32, -bound, bound)

    s_lstm = 1.0 / jnp.sqrt(H)
    s1 = 1.0 / jnp.sqrt(H)
    s2 = 1.0 / jnp.sqrt(D_dnn)
    return {
        "w_ih": u(ks[0], (4 * H, D_in), s_lstm),     # nn.LSTM weight_ih_l0 (i,f,g,o)
        "w_hh": u(ks[1], (4 * H, H), s_lstm),        # nn.LSTM weight_hh_l0 (i,f,g,o)
        "b_ih": u(ks[2], (4 * H,), s_lstm),
        "b_hh": u(ks[3], (4 * H,), s_lstm),
        "w1": u(ks[4], (D_dnn, H), s1),              # dnn1
        "b1": u(ks[5], (D_dnn,), s1),
        "w2": u(ks[6], (D_dnn, D_dnn), s2),          # dnn2
        "b2": u(ks[7], (D_dnn,), s2),
        "wq": u(ks[8], (NUM_Q, OUTPUT_DIM, D_dnn), s2),   # 9 x Linear(64, 1)
        "bq": u(ks[9], (NUM_Q, OUTPUT_DIM), s2),
    }


def _repack_gates(m, H):
    """Permute last-axis gate blocks from PyTorch (i, f, g, o) to kernel (i, f, o, g)."""
    i = m[..., 0 * H:1 * H]
    f = m[..., 1 * H:2 * H]
    g = m[..., 2 * H:3 * H]
    o = m[..., 3 * H:4 * H]
    return jnp.concatenate([i, f, o, g], axis=-1)


def pack_params(raw):
    """Layout transform: transpose, gate-repack, lane-pad 64->128 / 9->128, bf16 w_hh."""
    H, D_dnn = LSTM_HIDDEN_DIM, DNN_HIDDEN_DIM
    w_ih_t = _repack_gates(jnp.transpose(raw["w_ih"]), H)                 # (1, 4H)
    w_hh_t = _repack_gates(jnp.transpose(raw["w_hh"]), H)                 # (H, 4H)
    b_lstm = _repack_gates((raw["b_ih"] + raw["b_hh"]).reshape(1, 4 * H), H)

    w1_t = jnp.zeros((H, DNN_PAD), jnp.float32).at[:, :D_dnn].set(jnp.transpose(raw["w1"]))
    b1 = jnp.zeros((1, DNN_PAD), jnp.float32).at[0, :D_dnn].set(raw["b1"])
    w2_t = jnp.zeros((DNN_PAD, DNN_PAD), jnp.float32).at[:D_dnn, :D_dnn].set(jnp.transpose(raw["w2"]))
    b2 = jnp.zeros((1, DNN_PAD), jnp.float32).at[0, :D_dnn].set(raw["b2"])

    wq = raw["wq"].reshape(NUM_Q, D_dnn)                                   # (9, 64)
    wq_t = jnp.zeros((DNN_PAD, Q_PAD), jnp.float32).at[:D_dnn, :NUM_Q].set(jnp.transpose(wq))
    bq = jnp.zeros((1, Q_PAD), jnp.float32).at[0, :NUM_Q].set(raw["bq"].reshape(NUM_Q))

    return {
        "w_ih_t": w_ih_t,
        "w_hh_t": w_hh_t.astype(jnp.bfloat16),   # bf16 for the 256x1024 recurrent matmul
        "b_lstm": b_lstm,
        "w1_t": w1_t, "b1": b1,
        "w2_t": w2_t, "b2": b2,
        "wq_t": wq_t, "bq": bq,
    }


def reference_forward(x, raw):
    """Pure-JAX f32 reference (same math as the PyTorch module)."""
    B, T, _ = x.shape
    H = LSTM_HIDDEN_DIM
    w_ih_t = jnp.transpose(raw["w_ih"])             # (1, 4H), PyTorch gate order
    w_hh_t = jnp.transpose(raw["w_hh"])             # (H, 4H)
    b = (raw["b_ih"] + raw["b_hh"]).reshape(1, 4 * H)

    def step(carry, x_t):                           # x_t: (B, 1)
        h, c = carry
        gates = x_t * w_ih_t + h @ w_hh_t + b
        i = jax.nn.sigmoid(gates[:, 0 * H:1 * H])
        f = jax.nn.sigmoid(gates[:, 1 * H:2 * H])
        g = jnp.tanh(gates[:, 2 * H:3 * H])
        o = jax.nn.sigmoid(gates[:, 3 * H:4 * H])
        c = f * c + i * g
        h = o * jnp.tanh(c)
        return (h, c), None

    xs = jnp.transpose(x, (1, 0, 2))                # (T, B, 1)
    (h, _), _ = jax.lax.scan(step, (jnp.zeros((B, H)), jnp.zeros((B, H))), xs)
    d1 = jax.nn.relu(h @ jnp.transpose(raw["w1"]) + raw["b1"])
    d2 = jax.nn.relu(d1 @ jnp.transpose(raw["w2"]) + raw["b2"])
    wq = raw["wq"].reshape(NUM_Q, DNN_HIDDEN_DIM)
    return d2 @ jnp.transpose(wq) + raw["bq"].reshape(1, NUM_Q)


if __name__ == "__main__":
    key = jax.random.PRNGKey(0)
    k_x, k_p = jax.random.split(key)

    B, T = 2, 8
    x = jax.random.normal(k_x, (B, T, INPUT_DIM), jnp.float32)
    raw = init_raw_params(k_p)
    params = pack_params(raw)

    outs = lstm_dnn_quantile_forward(x, params)
    outs = [jax.block_until_ready(o) for o in outs]

    got = jnp.concatenate(outs, axis=1)
    assert got.shape == (B, NUM_Q)

    # f32 reference; tolerance loosened because the recurrent matmul uses bf16 weights
    # (f32 accumulation keeps the error at the ~1e-3 level).
    ref = reference_forward(x, raw)
    assert jnp.allclose(got, ref, atol=5e-2, rtol=5e-2), "mismatch vs reference"

    print("KERNEL_OK")
</pallas_src>

<mosaic_0001>
module attributes {stable_mosaic.version = 11 : i64} {
  func.func @_lstm_dnn_quantile_kernel(%arg0: memref<8x2x1xf32, #tpu.memory_space<vmem>>, %arg1: memref<1x1024xf32, #tpu.memory_space<vmem>>, %arg2: memref<256x1024xbf16, #tpu.memory_space<vmem>>, %arg3: memref<1x1024xf32, #tpu.memory_space<vmem>>, %arg4: memref<256x128xf32, #tpu.memory_space<vmem>>, %arg5: memref<1x128xf32, #tpu.memory_space<vmem>>, %arg6: memref<128x128xf32, #tpu.memory_space<vmem>>, %arg7: memref<1x128xf32, #tpu.memory_space<vmem>>, %arg8: memref<128x128xf32, #tpu.memory_space<vmem>>, %arg9: memref<1x128xf32, #tpu.memory_space<vmem>>, %arg10: memref<2x128xf32, #tpu.memory_space<vmem>>) attributes {dimension_semantics = [], scalar_prefetch = 0 : i64, scratch_operands = 0 : i64, tpu.core_type = #tpu.core_type<tc>} {
    %c0 = arith.constant 0 : index
    %c0_0 = arith.constant 0 : index
    %0 = vector.load %arg1[%c0, %c0_0] : memref<1x1024xf32, #tpu.memory_space<vmem>>, vector<1x1024xf32>
    %c0_1 = arith.constant 0 : index
    %c0_2 = arith.constant 0 : index
    %1 = vector.load %arg2[%c0_1, %c0_2] : memref<256x1024xbf16, #tpu.memory_space<vmem>>, vector<256x1024xbf16>
    %c0_3 = arith.constant 0 : index
    %c0_4 = arith.constant 0 : index
    %2 = vector.load %arg3[%c0_3, %c0_4] : memref<1x1024xf32, #tpu.memory_space<vmem>>, vector<1x1024xf32>
    %cst = arith.constant 0.000000e+00 : f32
    %3 = vector.broadcast %cst : f32 to vector<2x256xf32>
    %cst_5 = arith.constant 0.000000e+00 : f32
    %4 = vector.broadcast %cst_5 : f32 to vector<2x256xf32>
    %c0_i32 = arith.constant 0 : i32
    %5 = arith.index_cast %c0_i32 : i32 to index
    %c0_6 = arith.constant 0 : index
    %c0_7 = arith.constant 0 : index
    %6 = vector.load %arg0[%5, %c0_6, %c0_7] : memref<8x2x1xf32, #tpu.memory_space<vmem>>, vector<1x2x1xf32>
    %7 = vector.shape_cast %6 : vector<1x2x1xf32> to vector<2x1xf32>
    %8 = vector.broadcast %7 : vector<2x1xf32> to vector<2x1024xf32>
    %9 = vector.broadcast %0 : vector<1x1024xf32> to vector<2x1024xf32>
    %10 = arith.mulf %8, %9 : vector<2x1024xf32>
    %11 = vector.broadcast %2 : vector<1x1024xf32> to vector<2x1024xf32>
    %12 = arith.addf %10, %11 : vector<2x1024xf32>
    %13 = arith.truncf %3 : vector<2x256xf32> to vector<2x256xbf16>
    %cst_8 = arith.constant dense<0.000000e+00> : vector<2x1024xf32>
    %14 = tpu.matmul %13, %1, %cst_8 {dimension_numbers = #tpu.dot_dimension_numbers<[1], [0], [0], [1], [0, 0, 1, 1], [], []>} : vector<2x256xbf16>, vector<256x1024xbf16>, vector<2x1024xf32> -> vector<2x1024xf32>
    %15 = arith.addf %12, %14 : vector<2x1024xf32>
    %16 = vector.extract_strided_slice %15 {offsets = [0, 0], sizes = [2, 768], strides = [1, 1]} : vector<2x1024xf32> to vector<2x768xf32>
    %17 = arith.negf %16 : vector<2x768xf32>
    %18 = math.exp %17 : vector<2x768xf32>
    %cst_9 = arith.constant 1.000000e+00 : f32
    %19 = vector.broadcast %cst_9 : f32 to vector<2x768xf32>
    %20 = arith.addf %19, %18 : vector<2x768xf32>
    %21 = arith.divf %19, %20 : vector<2x768xf32>
    %22 = vector.extract_strided_slice %15 {offsets = [0, 768], sizes = [2, 256], strides = [1, 1]} : vector<2x1024xf32> to vector<2x256xf32>
    %23 = math.tanh %22 : vector<2x256xf32>
    %24 = vector.extract_strided_slice %21 {offsets = [0, 0], sizes = [2, 256], strides = [1, 1]} : vector<2x768xf32> to vector<2x256xf32>
    %25 = vector.extract_strided_slice %21 {offsets = [0, 256], sizes = [2, 256], strides = [1, 1]} : vector<2x768xf32> to vector<2x256xf32>
    %26 = vector.extract_strided_slice %21 {offsets = [0, 512], sizes = [2, 256], strides = [1, 1]} : vector<2x768xf32> to vector<2x256xf32>
    %27 = arith.mulf %25, %4 : vector<2x256xf32>
    %28 = arith.mulf %24, %23 : vector<2x256xf32>
    %29 = arith.addf %27, %28 : vector<2x256xf32>
    %30 = math.tanh %29 : vector<2x256xf32>
    %31 = arith.mulf %26, %30 : vector<2x256xf32>
    %c1_i32 = arith.constant 1 : i32
    %32 = arith.index_cast %c1_i32 : i32 to index
    %c0_10 = arith.constant 0 : index
    %c0_11 = arith.constant 0 : index
    %33 = vector.load %arg0[%32, %c0_10, %c0_11] : memref<8x2x1xf32, #tpu.memory_space<vmem>>, vector<1x2x1xf32>
    %34 = vector.shape_cast %33 : vector<1x2x1xf32> to vector<2x1xf32>
    %35 = vector.broadcast %34 : vector<2x1xf32> to vector<2x1024xf32>
    %36 = vector.broadcast %0 : vector<1x1024xf32> to vector<2x1024xf32>
    %37 = arith.mulf %35, %36 : vector<2x1024xf32>
    %38 = vector.broadcast %2 : vector<1x1024xf32> to vector<2x1024xf32>
    %39 = arith.addf %37, %38 : vector<2x1024xf32>
    %40 = arith.truncf %31 : vector<2x256xf32> to vector<2x256xbf16>
    %cst_12 = arith.constant dense<0.000000e+00> : vector<2x1024xf32>
    %41 = tpu.matmul %40, %1, %cst_12 {dimension_numbers = #tpu.dot_dimension_numbers<[1], [0], [0], [1], [0, 0, 1, 1], [], []>} : vector<2x256xbf16>, vector<256x1024xbf16>, vector<2x1024xf32> -> vector<2x1024xf32>
    %42 = arith.addf %39, %41 : vector<2x1024xf32>
    %43 = vector.extract_strided_slice %42 {offsets = [0, 0], sizes = [2, 768], strides = [1, 1]} : vector<2x1024xf32> to vector<2x768xf32>
    %44 = arith.negf %43 : vector<2x768xf32>
    %45 = math.exp %44 : vector<2x768xf32>
    %cst_13 = arith.constant 1.000000e+00 : f32
    %46 = vector.broadcast %cst_13 : f32 to vector<2x768xf32>
    %47 = arith.addf %46, %45 : vector<2x768xf32>
    %48 = arith.divf %46, %47 : vector<2x768xf32>
    %49 = vector.extract_strided_slice %42 {offsets = [0, 768], sizes = [2, 256], strides = [1, 1]} : vector<2x1024xf32> to vector<2x256xf32>
    %50 = math.tanh %49 : vector<2x256xf32>
    %51 = vector.extract_strided_slice %48 {offsets = [0, 0], sizes = [2, 256], strides = [1, 1]} : vector<2x768xf32> to vector<2x256xf32>
    %52 = vector.extract_strided_slice %48 {offsets = [0, 256], sizes = [2, 256], strides = [1, 1]} : vector<2x768xf32> to vector<2x256xf32>
    %53 = vector.extract_strided_slice %48 {offsets = [0, 512], sizes = [2, 256], strides = [1, 1]} : vector<2x768xf32> to vector<2x256xf32>
    %54 = arith.mulf %52, %29 : vector<2x256xf32>
    %55 = arith.mulf %51, %50 : vector<2x256xf32>
    %56 = arith.addf %54, %55 : vector<2x256xf32>
    %57 = math.tanh %56 : vector<2x256xf32>
    %58 = arith.mulf %53, %57 : vector<2x256xf32>
    %c2_i32 = arith.constant 2 : i32
    %59 = arith.index_cast %c2_i32 : i32 to index
    %c0_14 = arith.constant 0 : index
    %c0_15 = arith.constant 0 : index
    %60 = vector.load %arg0[%59, %c0_14, %c0_15] : memref<8x2x1xf32, #tpu.memory_space<vmem>>, vector<1x2x1xf32>
    %61 = vector.shape_cast %60 : vector<1x2x1xf32> to vector<2x1xf32>
    %62 = vector.broadcast %61 : vector<2x1xf32> to vector<2x1024xf32>
    %63 = vector.broadcast %0 : vector<1x1024xf32> to vector<2x1024xf32>
    %64 = arith.mulf %62, %63 : vector<2x1024xf32>
    %65 = vector.broadcast %2 : vector<1x1024xf32> to vector<2x1024xf32>
    %66 = arith.addf %64, %65 : vector<2x1024xf32>
    %67 = arith.truncf %58 : vector<2x256xf32> to vector<2x256xbf16>
    %cst_16 = arith.constant dense<0.000000e+00> : vector<2x1024xf32>
    %68 = tpu.matmul %67, %1, %cst_16 {dimension_numbers = #tpu.dot_dimension_numbers<[1], [0], [0], [1], [0, 0, 1, 1], [], []>} : vector<2x256xbf16>, vector<256x1024xbf16>, vector<2x1024xf32> -> vector<2x1024xf32>
    %69 = arith.addf %66, %68 : vector<2x1024xf32>
    %70 = vector.extract_strided_slice %69 {offsets = [0, 0], sizes = [2, 768], strides = [1, 1]} : vector<2x1024xf32> to vector<2x768xf32>
    %71 = arith.negf %70 : vector<2x768xf32>
    %72 = math.exp %71 : vector<2x768xf32>
    %cst_17 = arith.constant 1.000000e+00 : f32
    %73 = vector.broadcast %cst_17 : f32 to vector<2x768xf32>
    %74 = arith.addf %73, %72 : vector<2x768xf32>
    %75 = arith.divf %73, %74 : vector<2x768xf32>
    %76 = vector.extract_strided_slice %69 {offsets = [0, 768], sizes = [2, 256], strides = [1, 1]} : vector<2x1024xf32> to vector<2x256xf32>
    %77 = math.tanh %76 : vector<2x256xf32>
    %78 = vector.extract_strided_slice %75 {offsets = [0, 0], sizes = [2, 256], strides = [1, 1]} : vector<2x768xf32> to vector<2x256xf32>
    %79 = vector.extract_strided_slice %75 {offsets = [0, 256], sizes = [2, 256], strides = [1, 1]} : vector<2x768xf32> to vector<2x256xf32>
    %80 = vector.extract_strided_slice %75 {offsets = [0, 512], sizes = [2, 256], strides = [1, 1]} : vector<2x768xf32> to vector<2x256xf32>
    %81 = arith.mulf %79, %56 : vector<2x256xf32>
    %82 = arith.mulf %78, %77 : vector<2x256xf32>
    %83 = arith.addf %81, %82 : vector<2x256xf32>
    %84 = math.tanh %83 : vector<2x256xf32>
    %85 = arith.mulf %80, %84 : vector<2x256xf32>
    %c3_i32 = arith.constant 3 : i32
    %86 = arith.index_cast %c3_i32 : i32 to index
    %c0_18 = arith.constant 0 : index
    %c0_19 = arith.constant 0 : index
    %87 = vector.load %arg0[%86, %c0_18, %c0_19] : memref<8x2x1xf32, #tpu.memory_space<vmem>>, vector<1x2x1xf32>
    %88 = vector.shape_cast %87 : vector<1x2x1xf32> to vector<2x1xf32>
    %89 = vector.broadcast %88 : vector<2x1xf32> to vector<2x1024xf32>
    %90 = vector.broadcast %0 : vector<1x1024xf32> to vector<2x1024xf32>
    %91 = arith.mulf %89, %90 : vector<2x1024xf32>
    %92 = vector.broadcast %2 : vector<1x1024xf32> to vector<2x1024xf32>
    %93 = arith.addf %91, %92 : vector<2x1024xf32>
    %94 = arith.truncf %85 : vector<2x256xf32> to vector<2x256xbf16>
    %cst_20 = arith.constant dense<0.000000e+00> : vector<2x1024xf32>
    %95 = tpu.matmul %94, %1, %cst_20 {dimension_numbers = #tpu.dot_dimension_numbers<[1], [0], [0], [1], [0, 0, 1, 1], [], []>} : vector<2x256xbf16>, vector<256x1024xbf16>, vector<2x1024xf32> -> vector<2x1024xf32>
    %96 = arith.addf %93, %95 : vector<2x1024xf32>
    %97 = vector.extract_strided_slice %96 {offsets = [0, 0], sizes = [2, 768], strides = [1, 1]} : vector<2x1024xf32> to vector<2x768xf32>
    %98 = arith.negf %97 : vector<2x768xf32>
    %99 = math.exp %98 : vector<2x768xf32>
    %cst_21 = arith.constant 1.000000e+00 : f32
    %100 = vector.broadcast %cst_21 : f32 to vector<2x768xf32>
    %101 = arith.addf %100, %99 : vector<2x768xf32>
    %102 = arith.divf %100, %101 : vector<2x768xf32>
    %103 = vector.extract_strided_slice %96 {offsets = [0, 768], sizes = [2, 256], strides = [1, 1]} : vector<2x1024xf32> to vector<2x256xf32>
    %104 = math.tanh %103 : vector<2x256xf32>
    %105 = vector.extract_strided_slice %102 {offsets = [0, 0], sizes = [2, 256], strides = [1, 1]} : vector<2x768xf32> to vector<2x256xf32>
    %106 = vector.extract_strided_slice %102 {offsets = [0, 256], sizes = [2, 256], strides = [1, 1]} : vector<2x768xf32> to vector<2x256xf32>
    %107 = vector.extract_strided_slice %102 {offsets = [0, 512], sizes = [2, 256], strides = [1, 1]} : vector<2x768xf32> to vector<2x256xf32>
    %108 = arith.mulf %106, %83 : vector<2x256xf32>
    %109 = arith.mulf %105, %104 : vector<2x256xf32>
    %110 = arith.addf %108, %109 : vector<2x256xf32>
    %111 = math.tanh %110 : vector<2x256xf32>
    %112 = arith.mulf %107, %111 : vector<2x256xf32>
    %c4_i32 = arith.constant 4 : i32
    %113 = arith.index_cast %c4_i32 : i32 to index
    %c0_22 = arith.constant 0 : index
    %c0_23 = arith.constant 0 : index
    %114 = vector.load %arg0[%113, %c0_22, %c0_23] : memref<8x2x1xf32, #tpu.memory_space<vmem>>, vector<1x2x1xf32>
    %115 = vector.shape_cast %114 : vector<1x2x1xf32> to vector<2x1xf32>
    %116 = vector.broadcast %115 : vector<2x1xf32> to vector<2x1024xf32>
    %117 = vector.broadcast %0 : vector<1x1024xf32> to vector<2x1024xf32>
    %118 = arith.mulf %116, %117 : vector<2x1024xf32>
    %119 = vector.broadcast %2 : vector<1x1024xf32> to vector<2x1024xf32>
    %120 = arith.addf %118, %119 : vector<2x1024xf32>
    %121 = arith.truncf %112 : vector<2x256xf32> to vector<2x256xbf16>
    %cst_24 = arith.constant dense<0.000000e+00> : vector<2x1024xf32>
    %122 = tpu.matmul %121, %1, %cst_24 {dimension_numbers = #tpu.dot_dimension_numbers<[1], [0], [0], [1], [0, 0, 1, 1], [], []>} : vector<2x256xbf16>, vector<256x1024xbf16>, vector<2x1024xf32> -> vector<2x1024xf32>
    %123 = arith.addf %120, %122 : vector<2x1024xf32>
    %124 = vector.extract_strided_slice %123 {offsets = [0, 0], sizes = [2, 768], strides = [1, 1]} : vector<2x1024xf32> to vector<2x768xf32>
    %125 = arith.negf %124 : vector<2x768xf32>
    %126 = math.exp %125 : vector<2x768xf32>
    %cst_25 = arith.constant 1.000000e+00 : f32
    %127 = vector.broadcast %cst_25 : f32 to vector<2x768xf32>
    %128 = arith.addf %127, %126 : vector<2x768xf32>
    %129 = arith.divf %127, %128 : vector<2x768xf32>
    %130 = vector.extract_strided_slice %123 {offsets = [0, 768], sizes = [2, 256], strides = [1, 1]} : vector<2x1024xf32> to vector<2x256xf32>
    %131 = math.tanh %130 : vector<2x256xf32>
    %132 = vector.extract_strided_slice %129 {offsets = [0, 0], sizes = [2, 256], strides = [1, 1]} : vector<2x768xf32> to vector<2x256xf32>
    %133 = vector.extract_strided_slice %129 {offsets = [0, 256], sizes = [2, 256], strides = [1, 1]} : vector<2x768xf32> to vector<2x256xf32>
    %134 = vector.extract_strided_slice %129 {offsets = [0, 512], sizes = [2, 256], strides = [1, 1]} : vector<2x768xf32> to vector<2x256xf32>
    %135 = arith.mulf %133, %110 : vector<2x256xf32>
    %136 = arith.mulf %132, %131 : vector<2x256xf32>
    %137 = arith.addf %135, %136 : vector<2x256xf32>
    %138 = math.tanh %137 : vector<2x256xf32>
    %139 = arith.mulf %134, %138 : vector<2x256xf32>
    %c5_i32 = arith.constant 5 : i32
    %140 = arith.index_cast %c5_i32 : i32 to index
    %c0_26 = arith.constant 0 : index
    %c0_27 = arith.constant 0 : index
    %141 = vector.load %arg0[%140, %c0_26, %c0_27] : memref<8x2x1xf32, #tpu.memory_space<vmem>>, vector<1x2x1xf32>
    %142 = vector.shape_cast %141 : vector<1x2x1xf32> to vector<2x1xf32>
    %143 = vector.broadcast %142 : vector<2x1xf32> to vector<2x1024xf32>
    %144 = vector.broadcast %0 : vector<1x1024xf32> to vector<2x1024xf32>
    %145 = arith.mulf %143, %144 : vector<2x1024xf32>
    %146 = vector.broadcast %2 : vector<1x1024xf32> to vector<2x1024xf32>
    %147 = arith.addf %145, %146 : vector<2x1024xf32>
    %148 = arith.truncf %139 : vector<2x256xf32> to vector<2x256xbf16>
    %cst_28 = arith.constant dense<0.000000e+00> : vector<2x1024xf32>
    %149 = tpu.matmul %148, %1, %cst_28 {dimension_numbers = #tpu.dot_dimension_numbers<[1], [0], [0], [1], [0, 0, 1, 1], [], []>} : vector<2x256xbf16>, vector<256x1024xbf16>, vector<2x1024xf32> -> vector<2x1024xf32>
    %150 = arith.addf %147, %149 : vector<2x1024xf32>
    %151 = vector.extract_strided_slice %150 {offsets = [0, 0], sizes = [2, 768], strides = [1, 1]} : vector<2x1024xf32> to vector<2x768xf32>
    %152 = arith.negf %151 : vector<2x768xf32>
    %153 = math.exp %152 : vector<2x768xf32>
    %cst_29 = arith.constant 1.000000e+00 : f32
    %154 = vector.broadcast %cst_29 : f32 to vector<2x768xf32>
    %155 = arith.addf %154, %153 : vector<2x768xf32>
    %156 = arith.divf %154, %155 : vector<2x768xf32>
    %157 = vector.extract_strided_slice %150 {offsets = [0, 768], sizes = [2, 256], strides = [1, 1]} : vector<2x1024xf32> to vector<2x256xf32>
    %158 = math.tanh %157 : vector<2x256xf32>
    %159 = vector.extract_strided_slice %156 {offsets = [0, 0], sizes = [2, 256], strides = [1, 1]} : vector<2x768xf32> to vector<2x256xf32>
    %160 = vector.extract_strided_slice %156 {offsets = [0, 256], sizes = [2, 256], strides = [1, 1]} : vector<2x768xf32> to vector<2x256xf32>
    %161 = vector.extract_strided_slice %156 {offsets = [0, 512], sizes = [2, 256], strides = [1, 1]} : vector<2x768xf32> to vector<2x256xf32>
    %162 = arith.mulf %160, %137 : vector<2x256xf32>
    %163 = arith.mulf %159, %158 : vector<2x256xf32>
    %164 = arith.addf %162, %163 : vector<2x256xf32>
    %165 = math.tanh %164 : vector<2x256xf32>
    %166 = arith.mulf %161, %165 : vector<2x256xf32>
    %c6_i32 = arith.constant 6 : i32
    %167 = arith.index_cast %c6_i32 : i32 to index
    %c0_30 = arith.constant 0 : index
    %c0_31 = arith.constant 0 : index
    %168 = vector.load %arg0[%167, %c0_30, %c0_31] : memref<8x2x1xf32, #tpu.memory_space<vmem>>, vector<1x2x1xf32>
    %169 = vector.shape_cast %168 : vector<1x2x1xf32> to vector<2x1xf32>
    %170 = vector.broadcast %169 : vector<2x1xf32> to vector<2x1024xf32>
    %171 = vector.broadcast %0 : vector<1x1024xf32> to vector<2x1024xf32>
    %172 = arith.mulf %170, %171 : vector<2x1024xf32>
    %173 = vector.broadcast %2 : vector<1x1024xf32> to vector<2x1024xf32>
    %174 = arith.addf %172, %173 : vector<2x1024xf32>
    %175 = arith.truncf %166 : vector<2x256xf32> to vector<2x256xbf16>
    %cst_32 = arith.constant dense<0.000000e+00> : vector<2x1024xf32>
    %176 = tpu.matmul %175, %1, %cst_32 {dimension_numbers = #tpu.dot_dimension_numbers<[1], [0], [0], [1], [0, 0, 1, 1], [], []>} : vector<2x256xbf16>, vector<256x1024xbf16>, vector<2x1024xf32> -> vector<2x1024xf32>
    %177 = arith.addf %174, %176 : vector<2x1024xf32>
    %178 = vector.extract_strided_slice %177 {offsets = [0, 0], sizes = [2, 768], strides = [1, 1]} : vector<2x1024xf32> to vector<2x768xf32>
    %179 = arith.negf %178 : vector<2x768xf32>
    %180 = math.exp %179 : vector<2x768xf32>
    %cst_33 = arith.constant 1.000000e+00 : f32
    %181 = vector.broadcast %cst_33 : f32 to vector<2x768xf32>
    %182 = arith.addf %181, %180 : vector<2x768xf32>
    %183 = arith.divf %181, %182 : vector<2x768xf32>
    %184 = vector.extract_strided_slice %177 {offsets = [0, 768], sizes = [2, 256], strides = [1, 1]} : vector<2x1024xf32> to vector<2x256xf32>
    %185 = math.tanh %184 : vector<2x256xf32>
    %186 = vector.extract_strided_slice %183 {offsets = [0, 0], sizes = [2, 256], strides = [1, 1]} : vector<2x768xf32> to vector<2x256xf32>
    %187 = vector.extract_strided_slice %183 {offsets = [0, 256], sizes = [2, 256], strides = [1, 1]} : vector<2x768xf32> to vector<2x256xf32>
    %188 = vector.extract_strided_slice %183 {offsets = [0, 512], sizes = [2, 256], strides = [1, 1]} : vector<2x768xf32> to vector<2x256xf32>
    %189 = arith.mulf %187, %164 : vector<2x256xf32>
    %190 = arith.mulf %186, %185 : vector<2x256xf32>
    %191 = arith.addf %189, %190 : vector<2x256xf32>
    %192 = math.tanh %191 : vector<2x256xf32>
    %193 = arith.mulf %188, %192 : vector<2x256xf32>
    %c7_i32 = arith.constant 7 : i32
    %194 = arith.index_cast %c7_i32 : i32 to index
    %c0_34 = arith.constant 0 : index
    %c0_35 = arith.constant 0 : index
    %195 = vector.load %arg0[%194, %c0_34, %c0_35] : memref<8x2x1xf32, #tpu.memory_space<vmem>>, vector<1x2x1xf32>
    %196 = vector.shape_cast %195 : vector<1x2x1xf32> to vector<2x1xf32>
    %197 = vector.broadcast %196 : vector<2x1xf32> to vector<2x1024xf32>
    %198 = vector.broadcast %0 : vector<1x1024xf32> to vector<2x1024xf32>
    %199 = arith.mulf %197, %198 : vector<2x1024xf32>
    %200 = vector.broadcast %2 : vector<1x1024xf32> to vector<2x1024xf32>
    %201 = arith.addf %199, %200 : vector<2x1024xf32>
    %202 = arith.truncf %193 : vector<2x256xf32> to vector<2x256xbf16>
    %cst_36 = arith.constant dense<0.000000e+00> : vector<2x1024xf32>
    %203 = tpu.matmul %202, %1, %cst_36 {dimension_numbers = #tpu.dot_dimension_numbers<[1], [0], [0], [1], [0, 0, 1, 1], [], []>} : vector<2x256xbf16>, vector<256x1024xbf16>, vector<2x1024xf32> -> vector<2x1024xf32>
    %204 = arith.addf %201, %203 : vector<2x1024xf32>
    %205 = vector.extract_strided_slice %204 {offsets = [0, 0], sizes = [2, 768], strides = [1, 1]} : vector<2x1024xf32> to vector<2x768xf32>
    %206 = arith.negf %205 : vector<2x768xf32>
    %207 = math.exp %206 : vector<2x768xf32>
    %cst_37 = arith.constant 1.000000e+00 : f32
    %208 = vector.broadcast %cst_37 : f32 to vector<2x768xf32>
    %209 = arith.addf %208, %207 : vector<2x768xf32>
    %210 = arith.divf %208, %209 : vector<2x768xf32>
    %211 = vector.extract_strided_slice %204 {offsets = [0, 768], sizes = [2, 256], strides = [1, 1]} : vector<2x1024xf32> to vector<2x256xf32>
    %212 = math.tanh %211 : vector<2x256xf32>
    %213 = vector.extract_strided_slice %210 {offsets = [0, 0], sizes = [2, 256], strides = [1, 1]} : vector<2x768xf32> to vector<2x256xf32>
    %214 = vector.extract_strided_slice %210 {offsets = [0, 256], sizes = [2, 256], strides = [1, 1]} : vector<2x768xf32> to vector<2x256xf32>
    %215 = vector.extract_strided_slice %210 {offsets = [0, 512], sizes = [2, 256], strides = [1, 1]} : vector<2x768xf32> to vector<2x256xf32>
    %216 = arith.mulf %214, %191 : vector<2x256xf32>
    %217 = arith.mulf %213, %212 : vector<2x256xf32>
    %218 = arith.addf %216, %217 : vector<2x256xf32>
    %219 = math.tanh %218 : vector<2x256xf32>
    %220 = arith.mulf %215, %219 : vector<2x256xf32>
    %c8_i32 = arith.constant 8 : i32
    %c0_38 = arith.constant 0 : index
    %c0_39 = arith.constant 0 : index
    %221 = vector.load %arg4[%c0_38, %c0_39] : memref<256x128xf32, #tpu.memory_space<vmem>>, vector<256x128xf32>
    %cst_40 = arith.constant dense<0.000000e+00> : vector<2x128xf32>
    %222 = tpu.matmul %220, %221, %cst_40 {dimension_numbers = #tpu.dot_dimension_numbers<[1], [0], [0], [1], [0, 0, 1, 1], [], []>} : vector<2x256xf32>, vector<256x128xf32>, vector<2x128xf32> -> vector<2x128xf32>
    %c0_41 = arith.constant 0 : index
    %c0_42 = arith.constant 0 : index
    %223 = vector.load %arg5[%c0_41, %c0_42] : memref<1x128xf32, #tpu.memory_space<vmem>>, vector<1x128xf32>
    %224 = vector.broadcast %223 : vector<1x128xf32> to vector<2x128xf32>
    %225 = arith.addf %222, %224 : vector<2x128xf32>
    %cst_43 = arith.constant 0.000000e+00 : f32
    %226 = vector.broadcast %cst_43 : f32 to vector<2x128xf32>
    %227 = arith.maximumf %225, %226 : vector<2x128xf32>
    %c0_44 = arith.constant 0 : index
    %c0_45 = arith.constant 0 : index
    %228 = vector.load %arg6[%c0_44, %c0_45] : memref<128x128xf32, #tpu.memory_space<vmem>>, vector<128x128xf32>
    %cst_46 = arith.constant dense<0.000000e+00> : vector<2x128xf32>
    %229 = tpu.matmul %227, %228, %cst_46 {dimension_numbers = #tpu.dot_dimension_numbers<[1], [0], [0], [1], [0, 0, 1, 1], [], []>} : vector<2x128xf32>, vector<128x128xf32>, vector<2x128xf32> -> vector<2x128xf32>
    %c0_47 = arith.constant 0 : index
    %c0_48 = arith.constant 0 : index
    %230 = vector.load %arg7[%c0_47, %c0_48] : memref<1x128xf32, #tpu.memory_space<vmem>>, vector<1x128xf32>
    %231 = vector.broadcast %230 : vector<1x128xf32> to vector<2x128xf32>
    %232 = arith.addf %229, %231 : vector<2x128xf32>
    %cst_49 = arith.constant 0.000000e+00 : f32
    %233 = vector.broadcast %cst_49 : f32 to vector<2x128xf32>
    %234 = arith.maximumf %232, %233 : vector<2x128xf32>
    %c0_50 = arith.constant 0 : index
    %c0_51 = arith.constant 0 : index
    %235 = vector.load %arg8[%c0_50, %c0_51] : memref<128x128xf32, #tpu.memory_space<vmem>>, vector<128x128xf32>
    %cst_52 = arith.constant dense<0.000000e+00> : vector<2x128xf32>
    %236 = tpu.matmul %234, %235, %cst_52 {dimension_numbers = #tpu.dot_dimension_numbers<[1], [0], [0], [1], [0, 0, 1, 1], [], []>} : vector<2x128xf32>, vector<128x128xf32>, vector<2x128xf32> -> vector<2x128xf32>
    %c0_53 = arith.constant 0 : index
    %c0_54 = arith.constant 0 : index
    %237 = vector.load %arg9[%c0_53, %c0_54] : memref<1x128xf32, #tpu.memory_space<vmem>>, vector<1x128xf32>
    %238 = vector.broadcast %237 : vector<1x128xf32> to vector<2x128xf32>
    %239 = arith.addf %236, %238 : vector<2x128xf32>
    %c0_55 = arith.constant 0 : index
    %c0_56 = arith.constant 0 : index
    %240 = vector.load %arg10[%c0_55, %c0_56] : memref<2x128xf32, #tpu.memory_space<vmem>>, vector<2x128xf32>
    tpu.vector_store %arg10[%c0_55, %c0_56], %239 {strides = array<i32>} : memref<2x128xf32, #tpu.memory_space<vmem>>, vector<2x128xf32>,
    return
  }
}

</mosaic_0001>

<bundles_post_ra>
// kernel: lstm_dnn_quantile_forward.1
= control target key start
LH: loop header
LB: loop body
LE: loop exit
PB: predicated region body
PF: predicated region fallthrough
CT: control target
= control target key end

     0   :  { %15 = vsyncpa [#allocation3], 0  ;;  %s5711_s0 = inlined_call_operand.vmem [shape: f32[8,2,1], index: 0, kind: input, shape index: {}]   ;;  %s5712_s1 = inlined_call_operand.vmem [shape: f32[1,1024], index: 1, kind: input, shape index: {}]   ;;  %s5713_s2 = inlined_call_operand.hbm [shape: bf16[256,1024], index: 2, kind: input, shape index: {}]   ;;  %s5714_s3 = inlined_call_operand.vmem [shape: f32[1,1024], index: 3, kind: input, shape index: {}]   ;;  %s5715_s4 = inlined_call_operand.hbm [shape: f32[256,128], index: 4, kind: input, shape index: {}]   ;;  %s5716_s5 = inlined_call_operand.vmem [shape: f32[1,128], index: 5, kind: input, shape index: {}]   ;;  %s5717_s6 = inlined_call_operand.hbm [shape: f32[128,128], index: 6, kind: input, shape index: {}]   ;;  %s5718_s7 = inlined_call_operand.vmem [shape: f32[1,128], index: 7, kind: input, shape index: {}]   ;;  %s5719_s8 = inlined_call_operand.hbm [shape: f32[128,128], index: 8, kind: input, shape index: {}]   ;;  %s5720_s9 = inlined_call_operand.vmem [shape: f32[1,128], index: 9, kind: input, shape index: {}]   ;;  %s5721_s10 = inlined_call_operand.vmem [shape: f32[2,128], index: 10, kind: output, shape index: {}]  }
   0x1   :  { %16 = vsyncpa [#allocation5], 0 }
   0x2   :  { %17 = vsyncpa [#allocation8], 0  ;;  %s3974_s13 = smov [#allocation4]   ;;  %s3880_s17 = scalar_lea.hbm %s5715_s4, 4096 }
   0x3   :  { %s41_s14 = sshll.u32 %s3974_s13, 4  ;;  %p3881_p0 = scmp.ne.s32.totalorder %s5715_s4, %s3880_s17  ;;  %s42_s14 = int_to_ptr.vmem [resolvable:$true] %s41_s14 }
   0x4   :  { %p3884_p1 = scmp.lt.u32.totalorder %s3880_s17, %s5715_s4 }
   0x6   :  { %p3886_p2 = pnand %p3884_p1, %p3881_p0 }
   0x8   :  { %3889 = shalt.err (!%p3886_p2)
}
   0x9   :  { %s3890_s22 = scalar_lea.vmem %s42_s14, 4096  ;;  %p3895_p4 = scmp.lt.s32.totalorder %s42_s14, %s42_s14 }
   0xa   :  { %p3891_p3 = scmp.ne.s32.totalorder %s42_s14, %s3890_s22  ;;  %p3896_p5 = scmp.lt.s32.totalorder %s3890_s22, %s3890_s22 }
   0xc   :  { %p3897_p6 = por %p3896_p5, %p3895_p4 }
   0xe   :  { %p3898_p7 = pnand %p3897_p6, %p3891_p3 }
  0x10   :  { %3901 = shalt.err (!%p3898_p7)
}
  0x11   :  { %s3975_s23 = smov 128   ;;  %s3976_s24 = smov 8  }
  0x12   :  { %47 = dma.hbm_to_vmem [thread:$0]  %s5715_s4, 4096, %s42_s14, [#allocation5], %s3975_s23, %s3975_s23, %s3976_s24  }
  0x13   :  { %s3977_s27 = smov [#allocation2]   ;;  %s3902_s11 = scalar_lea.hbm %s5713_s2, 16384 }
  0x14   :  { %s27_s28 = sshll.u32 %s3977_s27, 4  ;;  %p3903_p8 = scmp.ne.s32.totalorder %s5713_s2, %s3902_s11  ;;  %s28_s28 = int_to_ptr.vmem [resolvable:$true] %s27_s28 }
  0x15   :  { %p3906_p9 = scmp.lt.u32.totalorder %s3902_s11, %s5713_s2 }
  0x17   :  { %p3908_p10 = pnand %p3906_p9, %p3903_p8 }
  0x19   :  { %3911 = shalt.err (!%p3908_p10)
}
  0x1a   :  { %s3912_s17 = scalar_lea.vmem %s28_s28, 16384  ;;  %p3917_p12 = scmp.lt.s32.totalorder %s28_s28, %s28_s28 }
  0x1b   :  { %p3913_p11 = scmp.ne.s32.totalorder %s28_s28, %s3912_s17  ;;  %p3918_p13 = scmp.lt.s32.totalorder %s3912_s17, %s3912_s17 }
  0x1d   :  { %p3919_p0 = por %p3918_p13, %p3917_p12 }
  0x1f   :  { %p3920_p1 = pnand %p3919_p0, %p3913_p11 }
  0x21   :  { %3923 = shalt.err (!%p3920_p1)
}
  0x22   :  { %s3978_s4 = smov 512   ;;  %s3979_s14 = smov 32  }
  0x23   :  { %33 = dma.hbm_to_vmem [thread:$0]  %s5713_s2, 16384, %s28_s28, [#allocation3], %s3978_s4, %s3978_s4, %s3979_s14  }
  0x24   :  { %s3980_s20 = smov [#allocation6]   ;;  %s3981_s22 = smov [#allocation7]  }
  0x25   :  { %s55_s21 = sshll.u32 %s3980_s20, 4  ;;  %s69_s25 = sshll.u32 %s3981_s22, 4  ;;  %s56_s21 = int_to_ptr.vmem [resolvable:$true] %s55_s21  ;;  %s4068_s25 = int_to_ptr.vmem [resolvable:$true] %s69_s25 }
  0x26   :  { %s3924_s29 = scalar_lea.hbm %s5717_s6, 2048 }
  0x27   :  { %p3925_p2 = scmp.ne.s32.totalorder %s5717_s6, %s3924_s29  ;;  %p3928_p3 = scmp.lt.u32.totalorder %s3924_s29, %s5717_s6 }
  0x29   :  { %p3930_p4 = pnand %p3928_p3, %p3925_p2 }
  0x2b   :  { %3933 = shalt.err (!%p3930_p4)
}
  0x2c   :  { %s3934_s2 = scalar_lea.vmem %s56_s21, 2048  ;;  %p3939_p6 = scmp.lt.s32.totalorder %s56_s21, %s56_s21 }
  0x2d   :  { %p3935_p5 = scmp.ne.s32.totalorder %s56_s21, %s3934_s2  ;;  %p3940_p7 = scmp.lt.s32.totalorder %s3934_s2, %s3934_s2 }
  0x2f   :  { %p3941_p8 = por %p3940_p7, %p3939_p6 }
  0x31   :  { %p3942_p9 = pnand %p3941_p8, %p3935_p5 }
  0x33   :  { %3945 = shalt.err (!%p3942_p9)
}
  0x34   :  { %61 = dma.hbm_to_vmem [thread:$0]  %s5717_s6, 2048, %s56_s21, [#allocation5], %s3975_s23, %s3975_s23, %s3976_s24  }
  0x35   :  { %s3946_s4 = scalar_lea.hbm %s5719_s8, 2048 }
  0x36   :  { %p3947_p10 = scmp.ne.s32.totalorder %s5719_s8, %s3946_s4  ;;  %p3950_p11 = scmp.lt.u32.totalorder %s3946_s4, %s5719_s8 }
  0x38   :  { %p3952_p12 = pnand %p3950_p11, %p3947_p10 }
  0x3a   :  { %3955 = shalt.err (!%p3952_p12)
}
  0x3b   :  { %s3956_s22 = scalar_lea.vmem %s4068_s25, 2048  ;;  %p3961_p0 = scmp.lt.s32.totalorder %s4068_s25, %s4068_s25 }
  0x3c   :  { %p3957_p13 = scmp.ne.s32.totalorder %s4068_s25, %s3956_s22  ;;  %p3962_p1 = scmp.lt.s32.totalorder %s3956_s22, %s3956_s22 }
  0x3e   :  { %p3963_p2 = por %p3962_p1, %p3961_p0 }
  0x40   :  { %p3964_p3 = pnand %p3963_p2, %p3957_p13 }
  0x42   :  { %3967 = shalt.err (!%p3964_p3)
}
  0x43   :  { %75 = dma.hbm_to_vmem [thread:$0]  %s5719_s8, 2048, %s4068_s25, [#allocation8], %s3975_s23, %s3975_s23, %s3976_s24  }
  0x44   :  { %3968 = dma.done.wait [#allocation3], 16384  }
  0x45   :  { %3969 = vsyncadd [#allocation3], 4294950912 }
  0x46   :  { %3970 = dma.done.wait [#allocation5], 6144  }
  0x47   :  { %3971 = vsyncadd [#allocation5], 4294961152 }
  0x48   :  { %3972 = dma.done.wait [#allocation8], 2048  }
  0x49   :  { %3973 = vsyncadd [#allocation8], 4294965248  ;;  %v5722_v0 = vmov 0   ;;  %v92_v1 = vld [vmem:[#allocation2] sm:$0xff]  ;;  %v93_v3 = vld [vmem:[#allocation2 + $0x8] sm:$0xff]  ;;  %vm3984_vm0 = vmmov 0  }
  0x4a   :  { %997 = vmatprep.mubr.bf16.mxu0 %v5722_v0  ;;  %1038 = vmatprep.mubr.bf16.mxu1 %v5722_v0  ;;  %v96_v2 = vld [vmem:[#allocation2 + $0x20] sm:$0xff]  ;;  %v97_v5 = vld [vmem:[#allocation2 + $0x28] sm:$0xff] }
  0x4b   :  { %3622 = vset.pattern.permute.xlu0 %v5722_v0  ;;  %3623 = vset.pattern.permute.xlu1 %v5722_v0  ;;  %v4109_v4 = vcombine.high %v92_v1, %v96_v2  ;;  %v4111_v6 = vcombine.low %v92_v1, %v96_v2  ;;  %v100_v7 = vld [vmem:[#allocation2 + $0x40] sm:$0xff]  ;;  %v4113_v9 = vcombine.high %v93_v3, %v97_v5  ;;  %v101_v12 = vld [vmem:[#allocation2 + $0x48] sm:$0xff] }
  0x4c   :  { %v104_v8 = vld [vmem:[#allocation2 + $0x60] sm:$0xff]  ;;  %v4115_v10 = vcombine.low %v93_v3, %v97_v5  ;;  %v105_v13 = vld [vmem:[#allocation2 + $0x68] sm:$0xff] }
  0x4d   :  { %6027 = vst [vmem:[#allocation12_spill] sm:$0xff] %v4109_v4  ;;  %6028 = vst [vmem:[#allocation13_spill] sm:$0xff] %v4111_v6  ;;  %v4117_v11 = vcombine.high %v100_v7, %v104_v8  ;;  %v108_v14 = vld [vmem:[#allocation2 + $0x80] sm:$0xff]  ;;  %965 = vmatprep.subr.bf16.mxu0 %v4109_v4  ;;  %v4120_v15 = vcombine.high %v101_v12, %v105_v13  ;;  %v109_v17 = vld [vmem:[#allocation2 + $0x88] sm:$0xff]  ;;  %1006 = vmatprep.subr.bf16.mxu1 %v4113_v9 }
  0x4e   :  { %6029 = vst [vmem:[#allocation14_spill] sm:$0xff] %v4113_v9  ;;  %6030 = vst [vmem:[#allocation15_spill] sm:$0xff] %v4115_v10  ;;  %v112_v16 = vld [vmem:[#allocation2 + $0xa0] sm:$0xff]  ;;  %v113_v18 = vld [vmem:[#allocation2 + $0xa8] sm:$0xff]  ;;  %966 = vmatpush1.bf16.msra.mxu0 %v4111_v6  ;;  %v4124_v19 = vcombine.low %v100_v7, %v104_v8  ;;  %1007 = vmatpush1.bf16.msra.mxu1 %v4115_v10  ;;  %v4128_v20 = vcombine.low %v101_v12, %v105_v13 }
  0x4f   :  { %6031 = vst [vmem:[#allocation16_spill] sm:$0xff] %v4117_v11  ;;  %6032 = vst [vmem:[#allocation17_spill] sm:$0xff] %v4120_v15  ;;  %967 = vmatprep.subr.bf16.mxu0 %v4117_v11  ;;  %v4130_v21 = vcombine.high %v108_v14, %v112_v16  ;;  %1008 = vmatprep.subr.bf16.mxu1 %v4120_v15  ;;  %v4133_v22 = vcombine.high %v109_v17, %v113_v18  ;;  %v116_v23 = vld [vmem:[#allocation2 + $0xc0] sm:$0xff]  ;;  %v117_v25 = vld [vmem:[#allocation2 + $0xc8] sm:$0xff] }
  0x50   :  { %6033 = vst [vmem:[#allocation18_spill] sm:$0xff] %v4124_v19  ;;  %6034 = vst [vmem:[#allocation19_spill] sm:$0xff] %v4128_v20  ;;  %v120_v24 = vld [vmem:[#allocation2 + $0xe0] sm:$0xff]  ;;  %v121_v26 = vld [vmem:[#allocation2 + $0xe8] sm:$0xff]  ;;  %v4136_v27 = vcombine.low %v108_v14, %v112_v16  ;;  %v4140_v28 = vcombine.low %v109_v17, %v113_v18 }
  0x51   :  { %6035 = vst [vmem:[#allocation20_spill] sm:$0xff] %v4130_v21  ;;  %6036 = vst [vmem:[#allocation21_spill] sm:$0xff] %v4133_v22  ;;  %v4142_v29 = vcombine.high %v116_v23, %v120_v24  ;;  %v4145_v30 = vcombine.high %v117_v25, %v121_v26  ;;  %v124_v31 = vld [vmem:[#allocation2 + $0x100] sm:$0xff]  ;;  %v125_v33 = vld [vmem:[#allocation2 + $0x108] sm:$0xff]  ;;  %v4148_v35 = vcombine.low %v116_v23, %v120_v24 }
  0x52   :  { %968 = vmatpush1.bf16.msra.mxu0 %v4124_v19  ;;  %6037 = vst [vmem:[#allocation22_spill] sm:$0xff] %v4136_v27  ;;  %1009 = vmatpush1.bf16.msra.mxu1 %v4128_v20  ;;  %6038 = vst [vmem:[#allocation23_spill] sm:$0xff] %v4140_v28  ;;  %v128_v32 = vld [vmem:[#allocation2 + $0x120] sm:$0xff]  ;;  %v129_v34 = vld [vmem:[#allocation2 + $0x128] sm:$0xff]  ;;  %v4152_v36 = vcombine.low %v117_v25, %v121_v26 }
  0x53   :  { %969 = vmatprep.subr.bf16.mxu0 %v4130_v21  ;;  %6039 = vst [vmem:[#allocation24_spill] sm:$0xff] %v4142_v29  ;;  %1010 = vmatprep.subr.bf16.mxu1 %v4133_v22  ;;  %6040 = vst [vmem:[#allocation25_spill] sm:$0xff] %v4145_v30  ;;  %v4154_v37 = vcombine.high %v124_v31, %v128_v32  ;;  %v4157_v38 = vcombine.high %v125_v33, %v129_v34  ;;  %v132_v39 = vld [vmem:[#allocation2 + $0x140] sm:$0xff]  ;;  %v133_v41 = vld [vmem:[#allocation2 + $0x148] sm:$0xff] }
  0x54   :  { %6041 = vst [vmem:[#allocation26_spill] sm:$0xff] %v4148_v35  ;;  %6042 = vst [vmem:[#allocation27_spill] sm:$0xff] %v4152_v36  ;;  %v136_v40 = vld [vmem:[#allocation2 + $0x160] sm:$0xff]  ;;  %v137_v42 = vld [vmem:[#allocation2 + $0x168] sm:$0xff]  ;;  %v4160_v43 = vcombine.low %v124_v31, %v128_v32  ;;  %v4164_v44 = vcombine.low %v125_v33, %v129_v34 }
  0x55   :  { %6043 = vst [vmem:[#allocation28_spill] sm:$0xff] %v4154_v37  ;;  %6044 = vst [vmem:[#allocation29_spill] sm:$0xff] %v4157_v38  ;;  %v4166_v45 = vcombine.high %v132_v39, %v136_v40  ;;  %v4169_v46 = vcombine.high %v133_v41, %v137_v42  ;;  %v140_v47 = vld [vmem:[#allocation2 + $0x180] sm:$0xff]  ;;  %v141_v49 = vld [vmem:[#allocation2 + $0x188] sm:$0xff]  ;;  %v4172_v51 = vcombine.low %v132_v39, %v136_v40 }
  0x56   :  { %970 = vmatpush1.bf16.msra.mxu0 %v4136_v27  ;;  %1011 = vmatpush1.bf16.msra.mxu1 %v4140_v28  ;;  %6045 = vst [vmem:[#allocation30_spill] sm:$0xff] %v4160_v43  ;;  %6046 = vst [vmem:[#allocation31_spill] sm:$0xff] %v4164_v44  ;;  %v144_v48 = vld [vmem:[#allocation2 + $0x1a0] sm:$0xff]  ;;  %v145_v50 = vld [vmem:[#allocation2 + $0x1a8] sm:$0xff]  ;;  %v4176_v52 = vcombine.low %v133_v41, %v137_v42 }
  0x57   :  { %971 = vmatprep.subr.bf16.mxu0 %v4142_v29  ;;  %1012 = vmatprep.subr.bf16.mxu1 %v4145_v30  ;;  %6047 = vst [vmem:[#allocation32_spill] sm:$0xff] %v4166_v45  ;;  %6048 = vst [vmem:[#allocation33_spill] sm:$0xff] %v4169_v46  ;;  %v4178_v53 = vcombine.high %v140_v47, %v144_v48  ;;  %v4181_v54 = vcombine.high %v141_v49, %v145_v50  ;;  %v148_v55 = vld [vmem:[#allocation2 + $0x1c0] sm:$0xff]  ;;  %v149_v57 = vld [vmem:[#allocation2 + $0x1c8] sm:$0xff] }
  0x58   :  { %6049 = vst [vmem:[#allocation34_spill] sm:$0xff] %v4172_v51  ;;  %6050 = vst [vmem:[#allocation35_spill] sm:$0xff] %v4176_v52  ;;  %v152_v56 = vld [vmem:[#allocation2 + $0x1e0] sm:$0xff]  ;;  %v153_v58 = vld [vmem:[#allocation2 + $0x1e8] sm:$0xff]  ;;  %v4184_v59 = vcombine.low %v140_v47, %v144_v48  ;;  %v4188_v60 = vcombine.low %v141_v49, %v145_v50 }
  0x59   :  { %6051 = vst [vmem:[#allocation36_spill] sm:$0xff] %v4178_v53  ;;  %6052 = vst [vmem:[#allocation37_spill] sm:$0xff] %v4181_v54  ;;  %v4190_v61 = vcombine.high %v148_v55, %v152_v56  ;;  %v4193_v62 = vcombine.high %v149_v57, %v153_v58  ;;  %v156_v63 = vld [vmem:[#allocation2 + $0x200] sm:$0xff]  ;;  %v157_v2 = vld [vmem:[#allocation2 + $0x208] sm:$0xff]  ;;  %v4196_v5 = vcombine.low %v148_v55, %v152_v56 }
  0x5a   :  { %972 = vmatpush1.bf16.msra.mxu0 %v4148_v35  ;;  %1013 = vmatpush1.bf16.msra.mxu1 %v4152_v36  ;;  %6053 = vst [vmem:[#allocation38_spill] sm:$0xff] %v4184_v59  ;;  %6054 = vst [vmem:[#allocation39_spill] sm:$0xff] %v4188_v60  ;;  %v160_v1 = vld [vmem:[#allocation2 + $0x220] sm:$0xff]  ;;  %v161_v3 = vld [vmem:[#allocation2 + $0x228] sm:$0xff]  ;;  %v4200_v7 = vcombine.low %v149_v57, %v153_v58 }
  0x5b   :  { %973 = vmatprep.subr.bf16.mxu0 %v4154_v37  ;;  %1014 = vmatprep.subr.bf16.mxu1 %v4157_v38  ;;  %6055 = vst [vmem:[#allocation40_spill] sm:$0xff] %v4190_v61  ;;  %6056 = vst [vmem:[#allocation41_spill] sm:$0xff] %v4193_v62  ;;  %v4202_v8 = vcombine.high %v156_v63, %v160_v1  ;;  %v4205_v12 = vcombine.high %v157_v2, %v161_v3  ;;  %v164_v13 = vld [vmem:[#allocation2 + $0x240] sm:$0xff]  ;;  %v165_v16 = vld [vmem:[#allocation2 + $0x248] sm:$0xff] }
  0x5c   :  { %6057 = vst [vmem:[#allocation42_spill] sm:$0xff] %v4196_v5  ;;  %6058 = vst [vmem:[#allocation43_spill] sm:$0xff] %v4200_v7  ;;  %v168_v14 = vld [vmem:[#allocation2 + $0x260] sm:$0xff]  ;;  %v169_v17 = vld [vmem:[#allocation2 + $0x268] sm:$0xff]  ;;  %v4208_v18 = vcombine.low %v156_v63, %v160_v1  ;;  %v4212_v23 = vcombine.low %v157_v2, %v161_v3 }
  0x5d   :  { %6059 = vst [vmem:[#allocation44_spill] sm:$0xff] %v4202_v8  ;;  %6060 = vst [vmem:[#allocation45_spill] sm:$0xff] %v4205_v12  ;;  %v4214_v24 = vcombine.high %v164_v13, %v168_v14  ;;  %v4217_v25 = vcombine.high %v165_v16, %v169_v17  ;;  %v172_v26 = vld [vmem:[#allocation2 + $0x280] sm:$0xff]  ;;  %v173_v32 = vld [vmem:[#allocation2 + $0x288] sm:$0xff]  ;;  %v4220_v34 = vcombine.low %v164_v13, %v168_v14 }
  0x5e   :  { %974 = vmatpush1.bf16.msra.mxu0 %v4160_v43  ;;  %1015 = vmatpush1.bf16.msra.mxu1 %v4164_v44  ;;  %6061 = vst [vmem:[#allocation46_spill] sm:$0xff] %v4208_v18  ;;  %6062 = vst [vmem:[#allocation47_spill] sm:$0xff] %v4212_v23  ;;  %v176_v31 = vld [vmem:[#allocation2 + $0x2a0] sm:$0xff]  ;;  %v177_v33 = vld [vmem:[#allocation2 + $0x2a8] sm:$0xff]  ;;  %v4224_v39 = vcombine.low %v165_v16, %v169_v17 }
  0x5f   :  { %975 = vmatprep.subr.bf16.mxu0 %v4166_v45  ;;  %1016 = vmatprep.subr.bf16.mxu1 %v4169_v46  ;;  %6063 = vst [vmem:[#allocation48_spill] sm:$0xff] %v4214_v24  ;;  %6064 = vst [vmem:[#allocation49_spill] sm:$0xff] %v4217_v25  ;;  %v4226_v40 = vcombine.high %v172_v26, %v176_v31  ;;  %v4229_v41 = vcombine.high %v173_v32, %v177_v33  ;;  %v180_v42 = vld [vmem:[#allocation2 + $0x2c0] sm:$0xff]  ;;  %v181_v48 = vld [vmem:[#allocation2 + $0x2c8] sm:$0xff] }
  0x60   :  { %6065 = vst [vmem:[#allocation50_spill] sm:$0xff] %v4220_v34  ;;  %6066 = vst [vmem:[#allocation51_spill] sm:$0xff] %v4224_v39  ;;  %v184_v47 = vld [vmem:[#allocation2 + $0x2e0] sm:$0xff]  ;;  %v185_v49 = vld [vmem:[#allocation2 + $0x2e8] sm:$0xff]  ;;  %v4232_v50 = vcombine.low %v172_v26, %v176_v31  ;;  %v4236_v55 = vcombine.low %v173_v32, %v177_v33 }
  0x61   :  { %6067 = vst [vmem:[#allocation52_spill] sm:$0xff] %v4226_v40  ;;  %6068 = vst [vmem:[#allocation53_spill] sm:$0xff] %v4229_v41  ;;  %v4238_v56 = vcombine.high %v180_v42, %v184_v47  ;;  %v4241_v57 = vcombine.high %v181_v48, %v185_v49  ;;  %v188_v58 = vld [vmem:[#allocation2 + $0x300] sm:$0xff]  ;;  %v189_v2 = vld [vmem:[#allocation2 + $0x308] sm:$0xff]  ;;  %v4247_v13 = vcombine.low %v180_v42, %v184_v47 }
  0x62   :  { %976 = vmatpush1.bf16.msra.mxu0 %v4172_v51  ;;  %1017 = vmatpush1.bf16.msra.mxu1 %v4176_v52  ;;  %6069 = vst [vmem:[#allocation54_spill] sm:$0xff] %v4232_v50  ;;  %6070 = vst [vmem:[#allocation55_spill] sm:$0xff] %v4236_v55  ;;  %v192_v63 = vld [vmem:[#allocation2 + $0x320] sm:$0xff]  ;;  %v193_v3 = vld [vmem:[#allocation2 + $0x328] sm:$0xff]  ;;  %v4254_v16 = vcombine.low %v181_v48, %v185_v49 }
  0x63   :  { %977 = vmatprep.subr.bf16.mxu0 %v4178_v53  ;;  %1018 = vmatprep.subr.bf16.mxu1 %v4181_v54  ;;  %6071 = vst [vmem:[#allocation56_spill] sm:$0xff] %v4238_v56  ;;  %6072 = vst [vmem:[#allocation57_spill] sm:$0xff] %v4241_v57  ;;  %v221_v1 = vld [vmem:[%s5711_s0] sm:$0x3]  ;;  %v3339_v14 = vld [vmem:[%s5711_s0 + $0x2] sm:$0x3]  ;;  %v4256_v17 = vcombine.high %v188_v58, %v192_v63  ;;  %v4259_v26 = vcombine.high %v189_v2, %v193_v3 }
  0x64   :  { %224 = vperm.xlu0 %3622, %v221_v1   ;;  %6073 = vst [vmem:[#allocation58_spill] sm:$0xff] %v4247_v13  ;;  %6074 = vst [vmem:[#allocation59_spill] sm:$0xff] %v4254_v16  ;;  %v196_v31 = vld [vmem:[#allocation2 + $0x340] sm:$0xff]  ;;  %v197_v33 = vld [vmem:[#allocation2 + $0x348] sm:$0xff]  ;;  %v4262_v47 = vcombine.low %v188_v58, %v192_v63  ;;  %v4269_v49 = vcombine.low %v189_v2, %v193_v3 }
  0x65   :  { %6075 = vst [vmem:[#allocation60_spill] sm:$0xff] %v4256_v17  ;;  %6076 = vst [vmem:[#allocation61_spill] sm:$0xff] %v4259_v26  ;;  %v200_v32 = vld [vmem:[#allocation2 + $0x360] sm:$0xff]  ;;  %v201_v42 = vld [vmem:[#allocation2 + $0x368] sm:$0xff] }
  0x66   :  { %978 = vmatpush1.bf16.msra.mxu0 %v4184_v59  ;;  %1019 = vmatpush1.bf16.msra.mxu1 %v4188_v60  ;;  %6077 = vst [vmem:[#allocation62_spill] sm:$0xff] %v4262_v47  ;;  %v3360_v48 = vld [vmem:[%s5711_s0 + $0x8] sm:$0x3]  ;;  %6078 = vst [vmem:[#allocation63_spill] sm:$0xff] %v4269_v49  ;;  %v4271_v1 = vcombine.high %v196_v31, %v200_v32  ;;  %v4274_v0 = vcombine.high %v197_v33, %v201_v42  ;;  %v3374_v2 = vld [vmem:[%s5711_s0 + $0xc] sm:$0x3] }
  0x67   :  { %979 = vmatprep.subr.bf16.mxu0 %v4190_v61  ;;  %1020 = vmatprep.subr.bf16.mxu1 %v4193_v62  ;;  %v205_v58 = vld [vmem:[#allocation2 + $0x388] sm:$0xff]  ;;  %v4284_v3 = vcombine.low %v197_v33, %v201_v42 }
  0x68   :  { %1189 = vperm.xlu0 %3622, %v3339_v14   ;;  %6079 = vst [vmem:[#allocation64_spill] sm:$0xff] %v4271_v1  ;;  %6080 = vst [vmem:[#allocation65_spill] sm:$0xff] %v4274_v0  ;;  %v204_v14 = vld [vmem:[#allocation2 + $0x380] sm:$0xff]  ;;  %v209_v63 = vld [vmem:[#allocation2 + $0x3a8] sm:$0xff] }
  0x69   :  { %6082 = vst [vmem:[#allocation67_spill] sm:$0xff] %v4284_v3  ;;  %v4296_v33 = vcombine.low %v205_v58, %v209_v63 }
  0x6a   :  { %980 = vmatpush1.bf16.msra.mxu0 %v4196_v5  ;;  %1021 = vmatpush1.bf16.msra.mxu1 %v4200_v7 }
  0x6b   :  { %981 = vmatprep.subr.bf16.mxu0 %v4202_v8  ;;  %1022 = vmatprep.subr.bf16.mxu1 %v4205_v12  ;;  %6086 = vst [vmem:[#allocation71_spill] sm:$0xff] %v4296_v33 }
  0x6c   :  { %1924 = vperm.xlu0 %3622, %v3360_v48   ;;  %v212_v48 = vld [vmem:[#allocation2 + $0x3c0] sm:$0xff] }
  0x6e   :  { %982 = vmatpush1.bf16.msra.mxu0 %v4208_v18  ;;  %1023 = vmatpush1.bf16.msra.mxu1 %v4212_v23 }
  0x6f   :  { %983 = vmatprep.subr.bf16.mxu0 %v4214_v24  ;;  %1024 = vmatprep.subr.bf16.mxu1 %v4217_v25 }
  0x70   :  { %2414 = vperm.xlu0 %3622, %v3374_v2   ;;  %v99_v2 = vld [vmem:[#allocation2 + $0x38] sm:$0xff] }
  0x72   :  { %984 = vmatpush1.bf16.msra.mxu0 %v4220_v34  ;;  %1025 = vmatpush1.bf16.msra.mxu1 %v4224_v39 }
  0x73   :  { %985 = vmatprep.subr.bf16.mxu0 %v4226_v40  ;;  %1026 = vmatprep.subr.bf16.mxu1 %v4229_v41 }
  0x76   :  { %986 = vmatpush1.bf16.msra.mxu0 %v4232_v50  ;;  %1027 = vmatpush1.bf16.msra.mxu1 %v4236_v55  ;;  %v131_v55 = vld [vmem:[#allocation2 + $0x138] sm:$0xff] }
  0x77   :  { %987 = vmatprep.subr.bf16.mxu0 %v4238_v56  ;;  %1028 = vmatprep.subr.bf16.mxu1 %v4241_v57  ;;  %v4277_v57 = vcombine.low %v196_v31, %v200_v32  ;;  %v213_v31 = vld [vmem:[#allocation2 + $0x3c8] sm:$0xff]  ;;  %v95_v56 = vld [vmem:[#allocation2 + $0x18] sm:$0xff] }
  0x78   :  { %v217_v32 = vld [vmem:[#allocation2 + $0x3e8] sm:$0xff] }
  0x79   :  { %6081 = vst [vmem:[#allocation66_spill] sm:$0xff] %v4277_v57 }
  0x7a   :  { %988 = vmatpush1.bf16.msra.mxu0 %v4247_v13  ;;  %1029 = vmatpush1.bf16.msra.mxu1 %v4254_v16  ;;  %v208_v13 = vld [vmem:[#allocation2 + $0x3a0] sm:$0xff] }
  0x7b   :  { %989 = vmatprep.subr.bf16.mxu0 %v4256_v17  ;;  %1030 = vmatprep.subr.bf16.mxu1 %v4259_v26  ;;  %v4286_v26 = vcombine.high %v204_v14, %v208_v13  ;;  %v4289_v17 = vcombine.high %v205_v58, %v209_v63  ;;  %v4292_v16 = vcombine.low %v204_v14, %v208_v13 }
  0x7c   :  { %v4308_v14 = vcombine.low %v213_v31, %v217_v32  ;;  %v4313_v63 = vcombine.high %v95_v56, %v99_v2 }
  0x7d   :  { %6083 = vst [vmem:[#allocation68_spill] sm:$0xff] %v4286_v26  ;;  %6084 = vst [vmem:[#allocation69_spill] sm:$0xff] %v4289_v17 }
  0x7e   :  { %990 = vmatpush1.bf16.msra.mxu0 %v4262_v47  ;;  %1031 = vmatpush1.bf16.msra.mxu1 %v4269_v49  ;;  %v216_v47 = vld [vmem:[#allocation2 + $0x3e0] sm:$0xff]  ;;  %6085 = vst [vmem:[#allocation70_spill] sm:$0xff] %v4292_v16  ;;  %v98_v49 = vld [vmem:[#allocation2 + $0x30] sm:$0xff]  ;;  %6090 = vst [vmem:[#allocation75_spill] sm:$0xff] %v4308_v14 }
  0x7f   :  { %991 = vmatprep.subr.bf16.mxu0 %v4271_v1  ;;  %1032 = vmatprep.subr.bf16.mxu1 %v4274_v0  ;;  %v4298_v42 = vcombine.high %v212_v48, %v216_v47  ;;  %v4301_v0 = vcombine.high %v213_v31, %v217_v32  ;;  %v94_v1 = vld [vmem:[#allocation2 + $0x10] sm:$0xff]  ;;  %v4304_v13 = vcombine.low %v212_v48, %v216_v47 }
  0x80   :  { %v4310_v58 = vcombine.high %v94_v1, %v98_v49  ;;  %6092 = vst [vmem:[#allocation77_spill] sm:$0xff] %v4313_v63  ;;  %v4316_v47 = vcombine.low %v94_v1, %v98_v49  ;;  %v4320_v48 = vcombine.low %v95_v56, %v99_v2 }
  0x81   :  { %6087 = vst [vmem:[#allocation72_spill] sm:$0xff] %v4298_v42  ;;  %6088 = vst [vmem:[#allocation73_spill] sm:$0xff] %v4301_v0 }
  0x82   :  { %992 = vmatpush1.bf16.msra.mxu0 %v4277_v57  ;;  %1033 = vmatpush1.bf16.msra.mxu1 %v4284_v3  ;;  %6089 = vst [vmem:[#allocation74_spill] sm:$0xff] %v4304_v13  ;;  %6091 = vst [vmem:[#allocation76_spill] sm:$0xff] %v4310_v58  ;;  %v103_v3 = vld [vmem:[#allocation2 + $0x58] sm:$0xff] }
  0x83   :  { %993 = vmatprep.subr.bf16.mxu0 %v4286_v26  ;;  %1034 = vmatprep.subr.bf16.mxu1 %v4289_v17  ;;  %v102_v17 = vld [vmem:[#allocation2 + $0x50] sm:$0xff]  ;;  %v107_v57 = vld [vmem:[#allocation2 + $0x78] sm:$0xff]  ;;  %6093 = vst [vmem:[#allocation78_spill] sm:$0xff] %v4316_v47  ;;  %6094 = vst [vmem:[#allocation79_spill] sm:$0xff] %v4320_v48 }
  0x84   :  { %v106_v26 = vld [vmem:[#allocation2 + $0x70] sm:$0xff]  ;;  %v4325_v32 = vcombine.high %v103_v3, %v107_v57  ;;  %v4334_v56 = vcombine.low %v103_v3, %v107_v57 }
  0x85   :  { %v4322_v31 = vcombine.high %v102_v17, %v106_v26  ;;  %v4330_v49 = vcombine.low %v102_v17, %v106_v26 }
  0x86   :  { %994 = vmatpush1.bf16.msra.mxu0 %v4292_v16  ;;  %1035 = vmatpush1.bf16.msra.mxu1 %v4296_v33  ;;  %6096 = vst [vmem:[#allocation81_spill] sm:$0xff] %v4325_v32  ;;  %v6097_v33 = vmov 0   ;;  %v111_v16 = vld [vmem:[#allocation2 + $0x98] sm:$0xff]  ;;  %6099 = vst [vmem:[#allocation83_spill] sm:$0xff] %v4334_v56 }
  0x87   :  { %995 = vmatprep.subr.bf16.mxu0 %v4298_v42  ;;  %1036 = vmatprep.subr.bf16.mxu1 %v4301_v0  ;;  %6095 = vst [vmem:[#allocation80_spill] sm:$0xff] %v4322_v31  ;;  %v110_v0 = vld [vmem:[#allocation2 + $0x90] sm:$0xff]  ;;  %6098 = vst [vmem:[#allocation82_spill] sm:$0xff] %v4330_v49 }
  0x88   :  { %v114_v42 = vld [vmem:[#allocation2 + $0xb0] sm:$0xff] }
  0x89   :  { %v4336_v1 = vcombine.high %v110_v0, %v114_v42  ;;  %v4344_v17 = vcombine.low %v110_v0, %v114_v42 }
  0x8a   :  { %996 = vmatpush1.bf16.msra.mxu0 %v4304_v13  ;;  %1037 = vmatpush1.bf16.msra.mxu1 %v4308_v14  ;;  %v115_v13 = vld [vmem:[#allocation2 + $0xb8] sm:$0xff] }
  0x8b   :  { %1047 = vmatprep.subr.bf16.mxu0 %v4310_v58  ;;  %1088 = vmatprep.subr.bf16.mxu1 %v4313_v63  ;;  %6100 = vst [vmem:[#allocation84_spill] sm:$0xff] %v4336_v1  ;;  %v4339_v2 = vcombine.high %v111_v16, %v115_v13  ;;  %v118_v63 = vld [vmem:[#allocation2 + $0xd0] sm:$0xff]  ;;  %v119_v14 = vld [vmem:[#allocation2 + $0xd8] sm:$0xff]  ;;  %6102 = vst [vmem:[#allocation86_spill] sm:$0xff] %v4344_v17  ;;  %v4348_v57 = vcombine.low %v111_v16, %v115_v13 }
  0x8c   :  { %v122_v58 = vld [vmem:[#allocation2 + $0xf0] sm:$0xff] }
  0x8d   :  { %998 = vmatmul.mubr.bf16.vlgmr.msra.gmra.mrb[0].mxu0 %v6097_v33  ;;  %1039 = vmatmul.mubr.bf16.vlgmr.msra.gmra.mrb[0].mxu1 %v6097_v33  ;;  %6101 = vst [vmem:[#allocation85_spill] sm:$0xff] %v4339_v2  ;;  %6103 = vst [vmem:[#allocation87_spill] sm:$0xff] %v4348_v57  ;;  %v4350_v26 = vcombine.high %v118_v63, %v122_v58  ;;  %v4356_v0 = vcombine.low %v118_v63, %v122_v58 }
  0x8e   :  { %1048 = vmatpush1.bf16.msra.mxu0 %v4316_v47  ;;  %1089 = vmatpush1.bf16.msra.mxu1 %v4320_v48  ;;  %v123_v47 = vld [vmem:[#allocation2 + $0xf8] sm:$0xff] }
  0x8f   :  { %1049 = vmatprep.subr.bf16.mxu0 %v4322_v31  ;;  %1090 = vmatprep.subr.bf16.mxu1 %v4325_v32  ;;  %6104 = vst [vmem:[#allocation88_spill] sm:$0xff] %v4350_v26  ;;  %v4353_v3 = vcombine.high %v119_v14, %v123_v47  ;;  %v126_v32 = vld [vmem:[#allocation2 + $0x110] sm:$0xff]  ;;  %v127_v48 = vld [vmem:[#allocation2 + $0x118] sm:$0xff]  ;;  %6106 = vst [vmem:[#allocation90_spill] sm:$0xff] %v4356_v0  ;;  %v4360_v16 = vcombine.low %v119_v14, %v123_v47 }
  0x90   :  { %1079 = vmatprep.mubr.bf16.mxu0 %v6097_v33  ;;  %1120 = vmatprep.mubr.bf16.mxu1 %v6097_v33  ;;  %v130_v31 = vld [vmem:[#allocation2 + $0x130] sm:$0xff]  ;;  %v4365_v13 = vcombine.high %v127_v48, %v131_v55  ;;  %v4372_v14 = vcombine.low %v127_v48, %v131_v55 }
  0x91   :  { %6105 = vst [vmem:[#allocation89_spill] sm:$0xff] %v4353_v3  ;;  %6107 = vst [vmem:[#allocation91_spill] sm:$0xff] %v4360_v16  ;;  %v4362_v42 = vcombine.high %v126_v32, %v130_v31  ;;  %v4368_v58 = vcombine.low %v126_v32, %v130_v31 }
  0x92   :  { %1050 = vmatpush1.bf16.msra.mxu0 %v4330_v49  ;;  %1091 = vmatpush1.bf16.msra.mxu1 %v4334_v56  ;;  %6109 = vst [vmem:[#allocation93_spill] sm:$0xff] %v4365_v13  ;;  %v135_v56 = vld [vmem:[#allocation2 + $0x158] sm:$0xff]  ;;  %6111 = vst [vmem:[#allocation95_spill] sm:$0xff] %v4372_v14 }
  0x93   :  { %1051 = vmatprep.subr.bf16.mxu0 %v4336_v1  ;;  %1092 = vmatprep.subr.bf16.mxu1 %v4339_v2  ;;  %6108 = vst [vmem:[#allocation92_spill] sm:$0xff] %v4362_v42  ;;  %v134_v2 = vld [vmem:[#allocation2 + $0x150] sm:$0xff]  ;;  %v139_v49 = vld [vmem:[#allocation2 + $0x178] sm:$0xff]  ;;  %6110 = vst [vmem:[#allocation94_spill] sm:$0xff] %v4368_v58 }
  0x94   :  { %v138_v1 = vld [vmem:[#allocation2 + $0x170] sm:$0xff]  ;;  %v4377_v47 = vcombine.high %v135_v56, %v139_v49  ;;  %v4384_v55 = vcombine.low %v135_v56, %v139_v49 }
  0x95   :  { %v4374_v63 = vcombine.high %v134_v2, %v138_v1  ;;  %v4380_v31 = vcombine.low %v134_v2, %v138_v1 }
  0x96   :  { %1052 = vmatpush1.bf16.msra.mxu0 %v4344_v17  ;;  %1093 = vmatpush1.bf16.msra.mxu1 %v4348_v57  ;;  %6113 = vst [vmem:[#allocation97_spill] sm:$0xff] %v4377_v47  ;;  %v143_v57 = vld [vmem:[#allocation2 + $0x198] sm:$0xff]  ;;  %6115 = vst [vmem:[#allocation99_spill] sm:$0xff] %v4384_v55 }
  0x97   :  { %1053 = vmatprep.subr.bf16.mxu0 %v4350_v26  ;;  %1094 = vmatprep.subr.bf16.mxu1 %v4353_v3  ;;  %6112 = vst [vmem:[#allocation96_spill] sm:$0xff] %v4374_v63  ;;  %v142_v3 = vld [vmem:[#allocation2 + $0x190] sm:$0xff]  ;;  %v147_v17 = vld [vmem:[#allocation2 + $0x1b8] sm:$0xff]  ;;  %6114 = vst [vmem:[#allocation98_spill] sm:$0xff] %v4380_v31 }
  0x98   :  { %v146_v26 = vld [vmem:[#allocation2 + $0x1b0] sm:$0xff]  ;;  %v4389_v32 = vcombine.high %v143_v57, %v147_v17  ;;  %v4396_v49 = vcombine.low %v143_v57, %v147_v17 }
  0x99   :  { %v4386_v48 = vcombine.high %v142_v3, %v146_v26  ;;  %v4392_v1 = vcombine.low %v142_v3, %v146_v26 }
  0x9a   :  { %1054 = vmatpush1.bf16.msra.mxu0 %v4356_v0  ;;  %1095 = vmatpush1.bf16.msra.mxu1 %v4360_v16  ;;  %6117 = vst [vmem:[#allocation101_spill] sm:$0xff] %v4389_v32  ;;  %v151_v16 = vld [vmem:[#allocation2 + $0x1d8] sm:$0xff]  ;;  %6119 = vst [vmem:[#allocation103_spill] sm:$0xff] %v4396_v49 }
  0x9b   :  { %1055 = vmatprep.subr.bf16.mxu0 %v4362_v42  ;;  %1096 = vmatprep.subr.bf16.mxu1 %v4365_v13  ;;  %6116 = vst [vmem:[#allocation100_spill] sm:$0xff] %v4386_v48  ;;  %v150_v13 = vld [vmem:[#allocation2 + $0x1d0] sm:$0xff]  ;;  %v155_v0 = vld [vmem:[#allocation2 + $0x1f8] sm:$0xff]  ;;  %6118 = vst [vmem:[#allocation102_spill] sm:$0xff] %v4392_v1 }
  0x9c   :  { %v154_v42 = vld [vmem:[#allocation2 + $0x1f0] sm:$0xff]  ;;  %v4401_v2 = vcombine.high %v151_v16, %v155_v0  ;;  %v4408_v17 = vcombine.low %v151_v16, %v155_v0 }
  0x9d   :  { %v4398_v56 = vcombine.high %v150_v13, %v154_v42  ;;  %v4404_v26 = vcombine.low %v150_v13, %v154_v42 }
  0x9e   :  { %1056 = vmatpush1.bf16.msra.mxu0 %v4368_v58  ;;  %1097 = vmatpush1.bf16.msra.mxu1 %v4372_v14  ;;  %6121 = vst [vmem:[#allocation105_spill] sm:$0xff] %v4401_v2  ;;  %v159_v14 = vld [vmem:[#allocation2 + $0x218] sm:$0xff]  ;;  %6123 = vst [vmem:[#allocation107_spill] sm:$0xff] %v4408_v17 }
  0x9f   :  { %1057 = vmatprep.subr.bf16.mxu0 %v4374_v63  ;;  %1098 = vmatprep.subr.bf16.mxu1 %v4377_v47  ;;  %6120 = vst [vmem:[#allocation104_spill] sm:$0xff] %v4398_v56  ;;  %v158_v47 = vld [vmem:[#allocation2 + $0x210] sm:$0xff]  ;;  %v163_v58 = vld [vmem:[#allocation2 + $0x238] sm:$0xff]  ;;  %6122 = vst [vmem:[#allocation106_spill] sm:$0xff] %v4404_v26 }
  0xa0   :  { %v162_v63 = vld [vmem:[#allocation2 + $0x230] sm:$0xff]  ;;  %v4413_v3 = vcombine.high %v159_v14, %v163_v58  ;;  %v4420_v0 = vcombine.low %v159_v14, %v163_v58 }
  0xa1   :  { %v4410_v57 = vcombine.high %v158_v47, %v162_v63  ;;  %v4416_v42 = vcombine.low %v158_v47, %v162_v63 }
  0xa2   :  { %1058 = vmatpush1.bf16.msra.mxu0 %v4380_v31  ;;  %1099 = vmatpush1.bf16.msra.mxu1 %v4384_v55  ;;  %6125 = vst [vmem:[#allocation109_spill] sm:$0xff] %v4413_v3  ;;  %v167_v55 = vld [vmem:[#allocation2 + $0x258] sm:$0xff]  ;;  %6127 = vst [vmem:[#allocation111_spill] sm:$0xff] %v4420_v0 }
  0xa3   :  { %1059 = vmatprep.subr.bf16.mxu0 %v4386_v48  ;;  %1100 = vmatprep.subr.bf16.mxu1 %v4389_v32  ;;  %6124 = vst [vmem:[#allocation108_spill] sm:$0xff] %v4410_v57  ;;  %v166_v32 = vld [vmem:[#allocation2 + $0x250] sm:$0xff]  ;;  %v171_v31 = vld [vmem:[#allocation2 + $0x278] sm:$0xff]  ;;  %6126 = vst [vmem:[#allocation110_spill] sm:$0xff] %v4416_v42 }
  0xa4   :  { %v170_v48 = vld [vmem:[#allocation2 + $0x270] sm:$0xff]  ;;  %v4425_v13 = vcombine.high %v167_v55, %v171_v31  ;;  %v4432_v58 = vcombine.low %v167_v55, %v171_v31 }
  0xa5   :  { %v4422_v16 = vcombine.high %v166_v32, %v170_v48  ;;  %v4428_v63 = vcombine.low %v166_v32, %v170_v48 }
  0xa6   :  { %1060 = vmatpush1.bf16.msra.mxu0 %v4392_v1  ;;  %1101 = vmatpush1.bf16.msra.mxu1 %v4396_v49  ;;  %6129 = vst [vmem:[#allocation113_spill] sm:$0xff] %v4425_v13  ;;  %v175_v49 = vld [vmem:[#allocation2 + $0x298] sm:$0xff]  ;;  %6131 = vst [vmem:[#allocation115_spill] sm:$0xff] %v4432_v58 }
  0xa7   :  { %1061 = vmatprep.subr.bf16.mxu0 %v4398_v56  ;;  %1102 = vmatprep.subr.bf16.mxu1 %v4401_v2  ;;  %6128 = vst [vmem:[#allocation112_spill] sm:$0xff] %v4422_v16  ;;  %v174_v2 = vld [vmem:[#allocation2 + $0x290] sm:$0xff]  ;;  %v179_v1 = vld [vmem:[#allocation2 + $0x2b8] sm:$0xff]  ;;  %6130 = vst [vmem:[#allocation114_spill] sm:$0xff] %v4428_v63 }
  0xa8   :  { %v178_v56 = vld [vmem:[#allocation2 + $0x2b0] sm:$0xff]  ;;  %v4437_v47 = vcombine.high %v175_v49, %v179_v1  ;;  %v4444_v31 = vcombine.low %v175_v49, %v179_v1 }
  0xa9   :  { %v4434_v14 = vcombine.high %v174_v2, %v178_v56  ;;  %v4440_v48 = vcombine.low %v174_v2, %v178_v56 }
  0xaa   :  { %1062 = vmatpush1.bf16.msra.mxu0 %v4404_v26  ;;  %1103 = vmatpush1.bf16.msra.mxu1 %v4408_v17  ;;  %6133 = vst [vmem:[#allocation117_spill] sm:$0xff] %v4437_v47  ;;  %v183_v17 = vld [vmem:[#allocation2 + $0x2d8] sm:$0xff]  ;;  %6135 = vst [vmem:[#allocation119_spill] sm:$0xff] %v4444_v31 }
  0xab   :  { %1063 = vmatprep.subr.bf16.mxu0 %v4410_v57  ;;  %1104 = vmatprep.subr.bf16.mxu1 %v4413_v3  ;;  %6132 = vst [vmem:[#allocation116_spill] sm:$0xff] %v4434_v14  ;;  %v182_v3 = vld [vmem:[#allocation2 + $0x2d0] sm:$0xff]  ;;  %v187_v26 = vld [vmem:[#allocation2 + $0x2f8] sm:$0xff]  ;;  %6134 = vst [vmem:[#allocation118_spill] sm:$0xff] %v4440_v48 }
  0xac   :  { %v186_v57 = vld [vmem:[#allocation2 + $0x2f0] sm:$0xff]  ;;  %v4449_v32 = vcombine.high %v183_v17, %v187_v26  ;;  %v4456_v1 = vcombine.low %v183_v17, %v187_v26 }
  0xad   :  { %v4446_v55 = vcombine.high %v182_v3, %v186_v57  ;;  %v4452_v56 = vcombine.low %v182_v3, %v186_v57 }
  0xae   :  { %1064 = vmatpush1.bf16.msra.mxu0 %v4416_v42  ;;  %1105 = vmatpush1.bf16.msra.mxu1 %v4420_v0  ;;  %6137 = vst [vmem:[#allocation121_spill] sm:$0xff] %v4449_v32  ;;  %v191_v0 = vld [vmem:[#allocation2 + $0x318] sm:$0xff]  ;;  %6139 = vst [vmem:[#allocation123_spill] sm:$0xff] %v4456_v1 }
  0xaf   :  { %1065 = vmatprep.subr.bf16.mxu0 %v4422_v16  ;;  %1106 = vmatprep.subr.bf16.mxu1 %v4425_v13  ;;  %6136 = vst [vmem:[#allocation120_spill] sm:$0xff] %v4446_v55  ;;  %v190_v13 = vld [vmem:[#allocation2 + $0x310] sm:$0xff]  ;;  %v195_v42 = vld [vmem:[#allocation2 + $0x338] sm:$0xff]  ;;  %6138 = vst [vmem:[#allocation122_spill] sm:$0xff] %v4452_v56 }
  0xb0   :  { %v194_v16 = vld [vmem:[#allocation2 + $0x330] sm:$0xff]  ;;  %v4461_v2 = vcombine.high %v191_v0, %v195_v42  ;;  %v4468_v26 = vcombine.low %v191_v0, %v195_v42 }
  0xb1   :  { %v4458_v49 = vcombine.high %v190_v13, %v194_v16  ;;  %v4464_v57 = vcombine.low %v190_v13, %v194_v16 }
  0xb2   :  { %1066 = vmatpush1.bf16.msra.mxu0 %v4428_v63  ;;  %1107 = vmatpush1.bf16.msra.mxu1 %v4432_v58  ;;  %6141 = vst [vmem:[#allocation125_spill] sm:$0xff] %v4461_v2  ;;  %v199_v58 = vld [vmem:[#allocation2 + $0x358] sm:$0xff]  ;;  %6143 = vst [vmem:[#allocation127_spill] sm:$0xff] %v4468_v26 }
  0xb3   :  { %1067 = vmatprep.subr.bf16.mxu0 %v4434_v14  ;;  %1108 = vmatprep.subr.bf16.mxu1 %v4437_v47  ;;  %6140 = vst [vmem:[#allocation124_spill] sm:$0xff] %v4458_v49  ;;  %v198_v47 = vld [vmem:[#allocation2 + $0x350] sm:$0xff]  ;;  %v203_v63 = vld [vmem:[#allocation2 + $0x378] sm:$0xff]  ;;  %6142 = vst [vmem:[#allocation126_spill] sm:$0xff] %v4464_v57 }
  0xb4   :  { %v202_v14 = vld [vmem:[#allocation2 + $0x370] sm:$0xff]  ;;  %v4473_v3 = vcombine.high %v199_v58, %v203_v63  ;;  %v4480_v42 = vcombine.low %v199_v58, %v203_v63 }
  0xb5   :  { %v4470_v17 = vcombine.high %v198_v47, %v202_v14  ;;  %v4476_v16 = vcombine.low %v198_v47, %v202_v14 }
  0xb6   :  { %1068 = vmatpush1.bf16.msra.mxu0 %v4440_v48  ;;  %1109 = vmatpush1.bf16.msra.mxu1 %v4444_v31  ;;  %6145 = vst [vmem:[#allocation129_spill] sm:$0xff] %v4473_v3  ;;  %v207_v31 = vld [vmem:[#allocation2 + $0x398] sm:$0xff]  ;;  %6147 = vst [vmem:[#allocation131_spill] sm:$0xff] %v4480_v42 }
  0xb7   :  { %1069 = vmatprep.subr.bf16.mxu0 %v4446_v55  ;;  %1110 = vmatprep.subr.bf16.mxu1 %v4449_v32  ;;  %6144 = vst [vmem:[#allocation128_spill] sm:$0xff] %v4470_v17  ;;  %v206_v32 = vld [vmem:[#allocation2 + $0x390] sm:$0xff]  ;;  %v211_v48 = vld [vmem:[#allocation2 + $0x3b8] sm:$0xff]  ;;  %6146 = vst [vmem:[#allocation130_spill] sm:$0xff] %v4476_v16 }
  0xb8   :  { %v210_v55 = vld [vmem:[#allocation2 + $0x3b0] sm:$0xff]  ;;  %v4485_v13 = vcombine.high %v207_v31, %v211_v48  ;;  %v4492_v63 = vcombine.low %v207_v31, %v211_v48  ;;  %v6157_v48 = vld [vmem:[#allocation56_spill] sm:$0xff]  ;;  %v6158_v31 = vld [vmem:[#allocation57_spill] sm:$0xff] }
  0xb9   :  { %v4482_v0 = vcombine.high %v206_v32, %v210_v55  ;;  %v4488_v14 = vcombine.low %v206_v32, %v210_v55  ;;  %v6159_v32 = vld [vmem:[#allocation58_spill] sm:$0xff] }
  0xba   :  { %1070 = vmatpush1.bf16.msra.mxu0 %v4452_v56  ;;  %1111 = vmatpush1.bf16.msra.mxu1 %v4456_v1  ;;  %6149 = vst [vmem:[#allocation133_spill] sm:$0xff] %v4485_v13  ;;  %v215_v1 = vld [vmem:[#allocation2 + $0x3d8] sm:$0xff]  ;;  %6151 = vst [vmem:[#allocation135_spill] sm:$0xff] %v4492_v63 }
  0xbb   :  { %1071 = vmatprep.subr.bf16.mxu0 %v4458_v49  ;;  %1112 = vmatprep.subr.bf16.mxu1 %v4461_v2  ;;  %6148 = vst [vmem:[#allocation132_spill] sm:$0xff] %v4482_v0  ;;  %v214_v2 = vld [vmem:[#allocation2 + $0x3d0] sm:$0xff]  ;;  %v219_v56 = vld [vmem:[#allocation2 + $0x3f8] sm:$0xff]  ;;  %6150 = vst [vmem:[#allocation134_spill] sm:$0xff] %v4488_v14 }
  0xbc   :  { %v218_v49 = vld [vmem:[#allocation2 + $0x3f0] sm:$0xff]  ;;  %v4497_v47 = vcombine.high %v215_v1, %v219_v56  ;;  %v4504_v55 = vcombine.low %v215_v1, %v219_v56  ;;  %v6160_v56 = vld [vmem:[#allocation59_spill] sm:$0xff]  ;;  %v6161_v1 = vld [vmem:[#allocation60_spill] sm:$0xff] }
  0xbd   :  { %v4494_v58 = vcombine.high %v214_v2, %v218_v49 }
  0xbe   :  { %1072 = vmatpush1.bf16.msra.mxu0 %v4464_v57  ;;  %1113 = vmatpush1.bf16.msra.mxu1 %v4468_v26  ;;  %6153 = vst [vmem:[#allocation137_spill] sm:$0xff] %v4497_v47  ;;  %6155 = vst [vmem:[#allocation139_spill] sm:$0xff] %v4504_v55 }
  0xbf   :  { %1073 = vmatprep.subr.bf16.mxu0 %v4470_v17  ;;  %1114 = vmatprep.subr.bf16.mxu1 %v4473_v3  ;;  %6152 = vst [vmem:[#allocation136_spill] sm:$0xff] %v4494_v58  ;;  %v4500_v3 = vcombine.low %v214_v2, %v218_v49  ;;  %v6162_v49 = vld [vmem:[#allocation61_spill] sm:$0xff]  ;;  %v6163_v2 = vld [vmem:[#allocation62_spill] sm:$0xff] }
  0xc1   :  { %6154 = vst [vmem:[#allocation138_spill] sm:$0xff] %v4500_v3 }
  0xc2   :  { %1074 = vmatpush1.bf16.msra.mxu0 %v4476_v16  ;;  %1115 = vmatpush1.bf16.msra.mxu1 %v4480_v42 }
  0xc3   :  { %1075 = vmatprep.subr.bf16.mxu0 %v4482_v0  ;;  %1116 = vmatprep.subr.bf16.mxu1 %v4485_v13 }
  0xc6   :  { %1076 = vmatpush1.bf16.msra.mxu0 %v4488_v14  ;;  %1117 = vmatpush1.bf16.msra.mxu1 %v4492_v63 }
  0xc7   :  { %1077 = vmatprep.subr.bf16.mxu0 %v4494_v58  ;;  %1118 = vmatprep.subr.bf16.mxu1 %v4497_v47 }
  0xca   :  { %1078 = vmatpush1.bf16.msra.mxu0 %v4500_v3  ;;  %1119 = vmatpush1.bf16.msra.mxu1 %v4504_v55 }
  0xcb   :  { %1210 = vmatprep.subr.bf16.mxu0 %v4109_v4  ;;  %1251 = vmatprep.subr.bf16.mxu1 %v4113_v9 }
  0xcd   :  { %1080 = vmatmul.mubr.bf16.vlgmr.msra.gmra.mrb[4].mxu0 %v6097_v33  ;;  %1121 = vmatmul.mubr.bf16.vlgmr.msra.gmra.mrb[4].mxu1 %v6097_v33  ;;  %v6156_v33 = vld [vmem:[#allocation55_spill] sm:$0xff] }
  0xce   :  { %1211 = vmatpush1.bf16.msra.mxu0 %v4111_v6  ;;  %1252 = vmatpush1.bf16.msra.mxu1 %v4115_v10 }
  0xcf   :  { %1212 = vmatprep.subr.bf16.mxu0 %v4117_v11  ;;  %1253 = vmatprep.subr.bf16.mxu1 %v4120_v15 }
  0xd2   :  { %1213 = vmatpush1.bf16.msra.mxu0 %v4124_v19  ;;  %1254 = vmatpush1.bf16.msra.mxu1 %v4128_v20 }
  0xd3   :  { %1214 = vmatprep.subr.bf16.mxu0 %v4130_v21  ;;  %1255 = vmatprep.subr.bf16.mxu1 %v4133_v22 }
  0xd6   :  { %1215 = vmatpush1.bf16.msra.mxu0 %v4136_v27  ;;  %1256 = vmatpush1.bf16.msra.mxu1 %v4140_v28 }
  0xd7   :  { %1216 = vmatprep.subr.bf16.mxu0 %v4142_v29  ;;  %1257 = vmatprep.subr.bf16.mxu1 %v4145_v30 }
  0xda   :  { %1217 = vmatpush1.bf16.msra.mxu0 %v4148_v35  ;;  %1258 = vmatpush1.bf16.msra.mxu1 %v4152_v36 }
  0xdb   :  { %1218 = vmatprep.subr.bf16.mxu0 %v4154_v37  ;;  %1259 = vmatprep.subr.bf16.mxu1 %v4157_v38 }
  0xde   :  { %1219 = vmatpush1.bf16.msra.mxu0 %v4160_v43  ;;  %1260 = vmatpush1.bf16.msra.mxu1 %v4164_v44 }
  0xdf   :  { %1220 = vmatprep.subr.bf16.mxu0 %v4166_v45  ;;  %1261 = vmatprep.subr.bf16.mxu1 %v4169_v46 }
  0xe2   :  { %1221 = vmatpush1.bf16.msra.mxu0 %v4172_v51  ;;  %1262 = vmatpush1.bf16.msra.mxu1 %v4176_v52 }
  0xe3   :  { %1222 = vmatprep.subr.bf16.mxu0 %v4178_v53  ;;  %1263 = vmatprep.subr.bf16.mxu1 %v4181_v54 }
  0xe6   :  { %1223 = vmatpush1.bf16.msra.mxu0 %v4184_v59  ;;  %1264 = vmatpush1.bf16.msra.mxu1 %v4188_v60 }
  0xe7   :  { %1224 = vmatprep.subr.bf16.mxu0 %v4190_v61  ;;  %1265 = vmatprep.subr.bf16.mxu1 %v4193_v62 }
  0xea   :  { %1225 = vmatpush1.bf16.msra.mxu0 %v4196_v5  ;;  %1266 = vmatpush1.bf16.msra.mxu1 %v4200_v7 }
  0xeb   :  { %1226 = vmatprep.subr.bf16.mxu0 %v4202_v8  ;;  %1267 = vmatprep.subr.bf16.mxu1 %v4205_v12 }
  0xee   :  { %1227 = vmatpush1.bf16.msra.mxu0 %v4208_v18  ;;  %1268 = vmatpush1.bf16.msra.mxu1 %v4212_v23 }
  0xef   :  { %1228 = vmatprep.subr.bf16.mxu0 %v4214_v24  ;;  %1269 = vmatprep.subr.bf16.mxu1 %v4217_v25  ;;  %v228_v24 = vlaneseq }
  0xf2   :  { %1229 = vmatpush1.bf16.msra.mxu0 %v4220_v34  ;;  %1270 = vmatpush1.bf16.msra.mxu1 %v4224_v39 }
  0xf3   :  { %1230 = vmatprep.subr.bf16.mxu0 %v4226_v40  ;;  %1271 = vmatprep.subr.bf16.mxu1 %v4229_v41  ;;  %v6164_v40 = vld [vmem:[#allocation63_spill] sm:$0xff]  ;;  %v6165_v41 = vld [vmem:[#allocation64_spill] sm:$0xff] }
  0xf6   :  { %1231 = vmatpush1.bf16.msra.mxu0 %v4232_v50  ;;  %1272 = vmatpush1.bf16.msra.mxu1 %v6156_v33  ;;  %v6166_v50 = vld [vmem:[#allocation65_spill] sm:$0xff]  ;;  %v6167_v33 = vld [vmem:[#allocation66_spill] sm:$0xff] }
  0xf7   :  { %1232 = vmatprep.subr.bf16.mxu0 %v6157_v48  ;;  %1273 = vmatprep.subr.bf16.mxu1 %v6158_v31  ;;  %v6168_v48 = vld [vmem:[#allocation67_spill] sm:$0xff]  ;;  %v6169_v31 = vld [vmem:[#allocation68_spill] sm:$0xff] }
  0xfa   :  { %1233 = vmatpush1.bf16.msra.mxu0 %v6159_v32  ;;  %1274 = vmatpush1.bf16.msra.mxu1 %v6160_v56  ;;  %v6170_v32 = vld [vmem:[#allocation69_spill] sm:$0xff]  ;;  %v6171_v56 = vld [vmem:[#allocation70_spill] sm:$0xff] }
  0xfb   :  { %1234 = vmatprep.subr.bf16.mxu0 %v6161_v1  ;;  %1275 = vmatprep.subr.bf16.mxu1 %v6162_v49  ;;  %v6172_v1 = vld [vmem:[#allocation71_spill] sm:$0xff]  ;;  %v6173_v49 = vld [vmem:[#allocation72_spill] sm:$0xff] }
  0xfe   :  { %1235 = vmatpush1.bf16.msra.mxu0 %v6163_v2  ;;  %1276 = vmatpush1.bf16.msra.mxu1 %v6164_v40  ;;  %v6174_v2 = vld [vmem:[#allocation73_spill] sm:$0xff]  ;;  %v6175_v40 = vld [vmem:[#allocation74_spill] sm:$0xff] }
  0xff   :  { %1236 = vmatprep.subr.bf16.mxu0 %v6165_v41  ;;  %1277 = vmatprep.subr.bf16.mxu1 %v6166_v50  ;;  %v6176_v41 = vld [vmem:[#allocation75_spill] sm:$0xff]  ;;  %v6177_v50 = vld [vmem:[#allocation76_spill] sm:$0xff] }
 0x102   :  { %1237 = vmatpush1.bf16.msra.mxu0 %v6167_v33  ;;  %1278 = vmatpush1.bf16.msra.mxu1 %v6168_v48  ;;  %v6178_v33 = vld [vmem:[#allocation77_spill] sm:$0xff] }
 0x103   :  { %1238 = vmatprep.subr.bf16.mxu0 %v6169_v31  ;;  %1279 = vmatprep.subr.bf16.mxu1 %v6170_v32 }
 0x106   :  { %1239 = vmatpush1.bf16.msra.mxu0 %v6171_v56  ;;  %1280 = vmatpush1.bf16.msra.mxu1 %v6172_v1 }
 0x107   :  { %1240 = vmatprep.subr.bf16.mxu0 %v6173_v49  ;;  %1281 = vmatprep.subr.bf16.mxu1 %v6174_v2  ;;  %v229_v49 = vshrl.u32 %v228_v24, 7 }
 0x109   :  { %v230_v23 = vsub.s32 0, %v229_v49  ;;  %v234_v2 = vsub.s32 1, %v229_v49 }
 0x10a   :  { %1241 = vmatpush1.bf16.msra.mxu0 %v6175_v40  ;;  %1282 = vmatpush1.bf16.msra.mxu1 %v6176_v41  ;;  %v91_v40 = vld [vmem:[%s5712_s1] sm:$0xff]  ;;  %v238_v41 = vsub.s32 2, %v229_v49 }
 0x10b   :  { %1292 = vmatprep.subr.bf16.mxu0 %v6177_v50  ;;  %1333 = vmatprep.subr.bf16.mxu1 %v6178_v33  ;;  %v242_v50 = vsub.s32 3, %v229_v49  ;;  %v4580_v18 = vrot.slane %v91_v40, %v230_v23  ;;  %v225_v33 = vpop.permute.xlu0 %224 }
 0x10d   :  { %6179 = vst [vmem:[#allocation140_spill] sm:$0xff] %v4580_v18  ;;  %v4589_v24 = vrot.slane %v91_v40, %v242_v50 }
 0x10f   :  { %6182 = vst [vmem:[#allocation143_spill] sm:$0xff] %v4589_v24  ;;  %v271_v61 = vmul.f32 %v4589_v24, %v225_v33 }
 0x160   :  { %v999_v48 = vpop.f32.mrb[0].mxu0  ;;  %v1040_v31 = vpop.f32.mrb[0].mxu1 }
 0x161   :  { %v1001_v39 = vpop.f32.mrb[1].mxu0  ;;  %v1042_v32 = vpop.f32.mrb[1].mxu1 }
 0x162   :  { %v1003_v34 = vpop.f32.mrb[2].mxu0  ;;  %v1044_v56 = vpop.f32.mrb[2].mxu1 }
 0x163   :  { %v1004_v25 = vpop.f32.mrb[3].mxu0  ;;  %v1045_v1 = vpop.f32.mrb[3].mxu1  ;;  %v220_v34 = vld [vmem:[%s5714_s3] sm:$0xff]  ;;  %v4585_v56 = vrot.slane %v91_v40, %v238_v41 }
 0x164   :  { %v4587_v25 = vrot.slane %v91_v40, %v234_v2  ;;  %v268_v1 = vmul.f32 %v4580_v18, %v225_v33  ;;  %v4592_v12 = vrot.slane %v220_v34, %v230_v23  ;;  %v4595_v7 = vrot.slane %v220_v34, %v238_v41 }
 0x165   :  { %6180 = vst [vmem:[#allocation141_spill] sm:$0xff] %v4585_v56  ;;  %v270_v8 = vmul.f32 %v4585_v56, %v225_v33  ;;  %v4598_v62 = vrot.slane %v220_v34, %v234_v2  ;;  %v4601_v60 = vrot.slane %v220_v34, %v242_v50  ;;  %v246_v50 = vsub.s32 4, %v229_v49 }
 0x166   :  { %6181 = vst [vmem:[#allocation142_spill] sm:$0xff] %v4587_v25  ;;  %6183 = vst [vmem:[#allocation144_spill] sm:$0xff] %v4592_v12  ;;  %v269_v5 = vmul.f32 %v4587_v25, %v225_v33  ;;  %v317_v59 = vadd.f32 %v4592_v12, %v268_v1  ;;  %v254_v1 = vsub.s32 6, %v229_v49  ;;  %v250_v12 = vsub.s32 5, %v229_v49 }
 0x167   :  { %6184 = vst [vmem:[#allocation145_spill] sm:$0xff] %v4595_v7  ;;  %6185 = vst [vmem:[#allocation146_spill] sm:$0xff] %v4598_v62  ;;  %v319_v54 = vadd.f32 %v4595_v7, %v270_v8  ;;  %v320_v23 = vadd.f32 %v4601_v60, %v271_v61  ;;  %v258_v8 = vsub.s32 7, %v229_v49  ;;  %v4607_v7 = vrot.slane %v91_v40, %v246_v50 }
 0x168   :  { %6186 = vst [vmem:[#allocation147_spill] sm:$0xff] %v4601_v60  ;;  %v318_v18 = vadd.f32 %v4598_v62, %v269_v5  ;;  %v1129_v53 = vadd.f32 %v999_v48, %v317_v59  ;;  %v4609_v5 = vrot.slane %v91_v40, %v254_v1  ;;  %v4611_v59 = vrot.slane %v91_v40, %v250_v12 }
 0x169   :  { %v1131_v56 = vadd.f32 %v1040_v31, %v319_v54  ;;  %v1132_v52 = vadd.f32 %v1042_v32, %v320_v23  ;;  %6187 = vst [vmem:[#allocation148_spill] sm:$0xff] %v4607_v7  ;;  %v4613_v61 = vrot.slane %v91_v40, %v258_v8  ;;  %v4619_v31 = vrot.slane %v220_v34, %v254_v1 }
 0x16a   :  { %v1130_v41 = vadd.f32 %v1001_v39, %v318_v18  ;;  %v3333_v51 = vmul.f32 -1.442695, %v1129_v53  ;;  %6188 = vst [vmem:[#allocation149_spill] sm:$0xff] %v4609_v5  ;;  %6189 = vst [vmem:[#allocation150_spill] sm:$0xff] %v4611_v59  ;;  %v273_v32 = vmul.f32 %v4611_v59, %v225_v33  ;;  %v4622_v49 = vrot.slane %v220_v34, %v250_v12 }
 0x16b   :  { %v3335_v25 = vmul.f32 -1.442695, %v1131_v56  ;;  %v3336_v46 = vmul.f32 -1.442695, %v1132_v52  ;;  %v4616_v52 = vrot.slane %v220_v34, %v246_v50  ;;  %6191 = vst [vmem:[#allocation152_spill] sm:$0xff] %v4619_v31  ;;  %v275_v40 = vmul.f32 %v4613_v61, %v225_v33 }
 0x16c   :  { %v3334_v2 = vmul.f32 -1.442695, %v1130_v41  ;;  %3624 = vpow2.f32 %v3333_v51  ;;  %v272_v51 = vmul.f32 %v4607_v7, %v225_v33  ;;  %v322_v1 = vadd.f32 %v4622_v49, %v273_v32 }
 0x16d   :  { %3626 = vpow2.f32 %v3335_v25  ;;  %6190 = vst [vmem:[#allocation151_spill] sm:$0xff] %v4616_v52  ;;  %v4625_v25 = vrot.slane %v220_v34, %v258_v8 }
 0x16e   :  { %3628 = vpow2.f32 %v3334_v2  ;;  %v321_v2 = vadd.f32 %v4616_v52, %v272_v51 }
 0x16f   :  { %3630 = vpow2.f32 %v3336_v46  ;;  %v274_v46 = vmul.f32 %v4609_v5, %v225_v33 }
 0x171   :  { %v323_v5 = vadd.f32 %v4619_v31, %v274_v46 }
 0x176   :  { %v3625_v54 = vpop.eup %3624 }
 0x177   :  { %v3627_v53 = vpop.eup %3626  ;;  %v1155_v48 = vadd.f32 1.0, %v3625_v54 }
 0x178   :  { %v3629_v18 = vpop.eup %3628  ;;  %v1157_v56 = vadd.f32 1.0, %v3627_v53  ;;  %v324_v53 = vadd.f32 %v4625_v25, %v275_v40 }
 0x179   :  { %v3631_v39 = vpop.eup %3630  ;;  %v1156_v23 = vadd.f32 1.0, %v3629_v18  ;;  %3632 = vrcp.f32 %v1155_v48 }
 0x17a   :  { %v1158_v41 = vadd.f32 1.0, %v3631_v39  ;;  %3634 = vrcp.f32 %v1157_v56 }
 0x17b   :  { %3636 = vrcp.f32 %v1156_v23 }
 0x17c   :  { %3638 = vrcp.f32 %v1158_v41 }
 0x183   :  { %v3633_v32 = vpop.eup %3632 }
 0x184   :  { %v3635_v56 = vpop.eup %3634 }
 0x1a0   :  { %v1081_v50 = vpop.f32.mrb[4].mxu0  ;;  %v1122_v59 = vpop.f32.mrb[4].mxu1 }
 0x1a1   :  { %v1133_v54 = vadd.f32 %v1081_v50, %v321_v2  ;;  %v1083_v12 = vpop.f32.mrb[5].mxu0  ;;  %v1135_v33 = vadd.f32 %v1122_v59, %v323_v5  ;;  %v1124_v8 = vpop.f32.mrb[5].mxu1  ;;  %v1175_v59 = vmul.f32 0.0, %v3635_v56  ;;  %v6192_v56 = vld [vmem:[#allocation78_spill] sm:$0xff] }
 0x1a2   :  { %v1134_v34 = vadd.f32 %v1083_v12, %v322_v1  ;;  %v1085_v18 = vpop.f32.mrb[6].mxu0  ;;  %v1136_v51 = vadd.f32 %v1124_v8, %v324_v53  ;;  %v1126_v48 = vpop.f32.mrb[6].mxu1 }
 0x1a3   :  { %v3337_v39 = vmul.f32 -1.442695, %v1133_v54  ;;  %v1086_v52 = vpop.f32.mrb[7].mxu0  ;;  %3640 = vtanh.f32 %v1135_v33  ;;  %v1127_v31 = vpop.f32.mrb[7].mxu1 }
 0x1a4   :  { %v3338_v46 = vmul.f32 -1.442695, %v1134_v34  ;;  %v3637_v2 = vpop.eup %3636 }
 0x1a5   :  { %3642 = vpow2.f32 %v3337_v39  ;;  %v3639_v40 = vpop.eup %3638 }
 0x1a6   :  { %3644 = vpow2.f32 %v3338_v46  ;;  %v1176_v53 = vmul.f32 0.0, %v3639_v40  ;;  %v6194_v40 = vld [vmem:[#allocation80_spill] sm:$0xff] }
 0x1a7   :  { %3646 = vtanh.f32 %v1136_v51 }
 0x1ad   :  { %v3641_v23 = vpop.eup %3640 }
 0x1ae   :  { %v1177_v50 = vmul.f32 %v3641_v23, %v3633_v32  ;;  %v6195_v23 = vld [vmem:[#allocation81_spill] sm:$0xff] }
 0x1af   :  { %v3643_v5 = vpop.eup %3642 }
 0x1b0   :  { %v3645_v1 = vpop.eup %3644  ;;  %v1159_v41 = vadd.f32 1.0, %v3643_v5  ;;  %v4631_v12 = vadd.f32 %v1177_v50, %v1175_v59  ;;  %v6196_v5 = vld [vmem:[#allocation82_spill] sm:$0xff]  ;;  %v6197_v59 = vld [vmem:[#allocation83_spill] sm:$0xff]  ;;  %v6198_v50 = vld [vmem:[#allocation84_spill] sm:$0xff] }
 0x1b1   :  { %v3647_v54 = vpop.eup %3646  ;;  %v1160_v52 = vadd.f32 1.0, %v3645_v1  ;;  %v6199_v1 = vld [vmem:[#allocation85_spill] sm:$0xff] }
 0x1b2   :  { %3648 = vrcp.f32 %v1159_v41  ;;  %v1178_v31 = vmul.f32 %v3647_v54, %v3637_v2  ;;  %v6193_v2 = vld [vmem:[#allocation79_spill] sm:$0xff]  ;;  %v6200_v41 = vld [vmem:[#allocation86_spill] sm:$0xff] }
 0x1b3   :  { %3650 = vtanh.f32 %v4631_v12  ;;  %v6201_v54 = vld [vmem:[#allocation87_spill] sm:$0xff] }
 0x1b4   :  { %3652 = vrcp.f32 %v1160_v52  ;;  %v4634_v33 = vadd.f32 %v1178_v31, %v1176_v53  ;;  %v6202_v52 = vld [vmem:[#allocation88_spill] sm:$0xff]  ;;  %v6203_v53 = vld [vmem:[#allocation89_spill] sm:$0xff]  ;;  %v6204_v31 = vld [vmem:[#allocation90_spill] sm:$0xff] }
 0x1b6   :  { %3654 = vtanh.f32 %v4634_v33 }
 0x1bc   :  { %v3649_v34 = vpop.eup %3648 }
 0x1bd   :  { %v3651_v8 = vpop.eup %3650 }
 0x1be   :  { %v3653_v18 = vpop.eup %3652  ;;  %v1183_v51 = vmul.f32 %v3651_v8, %v3649_v34  ;;  %v6205_v34 = vld [vmem:[#allocation91_spill] sm:$0xff]  ;;  %v6206_v8 = vld [vmem:[#allocation92_spill] sm:$0xff] }
 0x1c0   :  { %v3655_v39 = vpop.eup %3654  ;;  %v4637_v32 = vpack.c.bf16 %v1183_v51, %v1183_v51  ;;  %v6209_v51 = vld [vmem:[#allocation95_spill] sm:$0xff] }
 0x1c1   :  { %v1184_v48 = vmul.f32 %v3655_v39, %v3653_v18  ;;  %v6207_v18 = vld [vmem:[#allocation93_spill] sm:$0xff]  ;;  %v6208_v39 = vld [vmem:[#allocation94_spill] sm:$0xff] }
 0x1c3   :  { %v1209_v46 = vpack.c.bf16 %v1184_v48, %v1184_v48  ;;  %v6210_v48 = vld [vmem:[#allocation96_spill] sm:$0xff] }
 0x1c5   :  { %1242 = vmatprep.mubr.bf16.mxu0 %v1209_v46  ;;  %1283 = vmatprep.mubr.bf16.mxu1 %v1209_v46 }
 0x1c6   :  { %1243 = vmatmul.mubr.bf16.vlgmr.msra.gmra.mrb[8].mxu0 %v4637_v32  ;;  %1284 = vmatmul.mubr.bf16.vlgmr.msra.gmra.mrb[8].mxu1 %v4637_v32 }
 0x1c7   :  { %1293 = vmatpush1.bf16.msra.mxu0 %v6192_v56  ;;  %1334 = vmatpush1.bf16.msra.mxu1 %v6193_v2 }
 0x1c8   :  { %1324 = vmatprep.mubr.bf16.mxu0 %v1209_v46  ;;  %1365 = vmatprep.mubr.bf16.mxu1 %v1209_v46  ;;  %v6211_v46 = vld [vmem:[#allocation97_spill] sm:$0xff] }
 0x1c9   :  { %1294 = vmatprep.subr.bf16.mxu0 %v6194_v40  ;;  %1335 = vmatprep.subr.bf16.mxu1 %v6195_v23 }
 0x1cb   :  { %1295 = vmatpush1.bf16.msra.mxu0 %v6196_v5  ;;  %1336 = vmatpush1.bf16.msra.mxu1 %v6197_v59 }
 0x1cc   :  { %1296 = vmatprep.subr.bf16.mxu0 %v6198_v50  ;;  %1337 = vmatprep.subr.bf16.mxu1 %v6199_v1 }
 0x1cf   :  { %1297 = vmatpush1.bf16.msra.mxu0 %v6200_v41  ;;  %1338 = vmatpush1.bf16.msra.mxu1 %v6201_v54  ;;  %v6212_v54 = vld [vmem:[#allocation98_spill] sm:$0xff] }
 0x1d0   :  { %1298 = vmatprep.subr.bf16.mxu0 %v6202_v52  ;;  %1339 = vmatprep.subr.bf16.mxu1 %v6203_v53  ;;  %v6213_v52 = vld [vmem:[#allocation99_spill] sm:$0xff]  ;;  %v6214_v53 = vld [vmem:[#allocation100_spill] sm:$0xff] }
 0x1d3   :  { %1299 = vmatpush1.bf16.msra.mxu0 %v6204_v31  ;;  %1340 = vmatpush1.bf16.msra.mxu1 %v6205_v34  ;;  %v6215_v31 = vld [vmem:[#allocation101_spill] sm:$0xff]  ;;  %v6216_v34 = vld [vmem:[#allocation102_spill] sm:$0xff] }
 0x1d4   :  { %1300 = vmatprep.subr.bf16.mxu0 %v6206_v8  ;;  %1341 = vmatprep.subr.bf16.mxu1 %v6207_v18  ;;  %v6217_v8 = vld [vmem:[#allocation103_spill] sm:$0xff]  ;;  %v6218_v18 = vld [vmem:[#allocation104_spill] sm:$0xff] }
 0x1d7   :  { %1301 = vmatpush1.bf16.msra.mxu0 %v6208_v39  ;;  %1342 = vmatpush1.bf16.msra.mxu1 %v6209_v51  ;;  %v6219_v39 = vld [vmem:[#allocation105_spill] sm:$0xff]  ;;  %v6220_v51 = vld [vmem:[#allocation106_spill] sm:$0xff] }
 0x1d8   :  { %1302 = vmatprep.subr.bf16.mxu0 %v6210_v48  ;;  %1343 = vmatprep.subr.bf16.mxu1 %v6211_v46  ;;  %v6221_v48 = vld [vmem:[#allocation107_spill] sm:$0xff]  ;;  %v6222_v46 = vld [vmem:[#allocation108_spill] sm:$0xff] }
 0x1db   :  { %1303 = vmatpush1.bf16.msra.mxu0 %v6212_v54  ;;  %1344 = vmatpush1.bf16.msra.mxu1 %v6213_v52  ;;  %v6223_v54 = vld [vmem:[#allocation109_spill] sm:$0xff]  ;;  %v6224_v52 = vld [vmem:[#allocation110_spill] sm:$0xff] }
 0x1dc   :  { %1304 = vmatprep.subr.bf16.mxu0 %v6214_v53  ;;  %1345 = vmatprep.subr.bf16.mxu1 %v6215_v31  ;;  %v6225_v53 = vld [vmem:[#allocation111_spill] sm:$0xff]  ;;  %v6226_v31 = vld [vmem:[#allocation112_spill] sm:$0xff] }
 0x1df   :  { %1305 = vmatpush1.bf16.msra.mxu0 %v6216_v34  ;;  %1346 = vmatpush1.bf16.msra.mxu1 %v6217_v8  ;;  %v6227_v34 = vld [vmem:[#allocation113_spill] sm:$0xff]  ;;  %v6228_v8 = vld [vmem:[#allocation114_spill] sm:$0xff] }
 0x1e0   :  { %1306 = vmatprep.subr.bf16.mxu0 %v6218_v18  ;;  %1347 = vmatprep.subr.bf16.mxu1 %v6219_v39  ;;  %v6229_v18 = vld [vmem:[#allocation115_spill] sm:$0xff]  ;;  %v6230_v39 = vld [vmem:[#allocation116_spill] sm:$0xff] }
 0x1e3   :  { %1307 = vmatpush1.bf16.msra.mxu0 %v6220_v51  ;;  %1348 = vmatpush1.bf16.msra.mxu1 %v6221_v48  ;;  %v6231_v51 = vld [vmem:[#allocation117_spill] sm:$0xff]  ;;  %v6232_v48 = vld [vmem:[#allocation118_spill] sm:$0xff] }
 0x1e4   :  { %1308 = vmatprep.subr.bf16.mxu0 %v6222_v46  ;;  %1349 = vmatprep.subr.bf16.mxu1 %v6223_v54  ;;  %v6233_v46 = vld [vmem:[#allocation119_spill] sm:$0xff]  ;;  %v6234_v54 = vld [vmem:[#allocation120_spill] sm:$0xff] }
 0x1e7   :  { %1309 = vmatpush1.bf16.msra.mxu0 %v6224_v52  ;;  %1350 = vmatpush1.bf16.msra.mxu1 %v6225_v53  ;;  %v6235_v52 = vld [vmem:[#allocation121_spill] sm:$0xff]  ;;  %v6236_v53 = vld [vmem:[#allocation122_spill] sm:$0xff] }
 0x1e8   :  { %1310 = vmatprep.subr.bf16.mxu0 %v6226_v31  ;;  %1351 = vmatprep.subr.bf16.mxu1 %v6227_v34  ;;  %v6237_v31 = vld [vmem:[#allocation123_spill] sm:$0xff]  ;;  %v6238_v34 = vld [vmem:[#allocation124_spill] sm:$0xff] }
 0x1eb   :  { %1311 = vmatpush1.bf16.msra.mxu0 %v6228_v8  ;;  %1352 = vmatpush1.bf16.msra.mxu1 %v6229_v18  ;;  %v6239_v8 = vld [vmem:[#allocation125_spill] sm:$0xff] }
 0x1ec   :  { %1312 = vmatprep.subr.bf16.mxu0 %v6230_v39  ;;  %1353 = vmatprep.subr.bf16.mxu1 %v6231_v51 }
 0x1ef   :  { %1313 = vmatpush1.bf16.msra.mxu0 %v6232_v48  ;;  %1354 = vmatpush1.bf16.msra.mxu1 %v6233_v46  ;;  %v6240_v48 = vld [vmem:[#allocation129_spill] sm:$0xff] }
 0x1f0   :  { %1314 = vmatprep.subr.bf16.mxu0 %v6234_v54  ;;  %1355 = vmatprep.subr.bf16.mxu1 %v6235_v52 }
 0x1f3   :  { %1315 = vmatpush1.bf16.msra.mxu0 %v6236_v53  ;;  %1356 = vmatpush1.bf16.msra.mxu1 %v6237_v31 }
 0x1f4   :  { %1316 = vmatprep.subr.bf16.mxu0 %v6238_v34  ;;  %1357 = vmatprep.subr.bf16.mxu1 %v6239_v8 }
 0x1f7   :  { %1317 = vmatpush1.bf16.msra.mxu0 %v4464_v57  ;;  %1358 = vmatpush1.bf16.msra.mxu1 %v4468_v26 }
 0x1f8   :  { %1318 = vmatprep.subr.bf16.mxu0 %v4470_v17  ;;  %1359 = vmatprep.subr.bf16.mxu1 %v6240_v48 }
 0x1fb   :  { %1319 = vmatpush1.bf16.msra.mxu0 %v4476_v16  ;;  %1360 = vmatpush1.bf16.msra.mxu1 %v4480_v42 }
 0x1fc   :  { %1320 = vmatprep.subr.bf16.mxu0 %v4482_v0  ;;  %1361 = vmatprep.subr.bf16.mxu1 %v4485_v13 }
 0x1ff   :  { %1321 = vmatpush1.bf16.msra.mxu0 %v4488_v14  ;;  %1362 = vmatpush1.bf16.msra.mxu1 %v4492_v63 }
 0x200   :  { %1322 = vmatprep.subr.bf16.mxu0 %v4494_v58  ;;  %1363 = vmatprep.subr.bf16.mxu1 %v4497_v47 }
 0x203   :  { %1323 = vmatpush1.bf16.msra.mxu0 %v4500_v3  ;;  %1364 = vmatpush1.bf16.msra.mxu1 %v4504_v55 }
 0x204   :  { %1455 = vmatprep.subr.bf16.mxu0 %v4109_v4  ;;  %1496 = vmatprep.subr.bf16.mxu1 %v4113_v9 }
 0x206   :  { %1325 = vmatmul.mubr.bf16.vlgmr.msra.gmra.mrb[12].mxu0 %v4637_v32  ;;  %1366 = vmatmul.mubr.bf16.vlgmr.msra.gmra.mrb[12].mxu1 %v4637_v32  ;;  %v6241_v32 = vld [vmem:[#allocation33_spill] sm:$0xff] }
 0x207   :  { %1456 = vmatpush1.bf16.msra.mxu0 %v4111_v6  ;;  %1497 = vmatpush1.bf16.msra.mxu1 %v4115_v10 }
 0x208   :  { %1457 = vmatprep.subr.bf16.mxu0 %v4117_v11  ;;  %1498 = vmatprep.subr.bf16.mxu1 %v4120_v15 }
 0x20b   :  { %1458 = vmatpush1.bf16.msra.mxu0 %v4124_v19  ;;  %1499 = vmatpush1.bf16.msra.mxu1 %v4128_v20  ;;  %v1190_v20 = vpop.permute.xlu0 %1189 }
 0x20c   :  { %1459 = vmatprep.subr.bf16.mxu0 %v4130_v21  ;;  %1500 = vmatprep.subr.bf16.mxu1 %v4133_v22 }
 0x20f   :  { %1460 = vmatpush1.bf16.msra.mxu0 %v4136_v27  ;;  %1501 = vmatpush1.bf16.msra.mxu1 %v4140_v28  ;;  %v6242_v28 = vld [vmem:[#allocation34_spill] sm:$0xff] }
 0x210   :  { %1461 = vmatprep.subr.bf16.mxu0 %v4142_v29  ;;  %1502 = vmatprep.subr.bf16.mxu1 %v4145_v30  ;;  %v6243_v29 = vld [vmem:[#allocation35_spill] sm:$0xff]  ;;  %v6244_v30 = vld [vmem:[#allocation36_spill] sm:$0xff] }
 0x213   :  { %1462 = vmatpush1.bf16.msra.mxu0 %v4148_v35  ;;  %1503 = vmatpush1.bf16.msra.mxu1 %v4152_v36  ;;  %v6245_v35 = vld [vmem:[#allocation37_spill] sm:$0xff]  ;;  %v6246_v36 = vld [vmem:[#allocation38_spill] sm:$0xff] }
 0x214   :  { %1463 = vmatprep.subr.bf16.mxu0 %v4154_v37  ;;  %1504 = vmatprep.subr.bf16.mxu1 %v4157_v38  ;;  %v6247_v37 = vld [vmem:[#allocation39_spill] sm:$0xff]  ;;  %v6248_v38 = vld [vmem:[#allocation40_spill] sm:$0xff] }
 0x217   :  { %1464 = vmatpush1.bf16.msra.mxu0 %v4160_v43  ;;  %1505 = vmatpush1.bf16.msra.mxu1 %v4164_v44  ;;  %v6249_v43 = vld [vmem:[#allocation41_spill] sm:$0xff]  ;;  %v6250_v44 = vld [vmem:[#allocation42_spill] sm:$0xff] }
 0x218   :  { %1465 = vmatprep.subr.bf16.mxu0 %v4166_v45  ;;  %1506 = vmatprep.subr.bf16.mxu1 %v6241_v32  ;;  %v6251_v45 = vld [vmem:[#allocation43_spill] sm:$0xff]  ;;  %v6252_v32 = vld [vmem:[#allocation44_spill] sm:$0xff] }
 0x21b   :  { %1466 = vmatpush1.bf16.msra.mxu0 %v6242_v28  ;;  %1507 = vmatpush1.bf16.msra.mxu1 %v6243_v29  ;;  %v6253_v28 = vld [vmem:[#allocation45_spill] sm:$0xff]  ;;  %v6254_v29 = vld [vmem:[#allocation46_spill] sm:$0xff] }
 0x21c   :  { %1467 = vmatprep.subr.bf16.mxu0 %v6244_v30  ;;  %1508 = vmatprep.subr.bf16.mxu1 %v6245_v35  ;;  %v6255_v30 = vld [vmem:[#allocation47_spill] sm:$0xff]  ;;  %v6256_v35 = vld [vmem:[#allocation48_spill] sm:$0xff] }
 0x21f   :  { %1468 = vmatpush1.bf16.msra.mxu0 %v6246_v36  ;;  %1509 = vmatpush1.bf16.msra.mxu1 %v6247_v37  ;;  %v6257_v36 = vld [vmem:[#allocation49_spill] sm:$0xff]  ;;  %v6258_v37 = vld [vmem:[#allocation50_spill] sm:$0xff] }
 0x220   :  { %1469 = vmatprep.subr.bf16.mxu0 %v6248_v38  ;;  %1510 = vmatprep.subr.bf16.mxu1 %v6249_v43  ;;  %v6259_v38 = vld [vmem:[#allocation51_spill] sm:$0xff]  ;;  %v6260_v43 = vld [vmem:[#allocation52_spill] sm:$0xff] }
 0x223   :  { %1470 = vmatpush1.bf16.msra.mxu0 %v6250_v44  ;;  %1511 = vmatpush1.bf16.msra.mxu1 %v6251_v45  ;;  %v6261_v44 = vld [vmem:[#allocation53_spill] sm:$0xff]  ;;  %v6262_v45 = vld [vmem:[#allocation54_spill] sm:$0xff] }
 0x224   :  { %1471 = vmatprep.subr.bf16.mxu0 %v6252_v32  ;;  %1512 = vmatprep.subr.bf16.mxu1 %v6253_v28  ;;  %v6263_v32 = vld [vmem:[#allocation55_spill] sm:$0xff]  ;;  %v6264_v28 = vld [vmem:[#allocation56_spill] sm:$0xff] }
 0x227   :  { %1472 = vmatpush1.bf16.msra.mxu0 %v6254_v29  ;;  %1513 = vmatpush1.bf16.msra.mxu1 %v6255_v30  ;;  %v6265_v29 = vld [vmem:[#allocation57_spill] sm:$0xff]  ;;  %v6266_v30 = vld [vmem:[#allocation58_spill] sm:$0xff] }
 0x228   :  { %1473 = vmatprep.subr.bf16.mxu0 %v6256_v35  ;;  %1514 = vmatprep.subr.bf16.mxu1 %v6257_v36  ;;  %v6267_v35 = vld [vmem:[#allocation59_spill] sm:$0xff]  ;;  %v6268_v36 = vld [vmem:[#allocation60_spill] sm:$0xff] }
 0x22b   :  { %1474 = vmatpush1.bf16.msra.mxu0 %v6258_v37  ;;  %1515 = vmatpush1.bf16.msra.mxu1 %v6259_v38  ;;  %v6269_v37 = vld [vmem:[#allocation61_spill] sm:$0xff]  ;;  %v6270_v38 = vld [vmem:[#allocation62_spill] sm:$0xff] }
 0x22c   :  { %1475 = vmatprep.subr.bf16.mxu0 %v6260_v43  ;;  %1516 = vmatprep.subr.bf16.mxu1 %v6261_v44  ;;  %v6271_v43 = vld [vmem:[#allocation63_spill] sm:$0xff]  ;;  %v6272_v44 = vld [vmem:[#allocation64_spill] sm:$0xff] }
 0x22f   :  { %1476 = vmatpush1.bf16.msra.mxu0 %v6262_v45  ;;  %1517 = vmatpush1.bf16.msra.mxu1 %v6263_v32  ;;  %v6273_v45 = vld [vmem:[#allocation65_spill] sm:$0xff]  ;;  %v6274_v32 = vld [vmem:[#allocation66_spill] sm:$0xff] }
 0x230   :  { %1477 = vmatprep.subr.bf16.mxu0 %v6264_v28  ;;  %1518 = vmatprep.subr.bf16.mxu1 %v6265_v29  ;;  %v6275_v28 = vld [vmem:[#allocation67_spill] sm:$0xff]  ;;  %v6276_v29 = vld [vmem:[#allocation68_spill] sm:$0xff] }
 0x233   :  { %1478 = vmatpush1.bf16.msra.mxu0 %v6266_v30  ;;  %1519 = vmatpush1.bf16.msra.mxu1 %v6267_v35  ;;  %v6277_v30 = vld [vmem:[#allocation69_spill] sm:$0xff]  ;;  %v6278_v35 = vld [vmem:[#allocation70_spill] sm:$0xff] }
 0x234   :  { %1479 = vmatprep.subr.bf16.mxu0 %v6268_v36  ;;  %1520 = vmatprep.subr.bf16.mxu1 %v6269_v37  ;;  %v6279_v36 = vld [vmem:[#allocation71_spill] sm:$0xff]  ;;  %v6280_v37 = vld [vmem:[#allocation72_spill] sm:$0xff] }
 0x237   :  { %1480 = vmatpush1.bf16.msra.mxu0 %v6270_v38  ;;  %1521 = vmatpush1.bf16.msra.mxu1 %v6271_v43  ;;  %v6281_v38 = vld [vmem:[#allocation73_spill] sm:$0xff]  ;;  %v6282_v43 = vld [vmem:[#allocation74_spill] sm:$0xff] }
 0x238   :  { %1481 = vmatprep.subr.bf16.mxu0 %v6272_v44  ;;  %1522 = vmatprep.subr.bf16.mxu1 %v6273_v45  ;;  %v6283_v44 = vld [vmem:[#allocation75_spill] sm:$0xff]  ;;  %v6284_v45 = vld [vmem:[#allocation76_spill] sm:$0xff] }
 0x23b   :  { %1482 = vmatpush1.bf16.msra.mxu0 %v6274_v32  ;;  %1523 = vmatpush1.bf16.msra.mxu1 %v6275_v28  ;;  %v6285_v32 = vld [vmem:[#allocation77_spill] sm:$0xff] }
 0x23c   :  { %1483 = vmatprep.subr.bf16.mxu0 %v6276_v29  ;;  %1524 = vmatprep.subr.bf16.mxu1 %v6277_v30 }
 0x23f   :  { %1484 = vmatpush1.bf16.msra.mxu0 %v6278_v35  ;;  %1525 = vmatpush1.bf16.msra.mxu1 %v6279_v36 }
 0x240   :  { %1485 = vmatprep.subr.bf16.mxu0 %v6280_v37  ;;  %1526 = vmatprep.subr.bf16.mxu1 %v6281_v38  ;;  %v6286_v37 = vld [vmem:[#allocation140_spill] sm:$0xff]  ;;  %v6287_v38 = vld [vmem:[#allocation141_spill] sm:$0xff] }
 0x241   :  { %v1192_v19 = vmul.f32 %v1190_v20, %v6286_v37  ;;  %v1194_v15 = vmul.f32 %v1190_v20, %v6287_v38 }
 0x243   :  { %1486 = vmatpush1.bf16.msra.mxu0 %v6282_v43  ;;  %1527 = vmatpush1.bf16.msra.mxu1 %v6283_v44  ;;  %v6288_v43 = vld [vmem:[#allocation142_spill] sm:$0xff]  ;;  %v1195_v44 = vmul.f32 %v1190_v20, %v4589_v24 }
 0x244   :  { %1537 = vmatprep.subr.bf16.mxu0 %v6284_v45  ;;  %1578 = vmatprep.subr.bf16.mxu1 %v6285_v32  ;;  %v1193_v11 = vmul.f32 %v1190_v20, %v6288_v43  ;;  %v6289_v45 = vld [vmem:[#allocation144_spill] sm:$0xff]  ;;  %v6290_v32 = vld [vmem:[#allocation145_spill] sm:$0xff] }
 0x245   :  { %v1200_v10 = vadd.f32 %v1192_v19, %v6289_v45  ;;  %v1202_v6 = vadd.f32 %v1194_v15, %v6290_v32  ;;  %v1203_v37 = vadd.f32 %v1195_v44, %v4601_v60  ;;  %v3353_v43 = vld [vmem:[%s5711_s0 + $0x6] sm:$0x3]  ;;  %v3367_v32 = vld [vmem:[%s5711_s0 + $0xa] sm:$0x3] }
 0x246   :  { %v6291_v44 = vld [vmem:[#allocation149_spill] sm:$0xff] }
 0x299   :  { %v1244_v28 = vpop.f32.mrb[8].mxu0  ;;  %v1285_v29 = vpop.f32.mrb[8].mxu1 }
 0x29a   :  { %v1246_v27 = vpop.f32.mrb[9].mxu0  ;;  %v1287_v30 = vpop.f32.mrb[9].mxu1 }
 0x29b   :  { %v1248_v22 = vpop.f32.mrb[10].mxu0  ;;  %v1289_v35 = vpop.f32.mrb[10].mxu1  ;;  %v1377_v38 = vadd.f32 %v1287_v30, %v1203_v37 }
 0x29c   :  { %v1249_v21 = vpop.f32.mrb[11].mxu0  ;;  %v1290_v36 = vpop.f32.mrb[11].mxu1  ;;  %v3346_v22 = vld [vmem:[%s5711_s0 + $0x4] sm:$0x3]  ;;  %v1374_v35 = vadd.f32 %v1244_v28, %v1200_v10 }
 0x29d   :  { %v1201_v21 = vadd.f32 %v1193_v11, %v4598_v62  ;;  %1434 = vperm.xlu1 %3623, %v3346_v22   ;;  %v1376_v36 = vadd.f32 %v1285_v29, %v1202_v6  ;;  %v3343_v28 = vmul.f32 -1.442695, %v1377_v38  ;;  %v3381_v6 = vld [vmem:[%s5711_s0 + $0xe] sm:$0x3]  ;;  %v6292_v22 = vld [vmem:[#allocation150_spill] sm:$0xff] }
 0x29e   :  { %v3340_v19 = vmul.f32 -1.442695, %v1374_v35  ;;  %v1199_v35 = vmul.f32 %v1190_v20, %v4613_v61 }
 0x29f   :  { %v1375_v24 = vadd.f32 %v1246_v27, %v1201_v21  ;;  %v3342_v15 = vmul.f32 -1.442695, %v1376_v36 }
 0x2a0   :  { %3656 = vpow2.f32 %v3340_v19  ;;  %v6293_v19 = vld [vmem:[#allocation151_spill] sm:$0xff] }
 0x2a1   :  { %1679 = vperm.xlu1 %3623, %v3353_v43   ;;  %v3341_v10 = vmul.f32 -1.442695, %v1375_v24  ;;  %3658 = vpow2.f32 %v3342_v15  ;;  %v1196_v43 = vmul.f32 %v1190_v20, %v4607_v7  ;;  %v1198_v24 = vmul.f32 %v1190_v20, %v6291_v44 }
 0x2a2   :  { %v1207_v7 = vadd.f32 %v1199_v35, %v4625_v25 }
 0x2a3   :  { %3660 = vpow2.f32 %v3341_v10  ;;  %v1204_v15 = vadd.f32 %v1196_v43, %v6293_v19  ;;  %v6294_v10 = vld [vmem:[#allocation152_spill] sm:$0xff] }
 0x2a4   :  { %3662 = vpow2.f32 %v3343_v28  ;;  %v1206_v28 = vadd.f32 %v1198_v24, %v6294_v10 }
 0x2a5   :  { %2169 = vperm.xlu1 %3623, %v3367_v32   ;;  %v1197_v32 = vmul.f32 %v1190_v20, %v6292_v22 }
 0x2a9   :  { %2659 = vperm.xlu1 %3623, %v3381_v6  }
 0x2aa   :  { %v3657_v11 = vpop.eup %3656 }
 0x2ab   :  { %v3659_v27 = vpop.eup %3658  ;;  %v1400_v37 = vadd.f32 1.0, %v3657_v11  ;;  %v1205_v11 = vadd.f32 %v1197_v32, %v4622_v49 }
 0x2ac   :  { %v1402_v38 = vadd.f32 1.0, %v3659_v27 }
 0x2ad   :  { %v3661_v29 = vpop.eup %3660  ;;  %3664 = vrcp.f32 %v1400_v37 }
 0x2ae   :  { %v3663_v30 = vpop.eup %3662  ;;  %v1401_v21 = vadd.f32 1.0, %v3661_v29  ;;  %3666 = vrcp.f32 %v1402_v38 }
 0x2af   :  { %v1403_v36 = vadd.f32 1.0, %v3663_v30 }
 0x2b0   :  { %3668 = vrcp.f32 %v1401_v21 }
 0x2b1   :  { %3670 = vrcp.f32 %v1403_v36 }
 0x2b7   :  { %v3665_v32 = vpop.eup %3664 }
 0x2b8   :  { %v3667_v35 = vpop.eup %3666 }
 0x2b9   :  { %v1420_v36 = vmul.f32 %v3667_v35, %v4631_v12  ;;  %v6296_v35 = vld [vmem:[#allocation88_spill] sm:$0xff] }
 0x2ba   :  { %v3669_v21 = vpop.eup %3668 }
 0x2d9   :  { %v1326_v6 = vpop.f32.mrb[12].mxu0  ;;  %v1367_v60 = vpop.f32.mrb[12].mxu1 }
 0x2da   :  { %v1378_v27 = vadd.f32 %v1326_v6, %v1204_v15  ;;  %v1380_v44 = vadd.f32 %v1367_v60, %v1206_v28  ;;  %v1328_v22 = vpop.f32.mrb[13].mxu0  ;;  %v1369_v62 = vpop.f32.mrb[13].mxu1 }
 0x2db   :  { %v1379_v20 = vadd.f32 %v1328_v22, %v1205_v11  ;;  %v1381_v29 = vadd.f32 %v1369_v62, %v1207_v7  ;;  %v1330_v30 = vpop.f32.mrb[14].mxu0  ;;  %v1371_v37 = vpop.f32.mrb[14].mxu1 }
 0x2dc   :  { %v3344_v43 = vmul.f32 -1.442695, %v1378_v27  ;;  %3672 = vtanh.f32 %v1380_v44  ;;  %v1331_v24 = vpop.f32.mrb[15].mxu0  ;;  %v1372_v38 = vpop.f32.mrb[15].mxu1 }
 0x2dd   :  { %v3345_v10 = vmul.f32 -1.442695, %v1379_v20  ;;  %3674 = vtanh.f32 %v1381_v29  ;;  %v3671_v15 = vpop.eup %3670 }
 0x2de   :  { %3676 = vpow2.f32 %v3344_v43  ;;  %v1421_v7 = vmul.f32 %v3671_v15, %v4634_v33  ;;  %v6298_v15 = vld [vmem:[#allocation90_spill] sm:$0xff] }
 0x2df   :  { %3678 = vpow2.f32 %v3345_v10 }
 0x2e6   :  { %v3673_v60 = vpop.eup %3672 }
 0x2e7   :  { %v3675_v28 = vpop.eup %3674  ;;  %v1422_v22 = vmul.f32 %v3673_v60, %v3665_v32  ;;  %v6295_v32 = vld [vmem:[#allocation87_spill] sm:$0xff] }
 0x2e8   :  { %v3677_v62 = vpop.eup %3676  ;;  %v1423_v6 = vmul.f32 %v3675_v28, %v3669_v21  ;;  %v6297_v21 = vld [vmem:[#allocation89_spill] sm:$0xff]  ;;  %v6299_v60 = vld [vmem:[#allocation91_spill] sm:$0xff]  ;;  %v6300_v28 = vld [vmem:[#allocation92_spill] sm:$0xff] }
 0x2e9   :  { %v3679_v44 = vpop.eup %3678  ;;  %v1404_v11 = vadd.f32 1.0, %v3677_v62  ;;  %v4801_v27 = vadd.f32 %v1422_v22, %v1420_v36  ;;  %v6301_v36 = vld [vmem:[#allocation93_spill] sm:$0xff]  ;;  %v6302_v22 = vld [vmem:[#allocation94_spill] sm:$0xff]  ;;  %v6303_v62 = vld [vmem:[#allocation95_spill] sm:$0xff] }
 0x2ea   :  { %v1405_v20 = vadd.f32 1.0, %v3679_v44  ;;  %v4803_v29 = vadd.f32 %v1423_v6, %v1421_v7  ;;  %v6304_v7 = vld [vmem:[#allocation96_spill] sm:$0xff]  ;;  %v6305_v6 = vld [vmem:[#allocation97_spill] sm:$0xff]  ;;  %v6306_v44 = vld [vmem:[#allocation98_spill] sm:$0xff] }
 0x2eb   :  { %3680 = vrcp.f32 %v1404_v11  ;;  %v6307_v11 = vld [vmem:[#allocation99_spill] sm:$0xff] }
 0x2ec   :  { %3682 = vtanh.f32 %v4801_v27 }
 0x2ed   :  { %3684 = vrcp.f32 %v1405_v20  ;;  %v6308_v20 = vld [vmem:[#allocation100_spill] sm:$0xff] }
 0x2ee   :  { %3686 = vtanh.f32 %v4803_v29 }
 0x2f5   :  { %v3681_v10 = vpop.eup %3680 }
 0x2f6   :  { %v3683_v12 = vpop.eup %3682 }
 0x2f7   :  { %v3685_v30 = vpop.eup %3684  ;;  %v1428_v43 = vmul.f32 %v3683_v12, %v3681_v10  ;;  %v6309_v10 = vld [vmem:[#allocation101_spill] sm:$0xff]  ;;  %v6310_v12 = vld [vmem:[#allocation102_spill] sm:$0xff] }
 0x2f8   :  { %v3687_v37 = vpop.eup %3686 }
 0x2f9   :  { %v1429_v33 = vmul.f32 %v3687_v37, %v3685_v30  ;;  %v4807_v38 = vpack.c.bf16 %v1428_v43, %v1428_v43  ;;  %v6311_v30 = vld [vmem:[#allocation103_spill] sm:$0xff]  ;;  %v6312_v37 = vld [vmem:[#allocation104_spill] sm:$0xff]  ;;  %v6313_v43 = vld [vmem:[#allocation105_spill] sm:$0xff] }
 0x2fb   :  { %v1454_v24 = vpack.c.bf16 %v1429_v33, %v1429_v33  ;;  %v6314_v33 = vld [vmem:[#allocation106_spill] sm:$0xff] }
 0x2fd   :  { %1487 = vmatprep.mubr.bf16.mxu0 %v1454_v24  ;;  %1528 = vmatprep.mubr.bf16.mxu1 %v1454_v24 }
 0x2fe   :  { %1488 = vmatmul.mubr.bf16.vlgmr.msra.gmra.mrb[16].mxu0 %v4807_v38  ;;  %1529 = vmatmul.mubr.bf16.vlgmr.msra.gmra.mrb[16].mxu1 %v4807_v38 }
 0x2ff   :  { %1538 = vmatpush1.bf16.msra.mxu0 %v6192_v56  ;;  %1579 = vmatpush1.bf16.msra.mxu1 %v6193_v2 }
 0x300   :  { %1569 = vmatprep.mubr.bf16.mxu0 %v1454_v24  ;;  %1610 = vmatprep.mubr.bf16.mxu1 %v1454_v24  ;;  %v6315_v24 = vld [vmem:[#allocation107_spill] sm:$0xff] }
 0x301   :  { %1539 = vmatprep.subr.bf16.mxu0 %v6194_v40  ;;  %1580 = vmatprep.subr.bf16.mxu1 %v6195_v23 }
 0x303   :  { %1540 = vmatpush1.bf16.msra.mxu0 %v6196_v5  ;;  %1581 = vmatpush1.bf16.msra.mxu1 %v6197_v59 }
 0x304   :  { %1541 = vmatprep.subr.bf16.mxu0 %v6198_v50  ;;  %1582 = vmatprep.subr.bf16.mxu1 %v6199_v1 }
 0x307   :  { %1542 = vmatpush1.bf16.msra.mxu0 %v6200_v41  ;;  %1583 = vmatpush1.bf16.msra.mxu1 %v6295_v32 }
 0x308   :  { %1543 = vmatprep.subr.bf16.mxu0 %v6296_v35  ;;  %1584 = vmatprep.subr.bf16.mxu1 %v6297_v21 }
 0x30b   :  { %1544 = vmatpush1.bf16.msra.mxu0 %v6298_v15  ;;  %1585 = vmatpush1.bf16.msra.mxu1 %v6299_v60 }
 0x30c   :  { %1545 = vmatprep.subr.bf16.mxu0 %v6300_v28  ;;  %1586 = vmatprep.subr.bf16.mxu1 %v6301_v36 }
 0x30f   :  { %1546 = vmatpush1.bf16.msra.mxu0 %v6302_v22  ;;  %1587 = vmatpush1.bf16.msra.mxu1 %v6303_v62 }
 0x310   :  { %1547 = vmatprep.subr.bf16.mxu0 %v6304_v7  ;;  %1588 = vmatprep.subr.bf16.mxu1 %v6305_v6  ;;  %v6316_v6 = vld [vmem:[#allocation108_spill] sm:$0xff] }
 0x313   :  { %1548 = vmatpush1.bf16.msra.mxu0 %v6306_v44  ;;  %1589 = vmatpush1.bf16.msra.mxu1 %v6307_v11  ;;  %v6317_v44 = vld [vmem:[#allocation109_spill] sm:$0xff]  ;;  %v6318_v11 = vld [vmem:[#allocation110_spill] sm:$0xff] }
 0x314   :  { %1549 = vmatprep.subr.bf16.mxu0 %v6308_v20  ;;  %1590 = vmatprep.subr.bf16.mxu1 %v6309_v10  ;;  %v6319_v20 = vld [vmem:[#allocation111_spill] sm:$0xff]  ;;  %v6320_v10 = vld [vmem:[#allocation112_spill] sm:$0xff] }
 0x317   :  { %1550 = vmatpush1.bf16.msra.mxu0 %v6310_v12  ;;  %1591 = vmatpush1.bf16.msra.mxu1 %v6311_v30  ;;  %v6321_v12 = vld [vmem:[#allocation113_spill] sm:$0xff]  ;;  %v6322_v30 = vld [vmem:[#allocation114_spill] sm:$0xff] }
 0x318   :  { %1551 = vmatprep.subr.bf16.mxu0 %v6312_v37  ;;  %1592 = vmatprep.subr.bf16.mxu1 %v6313_v43 }
 0x31b   :  { %1552 = vmatpush1.bf16.msra.mxu0 %v6314_v33  ;;  %1593 = vmatpush1.bf16.msra.mxu1 %v6315_v24  ;;  %v6323_v24 = vld [vmem:[#allocation118_spill] sm:$0xff] }
 0x31c   :  { %1553 = vmatprep.subr.bf16.mxu0 %v6316_v6  ;;  %1594 = vmatprep.subr.bf16.mxu1 %v6317_v44 }
 0x31f   :  { %1554 = vmatpush1.bf16.msra.mxu0 %v6318_v11  ;;  %1595 = vmatpush1.bf16.msra.mxu1 %v6319_v20 }
 0x320   :  { %1555 = vmatprep.subr.bf16.mxu0 %v6320_v10  ;;  %1596 = vmatprep.subr.bf16.mxu1 %v6321_v12 }
 0x323   :  { %1556 = vmatpush1.bf16.msra.mxu0 %v6322_v30  ;;  %1597 = vmatpush1.bf16.msra.mxu1 %v6229_v18 }
 0x324   :  { %1557 = vmatprep.subr.bf16.mxu0 %v6230_v39  ;;  %1598 = vmatprep.subr.bf16.mxu1 %v6231_v51 }
 0x327   :  { %1558 = vmatpush1.bf16.msra.mxu0 %v6323_v24  ;;  %1599 = vmatpush1.bf16.msra.mxu1 %v6233_v46 }
 0x328   :  { %1559 = vmatprep.subr.bf16.mxu0 %v6234_v54  ;;  %1600 = vmatprep.subr.bf16.mxu1 %v6235_v52  ;;  %v6394_v54 = vld [vmem:[#allocation147_spill] sm:$0xff] }
 0x32b   :  { %1560 = vmatpush1.bf16.msra.mxu0 %v6236_v53  ;;  %1601 = vmatpush1.bf16.msra.mxu1 %v6237_v31  ;;  %v6393_v53 = vld [vmem:[#allocation146_spill] sm:$0xff] }
 0x32c   :  { %1561 = vmatprep.subr.bf16.mxu0 %v6238_v34  ;;  %1602 = vmatprep.subr.bf16.mxu1 %v6239_v8 }
 0x32f   :  { %1562 = vmatpush1.bf16.msra.mxu0 %v4464_v57  ;;  %1603 = vmatpush1.bf16.msra.mxu1 %v4468_v26 }
 0x330   :  { %1563 = vmatprep.subr.bf16.mxu0 %v4470_v17  ;;  %1604 = vmatprep.subr.bf16.mxu1 %v6240_v48  ;;  %v1435_v17 = vpop.permute.xlu1 %1434 }
 0x333   :  { %1564 = vmatpush1.bf16.msra.mxu0 %v4476_v16  ;;  %1605 = vmatpush1.bf16.msra.mxu1 %v4480_v42 }
 0x334   :  { %1565 = vmatprep.subr.bf16.mxu0 %v4482_v0  ;;  %1606 = vmatprep.subr.bf16.mxu1 %v4485_v13  ;;  %v6324_v13 = vld [vmem:[#allocation13_spill] sm:$0xff]  ;;  %v6333_v0 = vld [vmem:[#allocation23_spill] sm:$0xff] }
 0x337   :  { %1566 = vmatpush1.bf16.msra.mxu0 %v4488_v14  ;;  %1607 = vmatpush1.bf16.msra.mxu1 %v4492_v63  ;;  %v6325_v14 = vld [vmem:[#allocation15_spill] sm:$0xff]  ;;  %v6326_v63 = vld [vmem:[#allocation16_spill] sm:$0xff] }
 0x338   :  { %1567 = vmatprep.subr.bf16.mxu0 %v4494_v58  ;;  %1608 = vmatprep.subr.bf16.mxu1 %v4497_v47  ;;  %v6327_v58 = vld [vmem:[#allocation17_spill] sm:$0xff]  ;;  %v6328_v47 = vld [vmem:[#allocation18_spill] sm:$0xff] }
 0x33b   :  { %1568 = vmatpush1.bf16.msra.mxu0 %v4500_v3  ;;  %1609 = vmatpush1.bf16.msra.mxu1 %v4504_v55  ;;  %v6329_v3 = vld [vmem:[#allocation19_spill] sm:$0xff]  ;;  %v6330_v55 = vld [vmem:[#allocation20_spill] sm:$0xff] }
 0x33c   :  { %1700 = vmatprep.subr.bf16.mxu0 %v4109_v4  ;;  %1741 = vmatprep.subr.bf16.mxu1 %v4113_v9  ;;  %v6331_v4 = vld [vmem:[#allocation21_spill] sm:$0xff]  ;;  %v6332_v9 = vld [vmem:[#allocation22_spill] sm:$0xff] }
 0x33e   :  { %1570 = vmatmul.mubr.bf16.vlgmr.msra.gmra.mrb[20].mxu0 %v4807_v38  ;;  %1611 = vmatmul.mubr.bf16.vlgmr.msra.gmra.mrb[20].mxu1 %v4807_v38  ;;  %v6334_v38 = vld [vmem:[#allocation24_spill] sm:$0xff] }
 0x33f   :  { %1701 = vmatpush1.bf16.msra.mxu0 %v6324_v13  ;;  %1742 = vmatpush1.bf16.msra.mxu1 %v6325_v14  ;;  %v6335_v13 = vld [vmem:[#allocation25_spill] sm:$0xff]  ;;  %v6336_v14 = vld [vmem:[#allocation26_spill] sm:$0xff] }
 0x340   :  { %1702 = vmatprep.subr.bf16.mxu0 %v6326_v63  ;;  %1743 = vmatprep.subr.bf16.mxu1 %v6327_v58  ;;  %v6337_v63 = vld [vmem:[#allocation27_spill] sm:$0xff]  ;;  %v6338_v58 = vld [vmem:[#allocation28_spill] sm:$0xff] }
 0x343   :  { %1703 = vmatpush1.bf16.msra.mxu0 %v6328_v47  ;;  %1744 = vmatpush1.bf16.msra.mxu1 %v6329_v3  ;;  %v6339_v47 = vld [vmem:[#allocation29_spill] sm:$0xff]  ;;  %v6340_v3 = vld [vmem:[#allocation30_spill] sm:$0xff] }
 0x344   :  { %1704 = vmatprep.subr.bf16.mxu0 %v6330_v55  ;;  %1745 = vmatprep.subr.bf16.mxu1 %v6331_v4  ;;  %v6341_v55 = vld [vmem:[#allocation31_spill] sm:$0xff]  ;;  %v6342_v4 = vld [vmem:[#allocation32_spill] sm:$0xff] }
 0x347   :  { %1705 = vmatpush1.bf16.msra.mxu0 %v6332_v9  ;;  %1746 = vmatpush1.bf16.msra.mxu1 %v6333_v0  ;;  %v6343_v9 = vld [vmem:[#allocation33_spill] sm:$0xff]  ;;  %v6344_v0 = vld [vmem:[#allocation34_spill] sm:$0xff] }
 0x348   :  { %1706 = vmatprep.subr.bf16.mxu0 %v6334_v38  ;;  %1747 = vmatprep.subr.bf16.mxu1 %v6335_v13  ;;  %v6345_v38 = vld [vmem:[#allocation35_spill] sm:$0xff]  ;;  %v6346_v13 = vld [vmem:[#allocation36_spill] sm:$0xff] }
 0x34b   :  { %1707 = vmatpush1.bf16.msra.mxu0 %v6336_v14  ;;  %1748 = vmatpush1.bf16.msra.mxu1 %v6337_v63  ;;  %v6347_v14 = vld [vmem:[#allocation37_spill] sm:$0xff]  ;;  %v6348_v63 = vld [vmem:[#allocation38_spill] sm:$0xff] }
 0x34c   :  { %1708 = vmatprep.subr.bf16.mxu0 %v6338_v58  ;;  %1749 = vmatprep.subr.bf16.mxu1 %v6339_v47  ;;  %v6349_v58 = vld [vmem:[#allocation39_spill] sm:$0xff]  ;;  %v6350_v47 = vld [vmem:[#allocation40_spill] sm:$0xff] }
 0x34f   :  { %1709 = vmatpush1.bf16.msra.mxu0 %v6340_v3  ;;  %1750 = vmatpush1.bf16.msra.mxu1 %v6341_v55  ;;  %v6351_v3 = vld [vmem:[#allocation41_spill] sm:$0xff]  ;;  %v6352_v55 = vld [vmem:[#allocation42_spill] sm:$0xff] }
 0x350   :  { %1710 = vmatprep.subr.bf16.mxu0 %v6342_v4  ;;  %1751 = vmatprep.subr.bf16.mxu1 %v6343_v9  ;;  %v6353_v4 = vld [vmem:[#allocation43_spill] sm:$0xff]  ;;  %v6354_v9 = vld [vmem:[#allocation44_spill] sm:$0xff] }
 0x353   :  { %1711 = vmatpush1.bf16.msra.mxu0 %v6344_v0  ;;  %1752 = vmatpush1.bf16.msra.mxu1 %v6345_v38  ;;  %v6355_v0 = vld [vmem:[#allocation45_spill] sm:$0xff]  ;;  %v6356_v38 = vld [vmem:[#allocation46_spill] sm:$0xff] }
 0x354   :  { %1712 = vmatprep.subr.bf16.mxu0 %v6346_v13  ;;  %1753 = vmatprep.subr.bf16.mxu1 %v6347_v14  ;;  %v6357_v13 = vld [vmem:[#allocation47_spill] sm:$0xff]  ;;  %v6358_v14 = vld [vmem:[#allocation48_spill] sm:$0xff] }
 0x357   :  { %1713 = vmatpush1.bf16.msra.mxu0 %v6348_v63  ;;  %1754 = vmatpush1.bf16.msra.mxu1 %v6349_v58  ;;  %v6359_v63 = vld [vmem:[#allocation49_spill] sm:$0xff]  ;;  %v6360_v58 = vld [vmem:[#allocation50_spill] sm:$0xff] }
 0x358   :  { %1714 = vmatprep.subr.bf16.mxu0 %v6350_v47  ;;  %1755 = vmatprep.subr.bf16.mxu1 %v6351_v3  ;;  %v6361_v47 = vld [vmem:[#allocation51_spill] sm:$0xff]  ;;  %v6362_v3 = vld [vmem:[#allocation52_spill] sm:$0xff] }
 0x35b   :  { %1715 = vmatpush1.bf16.msra.mxu0 %v6352_v55  ;;  %1756 = vmatpush1.bf16.msra.mxu1 %v6353_v4  ;;  %v6363_v55 = vld [vmem:[#allocation53_spill] sm:$0xff]  ;;  %v6364_v4 = vld [vmem:[#allocation54_spill] sm:$0xff] }
 0x35c   :  { %1716 = vmatprep.subr.bf16.mxu0 %v6354_v9  ;;  %1757 = vmatprep.subr.bf16.mxu1 %v6355_v0  ;;  %v6365_v9 = vld [vmem:[#allocation55_spill] sm:$0xff]  ;;  %v6366_v0 = vld [vmem:[#allocation56_spill] sm:$0xff] }
 0x35f   :  { %1717 = vmatpush1.bf16.msra.mxu0 %v6356_v38  ;;  %1758 = vmatpush1.bf16.msra.mxu1 %v6357_v13  ;;  %v6367_v38 = vld [vmem:[#allocation57_spill] sm:$0xff]  ;;  %v6368_v13 = vld [vmem:[#allocation58_spill] sm:$0xff] }
 0x360   :  { %1718 = vmatprep.subr.bf16.mxu0 %v6358_v14  ;;  %1759 = vmatprep.subr.bf16.mxu1 %v6359_v63  ;;  %v6369_v14 = vld [vmem:[#allocation59_spill] sm:$0xff]  ;;  %v6370_v63 = vld [vmem:[#allocation60_spill] sm:$0xff] }
 0x363   :  { %1719 = vmatpush1.bf16.msra.mxu0 %v6360_v58  ;;  %1760 = vmatpush1.bf16.msra.mxu1 %v6361_v47  ;;  %v6371_v58 = vld [vmem:[#allocation61_spill] sm:$0xff]  ;;  %v6372_v47 = vld [vmem:[#allocation62_spill] sm:$0xff] }
 0x364   :  { %1720 = vmatprep.subr.bf16.mxu0 %v6362_v3  ;;  %1761 = vmatprep.subr.bf16.mxu1 %v6363_v55  ;;  %v6373_v3 = vld [vmem:[#allocation63_spill] sm:$0xff]  ;;  %v6374_v55 = vld [vmem:[#allocation64_spill] sm:$0xff] }
 0x367   :  { %1721 = vmatpush1.bf16.msra.mxu0 %v6364_v4  ;;  %1762 = vmatpush1.bf16.msra.mxu1 %v6365_v9  ;;  %v6375_v4 = vld [vmem:[#allocation65_spill] sm:$0xff]  ;;  %v6376_v9 = vld [vmem:[#allocation66_spill] sm:$0xff] }
 0x368   :  { %1722 = vmatprep.subr.bf16.mxu0 %v6366_v0  ;;  %1763 = vmatprep.subr.bf16.mxu1 %v6367_v38  ;;  %v6377_v0 = vld [vmem:[#allocation67_spill] sm:$0xff]  ;;  %v6378_v38 = vld [vmem:[#allocation68_spill] sm:$0xff] }
 0x36b   :  { %1723 = vmatpush1.bf16.msra.mxu0 %v6368_v13  ;;  %1764 = vmatpush1.bf16.msra.mxu1 %v6369_v14  ;;  %v6379_v13 = vld [vmem:[#allocation69_spill] sm:$0xff]  ;;  %v6380_v14 = vld [vmem:[#allocation70_spill] sm:$0xff] }
 0x36c   :  { %1724 = vmatprep.subr.bf16.mxu0 %v6370_v63  ;;  %1765 = vmatprep.subr.bf16.mxu1 %v6371_v58  ;;  %v6381_v63 = vld [vmem:[#allocation71_spill] sm:$0xff]  ;;  %v6382_v58 = vld [vmem:[#allocation72_spill] sm:$0xff] }
 0x36f   :  { %1725 = vmatpush1.bf16.msra.mxu0 %v6372_v47  ;;  %1766 = vmatpush1.bf16.msra.mxu1 %v6373_v3  ;;  %v6383_v47 = vld [vmem:[#allocation73_spill] sm:$0xff]  ;;  %v6384_v3 = vld [vmem:[#allocation74_spill] sm:$0xff] }
 0x370   :  { %1726 = vmatprep.subr.bf16.mxu0 %v6374_v55  ;;  %1767 = vmatprep.subr.bf16.mxu1 %v6375_v4  ;;  %v6385_v55 = vld [vmem:[#allocation75_spill] sm:$0xff]  ;;  %v6386_v4 = vld [vmem:[#allocation76_spill] sm:$0xff] }
 0x373   :  { %1727 = vmatpush1.bf16.msra.mxu0 %v6376_v9  ;;  %1768 = vmatpush1.bf16.msra.mxu1 %v6377_v0  ;;  %v6387_v9 = vld [vmem:[#allocation77_spill] sm:$0xff] }
 0x374   :  { %1728 = vmatprep.subr.bf16.mxu0 %v6378_v38  ;;  %1769 = vmatprep.subr.bf16.mxu1 %v6379_v13 }
 0x377   :  { %1729 = vmatpush1.bf16.msra.mxu0 %v6380_v14  ;;  %1770 = vmatpush1.bf16.msra.mxu1 %v6381_v63 }
 0x378   :  { %1730 = vmatprep.subr.bf16.mxu0 %v6382_v58  ;;  %1771 = vmatprep.subr.bf16.mxu1 %v6383_v47  ;;  %v6388_v58 = vld [vmem:[#allocation140_spill] sm:$0xff]  ;;  %v6389_v47 = vld [vmem:[#allocation141_spill] sm:$0xff] }
 0x379   :  { %v1437_v26 = vmul.f32 %v1435_v17, %v6388_v58  ;;  %v1439_v57 = vmul.f32 %v1435_v17, %v6389_v47 }
 0x37b   :  { %1731 = vmatpush1.bf16.msra.mxu0 %v6384_v3  ;;  %1772 = vmatpush1.bf16.msra.mxu1 %v6385_v55  ;;  %v6390_v3 = vld [vmem:[#allocation142_spill] sm:$0xff]  ;;  %v6391_v55 = vld [vmem:[#allocation143_spill] sm:$0xff] }
 0x37c   :  { %1782 = vmatprep.subr.bf16.mxu0 %v6386_v4  ;;  %1823 = vmatprep.subr.bf16.mxu1 %v6387_v9  ;;  %v1438_v8 = vmul.f32 %v1435_v17, %v6390_v3  ;;  %v1440_v34 = vmul.f32 %v1435_v17, %v6391_v55  ;;  %v1445_v4 = vadd.f32 %v1437_v26, %v6289_v45  ;;  %v6392_v9 = vld [vmem:[#allocation145_spill] sm:$0xff] }
 0x37d   :  { %v1447_v31 = vadd.f32 %v1439_v57, %v6392_v9 }
 0x37e   :  { %v1446_v52 = vadd.f32 %v1438_v8, %v6393_v53  ;;  %v6395_v8 = vld [vmem:[#allocation148_spill] sm:$0xff] }
 0x37f   :  { %v1441_v53 = vmul.f32 %v1435_v17, %v6395_v8 }
 0x3d1   :  { %v1489_v0 = vpop.f32.mrb[16].mxu0  ;;  %v1530_v38 = vpop.f32.mrb[16].mxu1 }
 0x3d2   :  { %v1491_v42 = vpop.f32.mrb[17].mxu0  ;;  %v1532_v13 = vpop.f32.mrb[17].mxu1 }
 0x3d3   :  { %v1493_v16 = vpop.f32.mrb[18].mxu0  ;;  %v1534_v14 = vpop.f32.mrb[18].mxu1 }
 0x3d4   :  { %v1494_v48 = vpop.f32.mrb[19].mxu0  ;;  %v1535_v63 = vpop.f32.mrb[19].mxu1  ;;  %v1448_v16 = vadd.f32 %v1440_v34, %v6394_v54  ;;  %v1619_v14 = vadd.f32 %v1489_v0, %v1445_v4  ;;  %v6396_v34 = vld [vmem:[#allocation149_spill] sm:$0xff] }
 0x3d5   :  { %v1621_v48 = vadd.f32 %v1530_v38, %v1447_v31  ;;  %v1620_v63 = vadd.f32 %v1491_v42, %v1446_v52  ;;  %v1443_v4 = vmul.f32 %v1435_v17, %v6396_v34  ;;  %v6397_v42 = vld [vmem:[#allocation150_spill] sm:$0xff]  ;;  %v1444_v52 = vmul.f32 %v1435_v17, %v4613_v61 }
 0x3d6   :  { %v1622_v46 = vadd.f32 %v1532_v13, %v1448_v16  ;;  %v3347_v24 = vmul.f32 -1.442695, %v1619_v14  ;;  %v1442_v13 = vmul.f32 %v1435_v17, %v6397_v42 }
 0x3d7   :  { %v3349_v58 = vmul.f32 -1.442695, %v1621_v48  ;;  %v3348_v51 = vmul.f32 -1.442695, %v1620_v63  ;;  %v1452_v16 = vadd.f32 %v1444_v52, %v4625_v25 }
 0x3d8   :  { %v3350_v47 = vmul.f32 -1.442695, %v1622_v46  ;;  %3688 = vpow2.f32 %v3347_v24 }
 0x3d9   :  { %3690 = vpow2.f32 %v3349_v58  ;;  %v1449_v58 = vadd.f32 %v1441_v53, %v6293_v19 }
 0x3da   :  { %3692 = vpow2.f32 %v3348_v51 }
 0x3db   :  { %3694 = vpow2.f32 %v3350_v47  ;;  %v6398_v47 = vld [vmem:[#allocation152_spill] sm:$0xff] }
 0x3dc   :  { %v1451_v51 = vadd.f32 %v1443_v4, %v6398_v47 }
 0x3e2   :  { %v3689_v55 = vpop.eup %3688 }
 0x3e3   :  { %v3691_v26 = vpop.eup %3690  ;;  %v1645_v9 = vadd.f32 1.0, %v3689_v55  ;;  %v1450_v55 = vadd.f32 %v1442_v13, %v4622_v49 }
 0x3e4   :  { %v3693_v45 = vpop.eup %3692  ;;  %v1647_v0 = vadd.f32 1.0, %v3691_v26 }
 0x3e5   :  { %v3695_v57 = vpop.eup %3694  ;;  %v1646_v31 = vadd.f32 1.0, %v3693_v45  ;;  %3696 = vrcp.f32 %v1645_v9 }
 0x3e6   :  { %v1648_v46 = vadd.f32 1.0, %v3695_v57  ;;  %3698 = vrcp.f32 %v1647_v0 }
 0x3e7   :  { %3700 = vrcp.f32 %v1646_v31 }
 0x3e8   :  { %3702 = vrcp.f32 %v1648_v46 }
 0x3ef   :  { %v3697_v13 = vpop.eup %3696 }
 0x3f0   :  { %v3699_v52 = vpop.eup %3698 }
 0x3f1   :  { %v3701_v31 = vpop.eup %3700  ;;  %v1665_v46 = vmul.f32 %v3699_v52, %v4801_v27  ;;  %v6400_v52 = vld [vmem:[#allocation98_spill] sm:$0xff] }
 0x411   :  { %v1571_v24 = vpop.f32.mrb[20].mxu0  ;;  %v1612_v38 = vpop.f32.mrb[20].mxu1 }
 0x412   :  { %v1623_v14 = vadd.f32 %v1571_v24, %v1449_v58  ;;  %v1625_v48 = vadd.f32 %v1612_v38, %v1451_v51  ;;  %v1573_v63 = vpop.f32.mrb[21].mxu0  ;;  %v1614_v26 = vpop.f32.mrb[21].mxu1 }
 0x413   :  { %v1624_v45 = vadd.f32 %v1573_v63, %v1450_v55  ;;  %v1626_v17 = vadd.f32 %v1614_v26, %v1452_v16  ;;  %v1575_v9 = vpop.f32.mrb[22].mxu0  ;;  %v1616_v57 = vpop.f32.mrb[22].mxu1 }
 0x414   :  { %v3351_v53 = vmul.f32 -1.442695, %v1623_v14  ;;  %3704 = vtanh.f32 %v1625_v48  ;;  %v1576_v4 = vpop.f32.mrb[23].mxu0  ;;  %v1617_v0 = vpop.f32.mrb[23].mxu1 }
 0x415   :  { %v3352_v47 = vmul.f32 -1.442695, %v1624_v45  ;;  %3706 = vtanh.f32 %v1626_v17  ;;  %v3703_v58 = vpop.eup %3702 }
 0x416   :  { %3708 = vpow2.f32 %v3351_v53  ;;  %v1666_v16 = vmul.f32 %v3703_v58, %v4803_v29  ;;  %v6402_v58 = vld [vmem:[#allocation100_spill] sm:$0xff] }
 0x417   :  { %3710 = vpow2.f32 %v3352_v47 }
 0x41e   :  { %v3705_v51 = vpop.eup %3704 }
 0x41f   :  { %v3707_v24 = vpop.eup %3706  ;;  %v1667_v38 = vmul.f32 %v3705_v51, %v3697_v13  ;;  %v6399_v13 = vld [vmem:[#allocation97_spill] sm:$0xff] }
 0x420   :  { %v3709_v55 = vpop.eup %3708  ;;  %v1668_v14 = vmul.f32 %v3707_v24, %v3701_v31  ;;  %v6401_v31 = vld [vmem:[#allocation99_spill] sm:$0xff]  ;;  %v6403_v51 = vld [vmem:[#allocation101_spill] sm:$0xff]  ;;  %v6404_v24 = vld [vmem:[#allocation102_spill] sm:$0xff] }
 0x421   :  { %v3711_v48 = vpop.eup %3710  ;;  %v1649_v63 = vadd.f32 1.0, %v3709_v55  ;;  %v4959_v26 = vadd.f32 %v1667_v38, %v1665_v46  ;;  %v6405_v46 = vld [vmem:[#allocation103_spill] sm:$0xff]  ;;  %v6407_v55 = vld [vmem:[#allocation117_spill] sm:$0xff] }
 0x422   :  { %v1650_v45 = vadd.f32 1.0, %v3711_v48  ;;  %v4961_v17 = vadd.f32 %v1668_v14, %v1666_v16  ;;  %v6406_v38 = vld [vmem:[#allocation107_spill] sm:$0xff]  ;;  %v6408_v16 = vld [vmem:[#allocation118_spill] sm:$0xff]  ;;  %v6410_v48 = vld [vmem:[#allocation120_spill] sm:$0xff] }
 0x423   :  { %3712 = vrcp.f32 %v1649_v63  ;;  %v6409_v14 = vld [vmem:[#allocation119_spill] sm:$0xff]  ;;  %v6411_v63 = vld [vmem:[#allocation121_spill] sm:$0xff] }
 0x424   :  { %3714 = vtanh.f32 %v4959_v26 }
 0x425   :  { %3716 = vrcp.f32 %v1650_v45  ;;  %v6412_v45 = vld [vmem:[#allocation122_spill] sm:$0xff] }
 0x426   :  { %3718 = vtanh.f32 %v4961_v17 }
 0x42d   :  { %v3713_v47 = vpop.eup %3712 }
 0x42e   :  { %v3715_v27 = vpop.eup %3714 }
 0x42f   :  { %v3717_v9 = vpop.eup %3716  ;;  %v1673_v53 = vmul.f32 %v3715_v27, %v3713_v47  ;;  %v6413_v47 = vld [vmem:[#allocation123_spill] sm:$0xff]  ;;  %v6414_v27 = vld [vmem:[#allocation124_spill] sm:$0xff] }
 0x430   :  { %v3719_v57 = vpop.eup %3718 }
 0x431   :  { %v1674_v29 = vmul.f32 %v3719_v57, %v3717_v9  ;;  %v4965_v0 = vpack.c.bf16 %v1673_v53, %v1673_v53  ;;  %v6415_v9 = vld [vmem:[#allocation125_spill] sm:$0xff]  ;;  %v6416_v57 = vld [vmem:[#allocation126_spill] sm:$0xff]  ;;  %v6417_v53 = vld [vmem:[#allocation127_spill] sm:$0xff] }
 0x433   :  { %v1699_v4 = vpack.c.bf16 %v1674_v29, %v1674_v29  ;;  %v6418_v29 = vld [vmem:[#allocation128_spill] sm:$0xff] }
 0x435   :  { %1732 = vmatprep.mubr.bf16.mxu0 %v1699_v4  ;;  %1773 = vmatprep.mubr.bf16.mxu1 %v1699_v4 }
 0x436   :  { %1733 = vmatmul.mubr.bf16.vlgmr.msra.gmra.mrb[24].mxu0 %v4965_v0  ;;  %1774 = vmatmul.mubr.bf16.vlgmr.msra.gmra.mrb[24].mxu1 %v4965_v0 }
 0x437   :  { %1783 = vmatpush1.bf16.msra.mxu0 %v6192_v56  ;;  %1824 = vmatpush1.bf16.msra.mxu1 %v6193_v2 }
 0x438   :  { %1814 = vmatprep.mubr.bf16.mxu0 %v1699_v4  ;;  %1855 = vmatprep.mubr.bf16.mxu1 %v1699_v4  ;;  %v6419_v4 = vld [vmem:[#allocation129_spill] sm:$0xff] }
 0x439   :  { %1784 = vmatprep.subr.bf16.mxu0 %v6194_v40  ;;  %1825 = vmatprep.subr.bf16.mxu1 %v6195_v23 }
 0x43b   :  { %1785 = vmatpush1.bf16.msra.mxu0 %v6196_v5  ;;  %1826 = vmatpush1.bf16.msra.mxu1 %v6197_v59 }
 0x43c   :  { %1786 = vmatprep.subr.bf16.mxu0 %v6198_v50  ;;  %1827 = vmatprep.subr.bf16.mxu1 %v6199_v1 }
 0x43f   :  { %1787 = vmatpush1.bf16.msra.mxu0 %v6200_v41  ;;  %1828 = vmatpush1.bf16.msra.mxu1 %v6295_v32 }
 0x440   :  { %1788 = vmatprep.subr.bf16.mxu0 %v6296_v35  ;;  %1829 = vmatprep.subr.bf16.mxu1 %v6297_v21 }
 0x443   :  { %1789 = vmatpush1.bf16.msra.mxu0 %v6298_v15  ;;  %1830 = vmatpush1.bf16.msra.mxu1 %v6299_v60 }
 0x444   :  { %1790 = vmatprep.subr.bf16.mxu0 %v6300_v28  ;;  %1831 = vmatprep.subr.bf16.mxu1 %v6301_v36 }
 0x447   :  { %1791 = vmatpush1.bf16.msra.mxu0 %v6302_v22  ;;  %1832 = vmatpush1.bf16.msra.mxu1 %v6303_v62 }
 0x448   :  { %1792 = vmatprep.subr.bf16.mxu0 %v6304_v7  ;;  %1833 = vmatprep.subr.bf16.mxu1 %v6399_v13 }
 0x44b   :  { %1793 = vmatpush1.bf16.msra.mxu0 %v6400_v52  ;;  %1834 = vmatpush1.bf16.msra.mxu1 %v6401_v31 }
 0x44c   :  { %1794 = vmatprep.subr.bf16.mxu0 %v6402_v58  ;;  %1835 = vmatprep.subr.bf16.mxu1 %v6403_v51 }
 0x44f   :  { %1795 = vmatpush1.bf16.msra.mxu0 %v6404_v24  ;;  %1836 = vmatpush1.bf16.msra.mxu1 %v6405_v46 }
 0x450   :  { %1796 = vmatprep.subr.bf16.mxu0 %v6312_v37  ;;  %1837 = vmatprep.subr.bf16.mxu1 %v6313_v43 }
 0x453   :  { %1797 = vmatpush1.bf16.msra.mxu0 %v6314_v33  ;;  %1838 = vmatpush1.bf16.msra.mxu1 %v6406_v38 }
 0x454   :  { %1798 = vmatprep.subr.bf16.mxu0 %v6316_v6  ;;  %1839 = vmatprep.subr.bf16.mxu1 %v6317_v44  ;;  %v6501_v44 = vld [vmem:[#allocation146_spill] sm:$0xff] }
 0x457   :  { %1799 = vmatpush1.bf16.msra.mxu0 %v6318_v11  ;;  %1840 = vmatpush1.bf16.msra.mxu1 %v6319_v20 }
 0x458   :  { %1800 = vmatprep.subr.bf16.mxu0 %v6320_v10  ;;  %1841 = vmatprep.subr.bf16.mxu1 %v6321_v12 }
 0x45b   :  { %1801 = vmatpush1.bf16.msra.mxu0 %v6322_v30  ;;  %1842 = vmatpush1.bf16.msra.mxu1 %v6229_v18 }
 0x45c   :  { %1802 = vmatprep.subr.bf16.mxu0 %v6230_v39  ;;  %1843 = vmatprep.subr.bf16.mxu1 %v6407_v55  ;;  %v1680_v39 = vpop.permute.xlu1 %1679 }
 0x45f   :  { %1803 = vmatpush1.bf16.msra.mxu0 %v6408_v16  ;;  %1844 = vmatpush1.bf16.msra.mxu1 %v6409_v14  ;;  %v6420_v14 = vld [vmem:[#allocation130_spill] sm:$0xff] }
 0x460   :  { %1804 = vmatprep.subr.bf16.mxu0 %v6410_v48  ;;  %1845 = vmatprep.subr.bf16.mxu1 %v6411_v63  ;;  %v6421_v48 = vld [vmem:[#allocation131_spill] sm:$0xff]  ;;  %v6422_v63 = vld [vmem:[#allocation132_spill] sm:$0xff] }
 0x463   :  { %1805 = vmatpush1.bf16.msra.mxu0 %v6412_v45  ;;  %1846 = vmatpush1.bf16.msra.mxu1 %v6413_v47  ;;  %v6423_v45 = vld [vmem:[#allocation133_spill] sm:$0xff]  ;;  %v6424_v47 = vld [vmem:[#allocation134_spill] sm:$0xff] }
 0x464   :  { %1806 = vmatprep.subr.bf16.mxu0 %v6414_v27  ;;  %1847 = vmatprep.subr.bf16.mxu1 %v6415_v9  ;;  %v6425_v27 = vld [vmem:[#allocation135_spill] sm:$0xff]  ;;  %v6426_v9 = vld [vmem:[#allocation136_spill] sm:$0xff] }
 0x467   :  { %1807 = vmatpush1.bf16.msra.mxu0 %v6416_v57  ;;  %1848 = vmatpush1.bf16.msra.mxu1 %v6417_v53  ;;  %v6427_v57 = vld [vmem:[#allocation137_spill] sm:$0xff]  ;;  %v6428_v53 = vld [vmem:[#allocation138_spill] sm:$0xff] }
 0x468   :  { %1808 = vmatprep.subr.bf16.mxu0 %v6418_v29  ;;  %1849 = vmatprep.subr.bf16.mxu1 %v6419_v4  ;;  %v6429_v29 = vld [vmem:[#allocation139_spill] sm:$0xff]  ;;  %v6430_v4 = vld [vmem:[#allocation12_spill] sm:$0xff] }
 0x46b   :  { %1809 = vmatpush1.bf16.msra.mxu0 %v6420_v14  ;;  %1850 = vmatpush1.bf16.msra.mxu1 %v6421_v48  ;;  %v6431_v14 = vld [vmem:[#allocation14_spill] sm:$0xff] }
 0x46c   :  { %1810 = vmatprep.subr.bf16.mxu0 %v6422_v63  ;;  %1851 = vmatprep.subr.bf16.mxu1 %v6423_v45  ;;  %v6432_v45 = vld [vmem:[#allocation13_spill] sm:$0xff]  ;;  %v6441_v63 = vld [vmem:[#allocation23_spill] sm:$0xff] }
 0x46f   :  { %1811 = vmatpush1.bf16.msra.mxu0 %v6424_v47  ;;  %1852 = vmatpush1.bf16.msra.mxu1 %v6425_v27  ;;  %v6433_v47 = vld [vmem:[#allocation15_spill] sm:$0xff]  ;;  %v6434_v27 = vld [vmem:[#allocation16_spill] sm:$0xff] }
 0x470   :  { %1812 = vmatprep.subr.bf16.mxu0 %v6426_v9  ;;  %1853 = vmatprep.subr.bf16.mxu1 %v6427_v57  ;;  %v6435_v9 = vld [vmem:[#allocation17_spill] sm:$0xff]  ;;  %v6436_v57 = vld [vmem:[#allocation18_spill] sm:$0xff] }
 0x473   :  { %1813 = vmatpush1.bf16.msra.mxu0 %v6428_v53  ;;  %1854 = vmatpush1.bf16.msra.mxu1 %v6429_v29  ;;  %v6437_v53 = vld [vmem:[#allocation19_spill] sm:$0xff]  ;;  %v6438_v29 = vld [vmem:[#allocation20_spill] sm:$0xff] }
 0x474   :  { %1945 = vmatprep.subr.bf16.mxu0 %v6430_v4  ;;  %1986 = vmatprep.subr.bf16.mxu1 %v6431_v14  ;;  %v6439_v4 = vld [vmem:[#allocation21_spill] sm:$0xff]  ;;  %v6440_v14 = vld [vmem:[#allocation22_spill] sm:$0xff] }
 0x476   :  { %1815 = vmatmul.mubr.bf16.vlgmr.msra.gmra.mrb[28].mxu0 %v4965_v0  ;;  %1856 = vmatmul.mubr.bf16.vlgmr.msra.gmra.mrb[28].mxu1 %v4965_v0  ;;  %v6442_v0 = vld [vmem:[#allocation24_spill] sm:$0xff] }
 0x477   :  { %1946 = vmatpush1.bf16.msra.mxu0 %v6432_v45  ;;  %1987 = vmatpush1.bf16.msra.mxu1 %v6433_v47  ;;  %v6443_v45 = vld [vmem:[#allocation25_spill] sm:$0xff]  ;;  %v6444_v47 = vld [vmem:[#allocation26_spill] sm:$0xff] }
 0x478   :  { %1947 = vmatprep.subr.bf16.mxu0 %v6434_v27  ;;  %1988 = vmatprep.subr.bf16.mxu1 %v6435_v9  ;;  %v6445_v27 = vld [vmem:[#allocation27_spill] sm:$0xff]  ;;  %v6446_v9 = vld [vmem:[#allocation28_spill] sm:$0xff] }
 0x47b   :  { %1948 = vmatpush1.bf16.msra.mxu0 %v6436_v57  ;;  %1989 = vmatpush1.bf16.msra.mxu1 %v6437_v53  ;;  %v6447_v57 = vld [vmem:[#allocation29_spill] sm:$0xff]  ;;  %v6448_v53 = vld [vmem:[#allocation30_spill] sm:$0xff] }
 0x47c   :  { %1949 = vmatprep.subr.bf16.mxu0 %v6438_v29  ;;  %1990 = vmatprep.subr.bf16.mxu1 %v6439_v4  ;;  %v6449_v29 = vld [vmem:[#allocation31_spill] sm:$0xff]  ;;  %v6450_v4 = vld [vmem:[#allocation32_spill] sm:$0xff] }
 0x47f   :  { %1950 = vmatpush1.bf16.msra.mxu0 %v6440_v14  ;;  %1991 = vmatpush1.bf16.msra.mxu1 %v6441_v63  ;;  %v6451_v14 = vld [vmem:[#allocation33_spill] sm:$0xff]  ;;  %v6452_v63 = vld [vmem:[#allocation34_spill] sm:$0xff] }
 0x480   :  { %1951 = vmatprep.subr.bf16.mxu0 %v6442_v0  ;;  %1992 = vmatprep.subr.bf16.mxu1 %v6443_v45  ;;  %v6453_v0 = vld [vmem:[#allocation35_spill] sm:$0xff]  ;;  %v6454_v45 = vld [vmem:[#allocation36_spill] sm:$0xff] }
 0x483   :  { %1952 = vmatpush1.bf16.msra.mxu0 %v6444_v47  ;;  %1993 = vmatpush1.bf16.msra.mxu1 %v6445_v27  ;;  %v6455_v47 = vld [vmem:[#allocation37_spill] sm:$0xff]  ;;  %v6456_v27 = vld [vmem:[#allocation38_spill] sm:$0xff] }
 0x484   :  { %1953 = vmatprep.subr.bf16.mxu0 %v6446_v9  ;;  %1994 = vmatprep.subr.bf16.mxu1 %v6447_v57  ;;  %v6457_v9 = vld [vmem:[#allocation39_spill] sm:$0xff]  ;;  %v6458_v57 = vld [vmem:[#allocation40_spill] sm:$0xff] }
 0x487   :  { %1954 = vmatpush1.bf16.msra.mxu0 %v6448_v53  ;;  %1995 = vmatpush1.bf16.msra.mxu1 %v6449_v29  ;;  %v6459_v53 = vld [vmem:[#allocation41_spill] sm:$0xff]  ;;  %v6460_v29 = vld [vmem:[#allocation42_spill] sm:$0xff] }
 0x488   :  { %1955 = vmatprep.subr.bf16.mxu0 %v6450_v4  ;;  %1996 = vmatprep.subr.bf16.mxu1 %v6451_v14  ;;  %v6461_v4 = vld [vmem:[#allocation43_spill] sm:$0xff]  ;;  %v6462_v14 = vld [vmem:[#allocation44_spill] sm:$0xff] }
 0x48b   :  { %1956 = vmatpush1.bf16.msra.mxu0 %v6452_v63  ;;  %1997 = vmatpush1.bf16.msra.mxu1 %v6453_v0  ;;  %v6463_v63 = vld [vmem:[#allocation45_spill] sm:$0xff]  ;;  %v6464_v0 = vld [vmem:[#allocation46_spill] sm:$0xff] }
 0x48c   :  { %1957 = vmatprep.subr.bf16.mxu0 %v6454_v45  ;;  %1998 = vmatprep.subr.bf16.mxu1 %v6455_v47  ;;  %v6465_v45 = vld [vmem:[#allocation47_spill] sm:$0xff]  ;;  %v6466_v47 = vld [vmem:[#allocation48_spill] sm:$0xff] }
 0x48f   :  { %1958 = vmatpush1.bf16.msra.mxu0 %v6456_v27  ;;  %1999 = vmatpush1.bf16.msra.mxu1 %v6457_v9  ;;  %v6467_v27 = vld [vmem:[#allocation49_spill] sm:$0xff]  ;;  %v6468_v9 = vld [vmem:[#allocation50_spill] sm:$0xff] }
 0x490   :  { %1959 = vmatprep.subr.bf16.mxu0 %v6458_v57  ;;  %2000 = vmatprep.subr.bf16.mxu1 %v6459_v53  ;;  %v6469_v57 = vld [vmem:[#allocation51_spill] sm:$0xff]  ;;  %v6470_v53 = vld [vmem:[#allocation52_spill] sm:$0xff] }
 0x493   :  { %1960 = vmatpush1.bf16.msra.mxu0 %v6460_v29  ;;  %2001 = vmatpush1.bf16.msra.mxu1 %v6461_v4  ;;  %v6471_v29 = vld [vmem:[#allocation53_spill] sm:$0xff]  ;;  %v6472_v4 = vld [vmem:[#allocation54_spill] sm:$0xff] }
 0x494   :  { %1961 = vmatprep.subr.bf16.mxu0 %v6462_v14  ;;  %2002 = vmatprep.subr.bf16.mxu1 %v6463_v63  ;;  %v6473_v14 = vld [vmem:[#allocation55_spill] sm:$0xff]  ;;  %v6474_v63 = vld [vmem:[#allocation56_spill] sm:$0xff] }
 0x497   :  { %1962 = vmatpush1.bf16.msra.mxu0 %v6464_v0  ;;  %2003 = vmatpush1.bf16.msra.mxu1 %v6465_v45  ;;  %v6475_v0 = vld [vmem:[#allocation57_spill] sm:$0xff]  ;;  %v6476_v45 = vld [vmem:[#allocation58_spill] sm:$0xff] }
 0x498   :  { %1963 = vmatprep.subr.bf16.mxu0 %v6466_v47  ;;  %2004 = vmatprep.subr.bf16.mxu1 %v6467_v27  ;;  %v6477_v47 = vld [vmem:[#allocation59_spill] sm:$0xff]  ;;  %v6478_v27 = vld [vmem:[#allocation60_spill] sm:$0xff] }
 0x49b   :  { %1964 = vmatpush1.bf16.msra.mxu0 %v6468_v9  ;;  %2005 = vmatpush1.bf16.msra.mxu1 %v6469_v57  ;;  %v6479_v9 = vld [vmem:[#allocation61_spill] sm:$0xff]  ;;  %v6480_v57 = vld [vmem:[#allocation62_spill] sm:$0xff] }
 0x49c   :  { %1965 = vmatprep.subr.bf16.mxu0 %v6470_v53  ;;  %2006 = vmatprep.subr.bf16.mxu1 %v6471_v29  ;;  %v6481_v53 = vld [vmem:[#allocation63_spill] sm:$0xff]  ;;  %v6482_v29 = vld [vmem:[#allocation64_spill] sm:$0xff] }
 0x49f   :  { %1966 = vmatpush1.bf16.msra.mxu0 %v6472_v4  ;;  %2007 = vmatpush1.bf16.msra.mxu1 %v6473_v14  ;;  %v6483_v4 = vld [vmem:[#allocation65_spill] sm:$0xff]  ;;  %v6484_v14 = vld [vmem:[#allocation66_spill] sm:$0xff] }
 0x4a0   :  { %1967 = vmatprep.subr.bf16.mxu0 %v6474_v63  ;;  %2008 = vmatprep.subr.bf16.mxu1 %v6475_v0  ;;  %v6485_v63 = vld [vmem:[#allocation67_spill] sm:$0xff]  ;;  %v6486_v0 = vld [vmem:[#allocation68_spill] sm:$0xff] }
 0x4a3   :  { %1968 = vmatpush1.bf16.msra.mxu0 %v6476_v45  ;;  %2009 = vmatpush1.bf16.msra.mxu1 %v6477_v47  ;;  %v6487_v45 = vld [vmem:[#allocation69_spill] sm:$0xff]  ;;  %v6488_v47 = vld [vmem:[#allocation70_spill] sm:$0xff] }
 0x4a4   :  { %1969 = vmatprep.subr.bf16.mxu0 %v6478_v27  ;;  %2010 = vmatprep.subr.bf16.mxu1 %v6479_v9  ;;  %v6489_v27 = vld [vmem:[#allocation71_spill] sm:$0xff]  ;;  %v6490_v9 = vld [vmem:[#allocation72_spill] sm:$0xff] }
 0x4a7   :  { %1970 = vmatpush1.bf16.msra.mxu0 %v6480_v57  ;;  %2011 = vmatpush1.bf16.msra.mxu1 %v6481_v53  ;;  %v6491_v57 = vld [vmem:[#allocation73_spill] sm:$0xff]  ;;  %v6492_v53 = vld [vmem:[#allocation74_spill] sm:$0xff] }
 0x4a8   :  { %1971 = vmatprep.subr.bf16.mxu0 %v6482_v29  ;;  %2012 = vmatprep.subr.bf16.mxu1 %v6483_v4  ;;  %v6493_v29 = vld [vmem:[#allocation75_spill] sm:$0xff]  ;;  %v6494_v4 = vld [vmem:[#allocation76_spill] sm:$0xff] }
 0x4ab   :  { %1972 = vmatpush1.bf16.msra.mxu0 %v6484_v14  ;;  %2013 = vmatpush1.bf16.msra.mxu1 %v6485_v63  ;;  %v6495_v14 = vld [vmem:[#allocation77_spill] sm:$0xff] }
 0x4ac   :  { %1973 = vmatprep.subr.bf16.mxu0 %v6486_v0  ;;  %2014 = vmatprep.subr.bf16.mxu1 %v6487_v45 }
 0x4af   :  { %1974 = vmatpush1.bf16.msra.mxu0 %v6488_v47  ;;  %2015 = vmatpush1.bf16.msra.mxu1 %v6489_v27 }
 0x4b0   :  { %1975 = vmatprep.subr.bf16.mxu0 %v6490_v9  ;;  %2016 = vmatprep.subr.bf16.mxu1 %v6491_v57  ;;  %v6496_v9 = vld [vmem:[#allocation140_spill] sm:$0xff]  ;;  %v6497_v57 = vld [vmem:[#allocation141_spill] sm:$0xff] }
 0x4b1   :  { %v1682_v18 = vmul.f32 %v1680_v39, %v6496_v9  ;;  %v1684_v30 = vmul.f32 %v1680_v39, %v6497_v57 }
 0x4b3   :  { %1976 = vmatpush1.bf16.msra.mxu0 %v6492_v53  ;;  %2017 = vmatpush1.bf16.msra.mxu1 %v6493_v29  ;;  %v1683_v53 = vmul.f32 %v1680_v39, %v6390_v3  ;;  %v6498_v29 = vld [vmem:[#allocation143_spill] sm:$0xff] }
 0x4b4   :  { %2027 = vmatprep.subr.bf16.mxu0 %v6494_v4  ;;  %2068 = vmatprep.subr.bf16.mxu1 %v6495_v14  ;;  %v1685_v12 = vmul.f32 %v1680_v39, %v6498_v29  ;;  %v6499_v4 = vld [vmem:[#allocation144_spill] sm:$0xff]  ;;  %v6500_v14 = vld [vmem:[#allocation145_spill] sm:$0xff] }
 0x4b5   :  { %v1690_v10 = vadd.f32 %v1682_v18, %v6499_v4  ;;  %v1692_v20 = vadd.f32 %v1684_v30, %v6500_v14  ;;  %v1691_v6 = vadd.f32 %v1683_v53, %v6501_v44 }
 0x509   :  { %v1734_v63 = vpop.f32.mrb[24].mxu0  ;;  %v1775_v0 = vpop.f32.mrb[24].mxu1 }
 0x50a   :  { %v1736_v48 = vpop.f32.mrb[25].mxu0  ;;  %v1777_v45 = vpop.f32.mrb[25].mxu1  ;;  %v1864_v11 = vadd.f32 %v1734_v63, %v1690_v10  ;;  %v1686_v63 = vmul.f32 %v1680_v39, %v6395_v8 }
 0x50b   :  { %v1738_v16 = vpop.f32.mrb[26].mxu0  ;;  %v1779_v47 = vpop.f32.mrb[26].mxu1 }
 0x50c   :  { %v1739_v55 = vpop.f32.mrb[27].mxu0  ;;  %v1780_v27 = vpop.f32.mrb[27].mxu1  ;;  %v1866_v16 = vadd.f32 %v1775_v0, %v1692_v20  ;;  %v1865_v47 = vadd.f32 %v1736_v48, %v1691_v6  ;;  %v3354_v38 = vmul.f32 -1.442695, %v1864_v11  ;;  %v1688_v20 = vmul.f32 %v1680_v39, %v6396_v34 }
 0x50d   :  { %v1693_v55 = vadd.f32 %v1685_v12, %v6394_v54  ;;  %v1687_v6 = vmul.f32 %v1680_v39, %v6397_v42  ;;  %v1689_v11 = vmul.f32 %v1680_v39, %v4613_v61 }
 0x50e   :  { %v3356_v9 = vmul.f32 -1.442695, %v1866_v16  ;;  %v3355_v33 = vmul.f32 -1.442695, %v1865_v47  ;;  %3720 = vpow2.f32 %v3354_v38  ;;  %v6502_v38 = vld [vmem:[#allocation152_spill] sm:$0xff] }
 0x50f   :  { %v1867_v27 = vadd.f32 %v1777_v45, %v1693_v55  ;;  %v1697_v0 = vadd.f32 %v1689_v11, %v4625_v25 }
 0x510   :  { %3722 = vpow2.f32 %v3356_v9  ;;  %v1696_v9 = vadd.f32 %v1688_v20, %v6502_v38 }
 0x511   :  { %v3357_v57 = vmul.f32 -1.442695, %v1867_v27  ;;  %3724 = vpow2.f32 %v3355_v33  ;;  %v1694_v33 = vadd.f32 %v1686_v63, %v6293_v19 }
 0x513   :  { %3726 = vpow2.f32 %v3357_v57 }
 0x518   :  { %v3721_v29 = vpop.eup %3720 }
 0x519   :  { %v1890_v10 = vadd.f32 1.0, %v3721_v29  ;;  %v1695_v29 = vadd.f32 %v1687_v6, %v4622_v49 }
 0x51a   :  { %v3723_v18 = vpop.eup %3722 }
 0x51b   :  { %v3725_v4 = vpop.eup %3724  ;;  %v1892_v12 = vadd.f32 1.0, %v3723_v18  ;;  %3728 = vrcp.f32 %v1890_v10 }
 0x51c   :  { %v1891_v48 = vadd.f32 1.0, %v3725_v4 }
 0x51d   :  { %v3727_v30 = vpop.eup %3726  ;;  %3730 = vrcp.f32 %v1892_v12 }
 0x51e   :  { %v1893_v45 = vadd.f32 1.0, %v3727_v30  ;;  %3732 = vrcp.f32 %v1891_v48 }
 0x520   :  { %3734 = vrcp.f32 %v1893_v45 }
 0x525   :  { %v3729_v6 = vpop.eup %3728 }
 0x527   :  { %v3731_v11 = vpop.eup %3730 }
 0x528   :  { %v3733_v48 = vpop.eup %3732  ;;  %v1910_v45 = vmul.f32 %v3731_v11, %v4959_v26  ;;  %v6504_v11 = vld [vmem:[#allocation107_spill] sm:$0xff] }
 0x549   :  { %v1816_v57 = vpop.f32.mrb[28].mxu0  ;;  %v1857_v53 = vpop.f32.mrb[28].mxu1 }
 0x54a   :  { %v1868_v16 = vadd.f32 %v1816_v57, %v1694_v33  ;;  %v1870_v55 = vadd.f32 %v1857_v53, %v1696_v9  ;;  %v1818_v47 = vpop.f32.mrb[29].mxu0  ;;  %v1859_v27 = vpop.f32.mrb[29].mxu1 }
 0x54b   :  { %v1869_v39 = vadd.f32 %v1818_v47, %v1695_v29  ;;  %v1871_v4 = vadd.f32 %v1859_v27, %v1697_v0  ;;  %v1820_v18 = vpop.f32.mrb[30].mxu0  ;;  %v1861_v30 = vpop.f32.mrb[30].mxu1 }
 0x54c   :  { %v3358_v10 = vmul.f32 -1.442695, %v1868_v16  ;;  %3736 = vtanh.f32 %v1870_v55  ;;  %v1821_v63 = vpop.f32.mrb[31].mxu0  ;;  %v1862_v20 = vpop.f32.mrb[31].mxu1 }
 0x54d   :  { %v3359_v12 = vmul.f32 -1.442695, %v1869_v39  ;;  %3738 = vtanh.f32 %v1871_v4  ;;  %v3735_v33 = vpop.eup %3734 }
 0x54e   :  { %3740 = vpow2.f32 %v3358_v10  ;;  %v1911_v0 = vmul.f32 %v3735_v33, %v4961_v17  ;;  %v6506_v33 = vld [vmem:[#allocation109_spill] sm:$0xff] }
 0x54f   :  { %3742 = vpow2.f32 %v3359_v12 }
 0x556   :  { %v3737_v9 = vpop.eup %3736 }
 0x557   :  { %v3739_v57 = vpop.eup %3738  ;;  %v1912_v53 = vmul.f32 %v3737_v9, %v3729_v6  ;;  %v6503_v6 = vld [vmem:[#allocation106_spill] sm:$0xff] }
 0x558   :  { %v3741_v29 = vpop.eup %3740  ;;  %v1913_v16 = vmul.f32 %v3739_v57, %v3733_v48  ;;  %v6505_v48 = vld [vmem:[#allocation108_spill] sm:$0xff]  ;;  %v6507_v9 = vld [vmem:[#allocation110_spill] sm:$0xff]  ;;  %v6508_v57 = vld [vmem:[#allocation111_spill] sm:$0xff] }
 0x559   :  { %v3743_v55 = vpop.eup %3742  ;;  %v1894_v47 = vadd.f32 1.0, %v3741_v29  ;;  %v5117_v27 = vadd.f32 %v1912_v53, %v1910_v45  ;;  %v6509_v45 = vld [vmem:[#allocation112_spill] sm:$0xff]  ;;  %v6510_v53 = vld [vmem:[#allocation113_spill] sm:$0xff]  ;;  %v6511_v29 = vld [vmem:[#allocation114_spill] sm:$0xff] }
 0x55a   :  { %v1895_v39 = vadd.f32 1.0, %v3743_v55  ;;  %v5119_v4 = vadd.f32 %v1913_v16, %v1911_v0  ;;  %v6512_v0 = vld [vmem:[#allocation115_spill] sm:$0xff]  ;;  %v6513_v16 = vld [vmem:[#allocation116_spill] sm:$0xff]  ;;  %v6514_v55 = vld [vmem:[#allocation117_spill] sm:$0xff] }
 0x55b   :  { %3744 = vrcp.f32 %v1894_v47  ;;  %v6515_v47 = vld [vmem:[#allocation118_spill] sm:$0xff] }
 0x55c   :  { %3746 = vtanh.f32 %v5117_v27 }
 0x55d   :  { %3748 = vrcp.f32 %v1895_v39  ;;  %v6516_v39 = vld [vmem:[#allocation119_spill] sm:$0xff] }
 0x55e   :  { %3750 = vtanh.f32 %v5119_v4 }
 0x565   :  { %v3745_v18 = vpop.eup %3744 }
 0x566   :  { %v3747_v26 = vpop.eup %3746 }
 0x567   :  { %v3749_v30 = vpop.eup %3748  ;;  %v1918_v63 = vmul.f32 %v3747_v26, %v3745_v18  ;;  %v6517_v18 = vld [vmem:[#allocation120_spill] sm:$0xff]  ;;  %v6518_v26 = vld [vmem:[#allocation121_spill] sm:$0xff] }
 0x568   :  { %v3751_v10 = vpop.eup %3750 }
 0x569   :  { %v1919_v17 = vmul.f32 %v3751_v10, %v3749_v30  ;;  %v5123_v12 = vpack.c.bf16 %v1918_v63, %v1918_v63  ;;  %v6519_v30 = vld [vmem:[#allocation122_spill] sm:$0xff]  ;;  %v6520_v10 = vld [vmem:[#allocation123_spill] sm:$0xff]  ;;  %v6521_v63 = vld [vmem:[#allocation124_spill] sm:$0xff] }
 0x56b   :  { %v1944_v20 = vpack.c.bf16 %v1919_v17, %v1919_v17  ;;  %v6522_v17 = vld [vmem:[#allocation125_spill] sm:$0xff] }
 0x56d   :  { %1977 = vmatprep.mubr.bf16.mxu0 %v1944_v20  ;;  %2018 = vmatprep.mubr.bf16.mxu1 %v1944_v20 }
 0x56e   :  { %1978 = vmatmul.mubr.bf16.vlgmr.msra.gmra.mrb[32].mxu0 %v5123_v12  ;;  %2019 = vmatmul.mubr.bf16.vlgmr.msra.gmra.mrb[32].mxu1 %v5123_v12 }
 0x56f   :  { %2028 = vmatpush1.bf16.msra.mxu0 %v6192_v56  ;;  %2069 = vmatpush1.bf16.msra.mxu1 %v6193_v2 }
 0x570   :  { %2059 = vmatprep.mubr.bf16.mxu0 %v1944_v20  ;;  %2100 = vmatprep.mubr.bf16.mxu1 %v1944_v20  ;;  %v6523_v20 = vld [vmem:[#allocation126_spill] sm:$0xff] }
 0x571   :  { %2029 = vmatprep.subr.bf16.mxu0 %v6194_v40  ;;  %2070 = vmatprep.subr.bf16.mxu1 %v6195_v23 }
 0x573   :  { %2030 = vmatpush1.bf16.msra.mxu0 %v6196_v5  ;;  %2071 = vmatpush1.bf16.msra.mxu1 %v6197_v59 }
 0x574   :  { %2031 = vmatprep.subr.bf16.mxu0 %v6198_v50  ;;  %2072 = vmatprep.subr.bf16.mxu1 %v6199_v1 }
 0x577   :  { %2032 = vmatpush1.bf16.msra.mxu0 %v6200_v41  ;;  %2073 = vmatpush1.bf16.msra.mxu1 %v6295_v32 }
 0x578   :  { %2033 = vmatprep.subr.bf16.mxu0 %v6296_v35  ;;  %2074 = vmatprep.subr.bf16.mxu1 %v6297_v21 }
 0x57b   :  { %2034 = vmatpush1.bf16.msra.mxu0 %v6298_v15  ;;  %2075 = vmatpush1.bf16.msra.mxu1 %v6299_v60 }
 0x57c   :  { %2035 = vmatprep.subr.bf16.mxu0 %v6300_v28  ;;  %2076 = vmatprep.subr.bf16.mxu1 %v6301_v36 }
 0x57f   :  { %2036 = vmatpush1.bf16.msra.mxu0 %v6302_v22  ;;  %2077 = vmatpush1.bf16.msra.mxu1 %v6303_v62 }
 0x580   :  { %2037 = vmatprep.subr.bf16.mxu0 %v6304_v7  ;;  %2078 = vmatprep.subr.bf16.mxu1 %v6399_v13 }
 0x583   :  { %2038 = vmatpush1.bf16.msra.mxu0 %v6400_v52  ;;  %2079 = vmatpush1.bf16.msra.mxu1 %v6401_v31 }
 0x584   :  { %2039 = vmatprep.subr.bf16.mxu0 %v6402_v58  ;;  %2080 = vmatprep.subr.bf16.mxu1 %v6403_v51 }
 0x587   :  { %2040 = vmatpush1.bf16.msra.mxu0 %v6404_v24  ;;  %2081 = vmatpush1.bf16.msra.mxu1 %v6405_v46 }
 0x588   :  { %2041 = vmatprep.subr.bf16.mxu0 %v6312_v37  ;;  %2082 = vmatprep.subr.bf16.mxu1 %v6313_v43 }
 0x58b   :  { %2042 = vmatpush1.bf16.msra.mxu0 %v6503_v6  ;;  %2083 = vmatpush1.bf16.msra.mxu1 %v6504_v11 }
 0x58c   :  { %2043 = vmatprep.subr.bf16.mxu0 %v6505_v48  ;;  %2084 = vmatprep.subr.bf16.mxu1 %v6506_v33 }
 0x58f   :  { %2044 = vmatpush1.bf16.msra.mxu0 %v6507_v9  ;;  %2085 = vmatpush1.bf16.msra.mxu1 %v6508_v57 }
 0x590   :  { %2045 = vmatprep.subr.bf16.mxu0 %v6509_v45  ;;  %2086 = vmatprep.subr.bf16.mxu1 %v6510_v53  ;;  %v1925_v53 = vpop.permute.xlu0 %1924 }
 0x593   :  { %2046 = vmatpush1.bf16.msra.mxu0 %v6511_v29  ;;  %2087 = vmatpush1.bf16.msra.mxu1 %v6512_v0 }
 0x594   :  { %2047 = vmatprep.subr.bf16.mxu0 %v6513_v16  ;;  %2088 = vmatprep.subr.bf16.mxu1 %v6514_v55  ;;  %v6524_v16 = vld [vmem:[#allocation127_spill] sm:$0xff]  ;;  %v6525_v55 = vld [vmem:[#allocation128_spill] sm:$0xff] }
 0x597   :  { %2048 = vmatpush1.bf16.msra.mxu0 %v6515_v47  ;;  %2089 = vmatpush1.bf16.msra.mxu1 %v6516_v39  ;;  %v6526_v47 = vld [vmem:[#allocation129_spill] sm:$0xff]  ;;  %v6527_v39 = vld [vmem:[#allocation130_spill] sm:$0xff] }
 0x598   :  { %2049 = vmatprep.subr.bf16.mxu0 %v6517_v18  ;;  %2090 = vmatprep.subr.bf16.mxu1 %v6518_v26  ;;  %v6528_v18 = vld [vmem:[#allocation131_spill] sm:$0xff]  ;;  %v6529_v26 = vld [vmem:[#allocation132_spill] sm:$0xff] }
 0x59b   :  { %2050 = vmatpush1.bf16.msra.mxu0 %v6519_v30  ;;  %2091 = vmatpush1.bf16.msra.mxu1 %v6520_v10  ;;  %v6530_v30 = vld [vmem:[#allocation133_spill] sm:$0xff]  ;;  %v6531_v10 = vld [vmem:[#allocation134_spill] sm:$0xff] }
 0x59c   :  { %2051 = vmatprep.subr.bf16.mxu0 %v6521_v63  ;;  %2092 = vmatprep.subr.bf16.mxu1 %v6522_v17  ;;  %v6532_v63 = vld [vmem:[#allocation135_spill] sm:$0xff]  ;;  %v6533_v17 = vld [vmem:[#allocation136_spill] sm:$0xff] }
 0x59f   :  { %2052 = vmatpush1.bf16.msra.mxu0 %v6523_v20  ;;  %2093 = vmatpush1.bf16.msra.mxu1 %v6524_v16  ;;  %v6534_v20 = vld [vmem:[#allocation137_spill] sm:$0xff]  ;;  %v6535_v16 = vld [vmem:[#allocation138_spill] sm:$0xff] }
 0x5a0   :  { %2053 = vmatprep.subr.bf16.mxu0 %v6525_v55  ;;  %2094 = vmatprep.subr.bf16.mxu1 %v6526_v47  ;;  %v6536_v55 = vld [vmem:[#allocation139_spill] sm:$0xff]  ;;  %v6537_v47 = vld [vmem:[#allocation12_spill] sm:$0xff] }
 0x5a3   :  { %2054 = vmatpush1.bf16.msra.mxu0 %v6527_v39  ;;  %2095 = vmatpush1.bf16.msra.mxu1 %v6528_v18  ;;  %v6538_v39 = vld [vmem:[#allocation14_spill] sm:$0xff] }
 0x5a4   :  { %2055 = vmatprep.subr.bf16.mxu0 %v6529_v26  ;;  %2096 = vmatprep.subr.bf16.mxu1 %v6530_v30  ;;  %v6539_v30 = vld [vmem:[#allocation13_spill] sm:$0xff]  ;;  %v6548_v26 = vld [vmem:[#allocation23_spill] sm:$0xff] }
 0x5a7   :  { %2056 = vmatpush1.bf16.msra.mxu0 %v6531_v10  ;;  %2097 = vmatpush1.bf16.msra.mxu1 %v6532_v63  ;;  %v6540_v10 = vld [vmem:[#allocation15_spill] sm:$0xff]  ;;  %v6541_v63 = vld [vmem:[#allocation16_spill] sm:$0xff] }
 0x5a8   :  { %2057 = vmatprep.subr.bf16.mxu0 %v6533_v17  ;;  %2098 = vmatprep.subr.bf16.mxu1 %v6534_v20  ;;  %v6542_v17 = vld [vmem:[#allocation17_spill] sm:$0xff]  ;;  %v6543_v20 = vld [vmem:[#allocation18_spill] sm:$0xff] }
 0x5ab   :  { %2058 = vmatpush1.bf16.msra.mxu0 %v6535_v16  ;;  %2099 = vmatpush1.bf16.msra.mxu1 %v6536_v55  ;;  %v6544_v16 = vld [vmem:[#allocation19_spill] sm:$0xff]  ;;  %v6545_v55 = vld [vmem:[#allocation20_spill] sm:$0xff] }
 0x5ac   :  { %2190 = vmatprep.subr.bf16.mxu0 %v6537_v47  ;;  %2231 = vmatprep.subr.bf16.mxu1 %v6538_v39  ;;  %v6546_v47 = vld [vmem:[#allocation21_spill] sm:$0xff]  ;;  %v6547_v39 = vld [vmem:[#allocation22_spill] sm:$0xff] }
 0x5ae   :  { %2060 = vmatmul.mubr.bf16.vlgmr.msra.gmra.mrb[36].mxu0 %v5123_v12  ;;  %2101 = vmatmul.mubr.bf16.vlgmr.msra.gmra.mrb[36].mxu1 %v5123_v12  ;;  %v6549_v12 = vld [vmem:[#allocation24_spill] sm:$0xff] }
 0x5af   :  { %2191 = vmatpush1.bf16.msra.mxu0 %v6539_v30  ;;  %2232 = vmatpush1.bf16.msra.mxu1 %v6540_v10  ;;  %v6550_v30 = vld [vmem:[#allocation25_spill] sm:$0xff]  ;;  %v6551_v10 = vld [vmem:[#allocation26_spill] sm:$0xff] }
 0x5b0   :  { %2192 = vmatprep.subr.bf16.mxu0 %v6541_v63  ;;  %2233 = vmatprep.subr.bf16.mxu1 %v6542_v17  ;;  %v6552_v63 = vld [vmem:[#allocation27_spill] sm:$0xff]  ;;  %v6553_v17 = vld [vmem:[#allocation28_spill] sm:$0xff] }
 0x5b3   :  { %2193 = vmatpush1.bf16.msra.mxu0 %v6543_v20  ;;  %2234 = vmatpush1.bf16.msra.mxu1 %v6544_v16  ;;  %v6554_v20 = vld [vmem:[#allocation29_spill] sm:$0xff]  ;;  %v6555_v16 = vld [vmem:[#allocation30_spill] sm:$0xff] }
 0x5b4   :  { %2194 = vmatprep.subr.bf16.mxu0 %v6545_v55  ;;  %2235 = vmatprep.subr.bf16.mxu1 %v6546_v47  ;;  %v6556_v55 = vld [vmem:[#allocation31_spill] sm:$0xff]  ;;  %v6557_v47 = vld [vmem:[#allocation32_spill] sm:$0xff] }
 0x5b7   :  { %2195 = vmatpush1.bf16.msra.mxu0 %v6547_v39  ;;  %2236 = vmatpush1.bf16.msra.mxu1 %v6548_v26  ;;  %v6558_v39 = vld [vmem:[#allocation33_spill] sm:$0xff]  ;;  %v6559_v26 = vld [vmem:[#allocation34_spill] sm:$0xff] }
 0x5b8   :  { %2196 = vmatprep.subr.bf16.mxu0 %v6549_v12  ;;  %2237 = vmatprep.subr.bf16.mxu1 %v6550_v30  ;;  %v6560_v12 = vld [vmem:[#allocation35_spill] sm:$0xff]  ;;  %v6561_v30 = vld [vmem:[#allocation36_spill] sm:$0xff] }
 0x5bb   :  { %2197 = vmatpush1.bf16.msra.mxu0 %v6551_v10  ;;  %2238 = vmatpush1.bf16.msra.mxu1 %v6552_v63  ;;  %v6562_v10 = vld [vmem:[#allocation37_spill] sm:$0xff]  ;;  %v6563_v63 = vld [vmem:[#allocation38_spill] sm:$0xff] }
 0x5bc   :  { %2198 = vmatprep.subr.bf16.mxu0 %v6553_v17  ;;  %2239 = vmatprep.subr.bf16.mxu1 %v6554_v20  ;;  %v6564_v17 = vld [vmem:[#allocation39_spill] sm:$0xff]  ;;  %v6565_v20 = vld [vmem:[#allocation40_spill] sm:$0xff] }
 0x5bf   :  { %2199 = vmatpush1.bf16.msra.mxu0 %v6555_v16  ;;  %2240 = vmatpush1.bf16.msra.mxu1 %v6556_v55  ;;  %v6566_v16 = vld [vmem:[#allocation41_spill] sm:$0xff]  ;;  %v6567_v55 = vld [vmem:[#allocation42_spill] sm:$0xff] }
 0x5c0   :  { %2200 = vmatprep.subr.bf16.mxu0 %v6557_v47  ;;  %2241 = vmatprep.subr.bf16.mxu1 %v6558_v39  ;;  %v6568_v47 = vld [vmem:[#allocation43_spill] sm:$0xff]  ;;  %v6569_v39 = vld [vmem:[#allocation44_spill] sm:$0xff] }
 0x5c3   :  { %2201 = vmatpush1.bf16.msra.mxu0 %v6559_v26  ;;  %2242 = vmatpush1.bf16.msra.mxu1 %v6560_v12  ;;  %v6570_v26 = vld [vmem:[#allocation45_spill] sm:$0xff]  ;;  %v6571_v12 = vld [vmem:[#allocation46_spill] sm:$0xff] }
 0x5c4   :  { %2202 = vmatprep.subr.bf16.mxu0 %v6561_v30  ;;  %2243 = vmatprep.subr.bf16.mxu1 %v6562_v10  ;;  %v6572_v30 = vld [vmem:[#allocation47_spill] sm:$0xff]  ;;  %v6573_v10 = vld [vmem:[#allocation48_spill] sm:$0xff] }
 0x5c7   :  { %2203 = vmatpush1.bf16.msra.mxu0 %v6563_v63  ;;  %2244 = vmatpush1.bf16.msra.mxu1 %v6564_v17  ;;  %v6574_v63 = vld [vmem:[#allocation49_spill] sm:$0xff]  ;;  %v6575_v17 = vld [vmem:[#allocation50_spill] sm:$0xff] }
 0x5c8   :  { %2204 = vmatprep.subr.bf16.mxu0 %v6565_v20  ;;  %2245 = vmatprep.subr.bf16.mxu1 %v6566_v16  ;;  %v6576_v20 = vld [vmem:[#allocation51_spill] sm:$0xff]  ;;  %v6577_v16 = vld [vmem:[#allocation52_spill] sm:$0xff] }
 0x5cb   :  { %2205 = vmatpush1.bf16.msra.mxu0 %v6567_v55  ;;  %2246 = vmatpush1.bf16.msra.mxu1 %v6568_v47  ;;  %v6578_v55 = vld [vmem:[#allocation53_spill] sm:$0xff]  ;;  %v6579_v47 = vld [vmem:[#allocation54_spill] sm:$0xff] }
 0x5cc   :  { %2206 = vmatprep.subr.bf16.mxu0 %v6569_v39  ;;  %2247 = vmatprep.subr.bf16.mxu1 %v6570_v26  ;;  %v6580_v39 = vld [vmem:[#allocation55_spill] sm:$0xff]  ;;  %v6581_v26 = vld [vmem:[#allocation56_spill] sm:$0xff] }
 0x5cf   :  { %2207 = vmatpush1.bf16.msra.mxu0 %v6571_v12  ;;  %2248 = vmatpush1.bf16.msra.mxu1 %v6572_v30  ;;  %v6582_v12 = vld [vmem:[#allocation57_spill] sm:$0xff]  ;;  %v6583_v30 = vld [vmem:[#allocation58_spill] sm:$0xff] }
 0x5d0   :  { %2208 = vmatprep.subr.bf16.mxu0 %v6573_v10  ;;  %2249 = vmatprep.subr.bf16.mxu1 %v6574_v63  ;;  %v6584_v10 = vld [vmem:[#allocation59_spill] sm:$0xff]  ;;  %v6585_v63 = vld [vmem:[#allocation60_spill] sm:$0xff] }
 0x5d3   :  { %2209 = vmatpush1.bf16.msra.mxu0 %v6575_v17  ;;  %2250 = vmatpush1.bf16.msra.mxu1 %v6576_v20  ;;  %v6586_v17 = vld [vmem:[#allocation61_spill] sm:$0xff]  ;;  %v6587_v20 = vld [vmem:[#allocation62_spill] sm:$0xff] }
 0x5d4   :  { %2210 = vmatprep.subr.bf16.mxu0 %v6577_v16  ;;  %2251 = vmatprep.subr.bf16.mxu1 %v6578_v55  ;;  %v6588_v16 = vld [vmem:[#allocation63_spill] sm:$0xff]  ;;  %v6589_v55 = vld [vmem:[#allocation64_spill] sm:$0xff] }
 0x5d7   :  { %2211 = vmatpush1.bf16.msra.mxu0 %v6579_v47  ;;  %2252 = vmatpush1.bf16.msra.mxu1 %v6580_v39  ;;  %v6590_v47 = vld [vmem:[#allocation65_spill] sm:$0xff]  ;;  %v6591_v39 = vld [vmem:[#allocation66_spill] sm:$0xff] }
 0x5d8   :  { %2212 = vmatprep.subr.bf16.mxu0 %v6581_v26  ;;  %2253 = vmatprep.subr.bf16.mxu1 %v6582_v12  ;;  %v6592_v26 = vld [vmem:[#allocation67_spill] sm:$0xff]  ;;  %v6593_v12 = vld [vmem:[#allocation68_spill] sm:$0xff] }
 0x5db   :  { %2213 = vmatpush1.bf16.msra.mxu0 %v6583_v30  ;;  %2254 = vmatpush1.bf16.msra.mxu1 %v6584_v10  ;;  %v6594_v30 = vld [vmem:[#allocation69_spill] sm:$0xff]  ;;  %v6595_v10 = vld [vmem:[#allocation70_spill] sm:$0xff] }
 0x5dc   :  { %2214 = vmatprep.subr.bf16.mxu0 %v6585_v63  ;;  %2255 = vmatprep.subr.bf16.mxu1 %v6586_v17  ;;  %v6596_v63 = vld [vmem:[#allocation71_spill] sm:$0xff]  ;;  %v6597_v17 = vld [vmem:[#allocation72_spill] sm:$0xff] }
 0x5df   :  { %2215 = vmatpush1.bf16.msra.mxu0 %v6587_v20  ;;  %2256 = vmatpush1.bf16.msra.mxu1 %v6588_v16  ;;  %v6598_v20 = vld [vmem:[#allocation73_spill] sm:$0xff]  ;;  %v6599_v16 = vld [vmem:[#allocation74_spill] sm:$0xff] }
 0x5e0   :  { %2216 = vmatprep.subr.bf16.mxu0 %v6589_v55  ;;  %2257 = vmatprep.subr.bf16.mxu1 %v6590_v47  ;;  %v6600_v55 = vld [vmem:[#allocation75_spill] sm:$0xff]  ;;  %v6601_v47 = vld [vmem:[#allocation76_spill] sm:$0xff] }
 0x5e3   :  { %2217 = vmatpush1.bf16.msra.mxu0 %v6591_v39  ;;  %2258 = vmatpush1.bf16.msra.mxu1 %v6592_v26  ;;  %v6602_v39 = vld [vmem:[#allocation77_spill] sm:$0xff] }
 0x5e4   :  { %2218 = vmatprep.subr.bf16.mxu0 %v6593_v12  ;;  %2259 = vmatprep.subr.bf16.mxu1 %v6594_v30 }
 0x5e7   :  { %2219 = vmatpush1.bf16.msra.mxu0 %v6595_v10  ;;  %2260 = vmatpush1.bf16.msra.mxu1 %v6596_v63 }
 0x5e8   :  { %2220 = vmatprep.subr.bf16.mxu0 %v6597_v17  ;;  %2261 = vmatprep.subr.bf16.mxu1 %v6598_v20  ;;  %v6603_v17 = vld [vmem:[#allocation140_spill] sm:$0xff]  ;;  %v6604_v20 = vld [vmem:[#allocation141_spill] sm:$0xff] }
 0x5e9   :  { %v1927_v45 = vmul.f32 %v1925_v53, %v6603_v17  ;;  %v1929_v57 = vmul.f32 %v1925_v53, %v6604_v20 }
 0x5eb   :  { %2221 = vmatpush1.bf16.msra.mxu0 %v6599_v16  ;;  %2262 = vmatpush1.bf16.msra.mxu1 %v6600_v55  ;;  %v1928_v16 = vmul.f32 %v1925_v53, %v6390_v3  ;;  %v6605_v55 = vld [vmem:[#allocation143_spill] sm:$0xff] }
 0x5ec   :  { %2272 = vmatprep.subr.bf16.mxu0 %v6601_v47  ;;  %2313 = vmatprep.subr.bf16.mxu1 %v6602_v39  ;;  %v1930_v9 = vmul.f32 %v1925_v53, %v6605_v55  ;;  %v6606_v47 = vld [vmem:[#allocation144_spill] sm:$0xff]  ;;  %v1937_v39 = vadd.f32 %v1929_v57, %v6500_v14 }
 0x5ed   :  { %v1935_v33 = vadd.f32 %v1927_v45, %v6606_v47  ;;  %v1936_v11 = vadd.f32 %v1928_v16, %v6501_v44  ;;  %v1931_v16 = vmul.f32 %v1925_v53, %v6395_v8 }
 0x641   :  { %v1979_v26 = vpop.f32.mrb[32].mxu0  ;;  %v2020_v12 = vpop.f32.mrb[32].mxu1 }
 0x642   :  { %v1981_v18 = vpop.f32.mrb[33].mxu0  ;;  %v2022_v30 = vpop.f32.mrb[33].mxu1  ;;  %v2109_v48 = vadd.f32 %v1979_v26, %v1935_v33 }
 0x643   :  { %v1983_v0 = vpop.f32.mrb[34].mxu0  ;;  %v2024_v10 = vpop.f32.mrb[34].mxu1 }
 0x644   :  { %v1984_v29 = vpop.f32.mrb[35].mxu0  ;;  %v2025_v63 = vpop.f32.mrb[35].mxu1  ;;  %v2111_v0 = vadd.f32 %v2020_v12, %v1937_v39  ;;  %v2110_v10 = vadd.f32 %v1981_v18, %v1936_v11  ;;  %v3361_v6 = vmul.f32 -1.442695, %v2109_v48  ;;  %v1933_v39 = vmul.f32 %v1925_v53, %v6396_v34 }
 0x645   :  { %v1938_v29 = vadd.f32 %v1930_v9, %v6394_v54  ;;  %v1932_v11 = vmul.f32 %v1925_v53, %v6397_v42  ;;  %v1934_v48 = vmul.f32 %v1925_v53, %v4613_v61 }
 0x646   :  { %v3363_v17 = vmul.f32 -1.442695, %v2111_v0  ;;  %v3362_v43 = vmul.f32 -1.442695, %v2110_v10  ;;  %3752 = vpow2.f32 %v3361_v6  ;;  %v1941_v6 = vadd.f32 %v1933_v39, %v6502_v38 }
 0x647   :  { %v2112_v63 = vadd.f32 %v2022_v30, %v1938_v29 }
 0x648   :  { %3754 = vpow2.f32 %v3363_v17 }
 0x649   :  { %v3364_v20 = vmul.f32 -1.442695, %v2112_v63  ;;  %3756 = vpow2.f32 %v3362_v43  ;;  %v1939_v43 = vadd.f32 %v1931_v16, %v6293_v19 }
 0x64b   :  { %3758 = vpow2.f32 %v3364_v20  ;;  %v1942_v20 = vadd.f32 %v1934_v48, %v4625_v25 }
 0x650   :  { %v3753_v55 = vpop.eup %3752 }
 0x651   :  { %v2135_v33 = vadd.f32 1.0, %v3753_v55  ;;  %v1940_v55 = vadd.f32 %v1932_v11, %v4622_v49 }
 0x652   :  { %v3755_v45 = vpop.eup %3754 }
 0x653   :  { %v3757_v47 = vpop.eup %3756  ;;  %v2137_v9 = vadd.f32 1.0, %v3755_v45  ;;  %3760 = vrcp.f32 %v2135_v33 }
 0x654   :  { %v2136_v18 = vadd.f32 1.0, %v3757_v47 }
 0x655   :  { %v3759_v57 = vpop.eup %3758  ;;  %3762 = vrcp.f32 %v2137_v9 }
 0x656   :  { %v2138_v26 = vadd.f32 1.0, %v3759_v57  ;;  %3764 = vrcp.f32 %v2136_v18 }
 0x658   :  { %3766 = vrcp.f32 %v2138_v26 }
 0x65d   :  { %v3761_v9 = vpop.eup %3760 }
 0x65f   :  { %v3763_v11 = vpop.eup %3762 }
 0x660   :  { %v3765_v48 = vpop.eup %3764  ;;  %v2155_v26 = vmul.f32 %v3763_v11, %v5117_v27  ;;  %v6609_v11 = vld [vmem:[#allocation107_spill] sm:$0xff] }
 0x662   :  { %v3767_v18 = vpop.eup %3766 }
 0x681   :  { %v2061_v30 = vpop.f32.mrb[36].mxu0  ;;  %v2102_v17 = vpop.f32.mrb[36].mxu1 }
 0x682   :  { %v2113_v12 = vadd.f32 %v2061_v30, %v1939_v43  ;;  %v2115_v0 = vadd.f32 %v2102_v17, %v1941_v6  ;;  %v2063_v29 = vpop.f32.mrb[37].mxu0  ;;  %v2104_v10 = vpop.f32.mrb[37].mxu1 }
 0x683   :  { %v2114_v53 = vadd.f32 %v2063_v29, %v1940_v55  ;;  %v2116_v47 = vadd.f32 %v2104_v10, %v1942_v20  ;;  %v2065_v63 = vpop.f32.mrb[38].mxu0  ;;  %v2106_v45 = vpop.f32.mrb[38].mxu1  ;;  %v2156_v55 = vmul.f32 %v3767_v18, %v5119_v4  ;;  %v6611_v18 = vld [vmem:[#allocation109_spill] sm:$0xff] }
 0x684   :  { %v3365_v57 = vmul.f32 -1.442695, %v2113_v12  ;;  %3768 = vtanh.f32 %v2115_v0  ;;  %v2066_v33 = vpop.f32.mrb[39].mxu0  ;;  %v2107_v16 = vpop.f32.mrb[39].mxu1 }
 0x685   :  { %v3366_v39 = vmul.f32 -1.442695, %v2114_v53  ;;  %3770 = vtanh.f32 %v2116_v47 }
 0x686   :  { %3772 = vpow2.f32 %v3365_v57 }
 0x687   :  { %3774 = vpow2.f32 %v3366_v39  ;;  %v6607_v39 = vld [vmem:[#allocation105_spill] sm:$0xff] }
 0x68e   :  { %v3769_v43 = vpop.eup %3768 }
 0x68f   :  { %v3771_v6 = vpop.eup %3770  ;;  %v2157_v30 = vmul.f32 %v3769_v43, %v3761_v9  ;;  %v6608_v9 = vld [vmem:[#allocation106_spill] sm:$0xff] }
 0x690   :  { %v3773_v17 = vpop.eup %3772  ;;  %v2158_v20 = vmul.f32 %v3771_v6, %v3765_v48  ;;  %v6610_v48 = vld [vmem:[#allocation108_spill] sm:$0xff]  ;;  %v6612_v43 = vld [vmem:[#allocation110_spill] sm:$0xff]  ;;  %v6613_v6 = vld [vmem:[#allocation111_spill] sm:$0xff] }
 0x691   :  { %v3775_v12 = vpop.eup %3774  ;;  %v2139_v0 = vadd.f32 1.0, %v3773_v17  ;;  %v5275_v29 = vadd.f32 %v2157_v30, %v2155_v26  ;;  %v6614_v26 = vld [vmem:[#allocation112_spill] sm:$0xff]  ;;  %v6615_v30 = vld [vmem:[#allocation113_spill] sm:$0xff]  ;;  %v6616_v17 = vld [vmem:[#allocation114_spill] sm:$0xff] }
 0x692   :  { %v2140_v10 = vadd.f32 1.0, %v3775_v12  ;;  %v5277_v53 = vadd.f32 %v2158_v20, %v2156_v55  ;;  %v6617_v55 = vld [vmem:[#allocation115_spill] sm:$0xff]  ;;  %v6618_v20 = vld [vmem:[#allocation116_spill] sm:$0xff]  ;;  %v6619_v12 = vld [vmem:[#allocation117_spill] sm:$0xff] }
 0x693   :  { %3776 = vrcp.f32 %v2139_v0  ;;  %v6620_v0 = vld [vmem:[#allocation118_spill] sm:$0xff] }
 0x694   :  { %3778 = vtanh.f32 %v5275_v29 }
 0x695   :  { %3780 = vrcp.f32 %v2140_v10  ;;  %v6621_v10 = vld [vmem:[#allocation119_spill] sm:$0xff] }
 0x696   :  { %3782 = vtanh.f32 %v5277_v53 }
 0x69d   :  { %v3777_v47 = vpop.eup %3776 }
 0x69e   :  { %v3779_v27 = vpop.eup %3778 }
 0x69f   :  { %v3781_v63 = vpop.eup %3780  ;;  %v2163_v57 = vmul.f32 %v3779_v27, %v3777_v47  ;;  %v6622_v47 = vld [vmem:[#allocation120_spill] sm:$0xff]  ;;  %v6623_v27 = vld [vmem:[#allocation121_spill] sm:$0xff] }
 0x6a0   :  { %v3783_v45 = vpop.eup %3782 }
 0x6a1   :  { %v2164_v4 = vmul.f32 %v3783_v45, %v3781_v63  ;;  %v5281_v16 = vpack.c.bf16 %v2163_v57, %v2163_v57  ;;  %v6624_v63 = vld [vmem:[#allocation122_spill] sm:$0xff]  ;;  %v6625_v45 = vld [vmem:[#allocation123_spill] sm:$0xff]  ;;  %v6626_v57 = vld [vmem:[#allocation124_spill] sm:$0xff] }
 0x6a3   :  { %v2189_v33 = vpack.c.bf16 %v2164_v4, %v2164_v4  ;;  %v6627_v4 = vld [vmem:[#allocation125_spill] sm:$0xff] }
 0x6a5   :  { %2222 = vmatprep.mubr.bf16.mxu0 %v2189_v33  ;;  %2263 = vmatprep.mubr.bf16.mxu1 %v2189_v33 }
 0x6a6   :  { %2223 = vmatmul.mubr.bf16.vlgmr.msra.gmra.mrb[40].mxu0 %v5281_v16  ;;  %2264 = vmatmul.mubr.bf16.vlgmr.msra.gmra.mrb[40].mxu1 %v5281_v16 }
 0x6a7   :  { %2273 = vmatpush1.bf16.msra.mxu0 %v6192_v56  ;;  %2314 = vmatpush1.bf16.msra.mxu1 %v6193_v2 }
 0x6a8   :  { %2304 = vmatprep.mubr.bf16.mxu0 %v2189_v33  ;;  %2345 = vmatprep.mubr.bf16.mxu1 %v2189_v33  ;;  %v6628_v33 = vld [vmem:[#allocation126_spill] sm:$0xff] }
 0x6a9   :  { %2274 = vmatprep.subr.bf16.mxu0 %v6194_v40  ;;  %2315 = vmatprep.subr.bf16.mxu1 %v6195_v23 }
 0x6ab   :  { %2275 = vmatpush1.bf16.msra.mxu0 %v6196_v5  ;;  %2316 = vmatpush1.bf16.msra.mxu1 %v6197_v59 }
 0x6ac   :  { %2276 = vmatprep.subr.bf16.mxu0 %v6198_v50  ;;  %2317 = vmatprep.subr.bf16.mxu1 %v6199_v1 }
 0x6af   :  { %2277 = vmatpush1.bf16.msra.mxu0 %v6200_v41  ;;  %2318 = vmatpush1.bf16.msra.mxu1 %v6295_v32 }
 0x6b0   :  { %2278 = vmatprep.subr.bf16.mxu0 %v6296_v35  ;;  %2319 = vmatprep.subr.bf16.mxu1 %v6297_v21 }
 0x6b3   :  { %2279 = vmatpush1.bf16.msra.mxu0 %v6298_v15  ;;  %2320 = vmatpush1.bf16.msra.mxu1 %v6299_v60 }
 0x6b4   :  { %2280 = vmatprep.subr.bf16.mxu0 %v6300_v28  ;;  %2321 = vmatprep.subr.bf16.mxu1 %v6301_v36 }
 0x6b7   :  { %2281 = vmatpush1.bf16.msra.mxu0 %v6302_v22  ;;  %2322 = vmatpush1.bf16.msra.mxu1 %v6303_v62 }
 0x6b8   :  { %2282 = vmatprep.subr.bf16.mxu0 %v6304_v7  ;;  %2323 = vmatprep.subr.bf16.mxu1 %v6399_v13 }
 0x6bb   :  { %2283 = vmatpush1.bf16.msra.mxu0 %v6400_v52  ;;  %2324 = vmatpush1.bf16.msra.mxu1 %v6401_v31 }
 0x6bc   :  { %2284 = vmatprep.subr.bf16.mxu0 %v6402_v58  ;;  %2325 = vmatprep.subr.bf16.mxu1 %v6403_v51 }
 0x6bf   :  { %2285 = vmatpush1.bf16.msra.mxu0 %v6404_v24  ;;  %2326 = vmatpush1.bf16.msra.mxu1 %v6405_v46 }
 0x6c0   :  { %2286 = vmatprep.subr.bf16.mxu0 %v6312_v37  ;;  %2327 = vmatprep.subr.bf16.mxu1 %v6607_v39 }
 0x6c3   :  { %2287 = vmatpush1.bf16.msra.mxu0 %v6608_v9  ;;  %2328 = vmatpush1.bf16.msra.mxu1 %v6609_v11 }
 0x6c4   :  { %2288 = vmatprep.subr.bf16.mxu0 %v6610_v48  ;;  %2329 = vmatprep.subr.bf16.mxu1 %v6611_v18 }
 0x6c7   :  { %2289 = vmatpush1.bf16.msra.mxu0 %v6612_v43  ;;  %2330 = vmatpush1.bf16.msra.mxu1 %v6613_v6 }
 0x6c8   :  { %2290 = vmatprep.subr.bf16.mxu0 %v6614_v26  ;;  %2331 = vmatprep.subr.bf16.mxu1 %v6615_v30  ;;  %v2170_v30 = vpop.permute.xlu1 %2169 }
 0x6cb   :  { %2291 = vmatpush1.bf16.msra.mxu0 %v6616_v17  ;;  %2332 = vmatpush1.bf16.msra.mxu1 %v6617_v55 }
 0x6cc   :  { %2292 = vmatprep.subr.bf16.mxu0 %v6618_v20  ;;  %2333 = vmatprep.subr.bf16.mxu1 %v6619_v12  ;;  %v6629_v20 = vld [vmem:[#allocation127_spill] sm:$0xff]  ;;  %v6630_v12 = vld [vmem:[#allocation128_spill] sm:$0xff] }
 0x6cf   :  { %2293 = vmatpush1.bf16.msra.mxu0 %v6620_v0  ;;  %2334 = vmatpush1.bf16.msra.mxu1 %v6621_v10  ;;  %v6631_v0 = vld [vmem:[#allocation129_spill] sm:$0xff]  ;;  %v6632_v10 = vld [vmem:[#allocation130_spill] sm:$0xff] }
 0x6d0   :  { %2294 = vmatprep.subr.bf16.mxu0 %v6622_v47  ;;  %2335 = vmatprep.subr.bf16.mxu1 %v6623_v27  ;;  %v6633_v47 = vld [vmem:[#allocation131_spill] sm:$0xff]  ;;  %v6634_v27 = vld [vmem:[#allocation132_spill] sm:$0xff] }
 0x6d3   :  { %2295 = vmatpush1.bf16.msra.mxu0 %v6624_v63  ;;  %2336 = vmatpush1.bf16.msra.mxu1 %v6625_v45  ;;  %v6635_v63 = vld [vmem:[#allocation133_spill] sm:$0xff]  ;;  %v6636_v45 = vld [vmem:[#allocation134_spill] sm:$0xff] }
 0x6d4   :  { %2296 = vmatprep.subr.bf16.mxu0 %v6626_v57  ;;  %2337 = vmatprep.subr.bf16.mxu1 %v6627_v4  ;;  %v6637_v57 = vld [vmem:[#allocation135_spill] sm:$0xff]  ;;  %v6638_v4 = vld [vmem:[#allocation136_spill] sm:$0xff] }
 0x6d7   :  { %2297 = vmatpush1.bf16.msra.mxu0 %v6628_v33  ;;  %2338 = vmatpush1.bf16.msra.mxu1 %v6629_v20  ;;  %v6639_v33 = vld [vmem:[#allocation137_spill] sm:$0xff]  ;;  %v6640_v20 = vld [vmem:[#allocation138_spill] sm:$0xff] }
 0x6d8   :  { %2298 = vmatprep.subr.bf16.mxu0 %v6630_v12  ;;  %2339 = vmatprep.subr.bf16.mxu1 %v6631_v0  ;;  %v6641_v12 = vld [vmem:[#allocation139_spill] sm:$0xff]  ;;  %v6642_v0 = vld [vmem:[#allocation12_spill] sm:$0xff] }
 0x6db   :  { %2299 = vmatpush1.bf16.msra.mxu0 %v6632_v10  ;;  %2340 = vmatpush1.bf16.msra.mxu1 %v6633_v47  ;;  %v6643_v10 = vld [vmem:[#allocation14_spill] sm:$0xff] }
 0x6dc   :  { %2300 = vmatprep.subr.bf16.mxu0 %v6634_v27  ;;  %2341 = vmatprep.subr.bf16.mxu1 %v6635_v63  ;;  %v6644_v63 = vld [vmem:[#allocation13_spill] sm:$0xff]  ;;  %v6653_v27 = vld [vmem:[#allocation23_spill] sm:$0xff] }
 0x6df   :  { %2301 = vmatpush1.bf16.msra.mxu0 %v6636_v45  ;;  %2342 = vmatpush1.bf16.msra.mxu1 %v6637_v57  ;;  %v6645_v45 = vld [vmem:[#allocation15_spill] sm:$0xff]  ;;  %v6646_v57 = vld [vmem:[#allocation16_spill] sm:$0xff] }
 0x6e0   :  { %2302 = vmatprep.subr.bf16.mxu0 %v6638_v4  ;;  %2343 = vmatprep.subr.bf16.mxu1 %v6639_v33  ;;  %v6647_v4 = vld [vmem:[#allocation17_spill] sm:$0xff]  ;;  %v6648_v33 = vld [vmem:[#allocation18_spill] sm:$0xff] }
 0x6e3   :  { %2303 = vmatpush1.bf16.msra.mxu0 %v6640_v20  ;;  %2344 = vmatpush1.bf16.msra.mxu1 %v6641_v12  ;;  %v6649_v20 = vld [vmem:[#allocation19_spill] sm:$0xff]  ;;  %v6650_v12 = vld [vmem:[#allocation20_spill] sm:$0xff] }
 0x6e4   :  { %2435 = vmatprep.subr.bf16.mxu0 %v6642_v0  ;;  %2476 = vmatprep.subr.bf16.mxu1 %v6643_v10  ;;  %v6651_v0 = vld [vmem:[#allocation21_spill] sm:$0xff]  ;;  %v6652_v10 = vld [vmem:[#allocation22_spill] sm:$0xff] }
 0x6e6   :  { %2305 = vmatmul.mubr.bf16.vlgmr.msra.gmra.mrb[44].mxu0 %v5281_v16  ;;  %2346 = vmatmul.mubr.bf16.vlgmr.msra.gmra.mrb[44].mxu1 %v5281_v16  ;;  %v6654_v16 = vld [vmem:[#allocation24_spill] sm:$0xff] }
 0x6e7   :  { %2436 = vmatpush1.bf16.msra.mxu0 %v6644_v63  ;;  %2477 = vmatpush1.bf16.msra.mxu1 %v6645_v45  ;;  %v6655_v63 = vld [vmem:[#allocation25_spill] sm:$0xff]  ;;  %v6656_v45 = vld [vmem:[#allocation26_spill] sm:$0xff] }
 0x6e8   :  { %2437 = vmatprep.subr.bf16.mxu0 %v6646_v57  ;;  %2478 = vmatprep.subr.bf16.mxu1 %v6647_v4  ;;  %v6657_v57 = vld [vmem:[#allocation27_spill] sm:$0xff]  ;;  %v6658_v4 = vld [vmem:[#allocation28_spill] sm:$0xff] }
 0x6eb   :  { %2438 = vmatpush1.bf16.msra.mxu0 %v6648_v33  ;;  %2479 = vmatpush1.bf16.msra.mxu1 %v6649_v20  ;;  %v6659_v33 = vld [vmem:[#allocation29_spill] sm:$0xff]  ;;  %v6660_v20 = vld [vmem:[#allocation30_spill] sm:$0xff] }
 0x6ec   :  { %2439 = vmatprep.subr.bf16.mxu0 %v6650_v12  ;;  %2480 = vmatprep.subr.bf16.mxu1 %v6651_v0  ;;  %v6661_v12 = vld [vmem:[#allocation31_spill] sm:$0xff]  ;;  %v6662_v0 = vld [vmem:[#allocation32_spill] sm:$0xff] }
 0x6ef   :  { %2440 = vmatpush1.bf16.msra.mxu0 %v6652_v10  ;;  %2481 = vmatpush1.bf16.msra.mxu1 %v6653_v27  ;;  %v6663_v10 = vld [vmem:[#allocation33_spill] sm:$0xff]  ;;  %v6664_v27 = vld [vmem:[#allocation34_spill] sm:$0xff] }
 0x6f0   :  { %2441 = vmatprep.subr.bf16.mxu0 %v6654_v16  ;;  %2482 = vmatprep.subr.bf16.mxu1 %v6655_v63  ;;  %v6665_v16 = vld [vmem:[#allocation35_spill] sm:$0xff]  ;;  %v6666_v63 = vld [vmem:[#allocation36_spill] sm:$0xff] }
 0x6f3   :  { %2442 = vmatpush1.bf16.msra.mxu0 %v6656_v45  ;;  %2483 = vmatpush1.bf16.msra.mxu1 %v6657_v57  ;;  %v6667_v45 = vld [vmem:[#allocation37_spill] sm:$0xff]  ;;  %v6668_v57 = vld [vmem:[#allocation38_spill] sm:$0xff] }
 0x6f4   :  { %2443 = vmatprep.subr.bf16.mxu0 %v6658_v4  ;;  %2484 = vmatprep.subr.bf16.mxu1 %v6659_v33  ;;  %v6669_v4 = vld [vmem:[#allocation39_spill] sm:$0xff]  ;;  %v6670_v33 = vld [vmem:[#allocation40_spill] sm:$0xff] }
 0x6f7   :  { %2444 = vmatpush1.bf16.msra.mxu0 %v6660_v20  ;;  %2485 = vmatpush1.bf16.msra.mxu1 %v6661_v12  ;;  %v6671_v20 = vld [vmem:[#allocation41_spill] sm:$0xff]  ;;  %v6672_v12 = vld [vmem:[#allocation42_spill] sm:$0xff] }
 0x6f8   :  { %2445 = vmatprep.subr.bf16.mxu0 %v6662_v0  ;;  %2486 = vmatprep.subr.bf16.mxu1 %v6663_v10  ;;  %v6673_v0 = vld [vmem:[#allocation43_spill] sm:$0xff]  ;;  %v6674_v10 = vld [vmem:[#allocation44_spill] sm:$0xff] }
 0x6fb   :  { %2446 = vmatpush1.bf16.msra.mxu0 %v6664_v27  ;;  %2487 = vmatpush1.bf16.msra.mxu1 %v6665_v16  ;;  %v6675_v27 = vld [vmem:[#allocation45_spill] sm:$0xff]  ;;  %v6676_v16 = vld [vmem:[#allocation46_spill] sm:$0xff] }
 0x6fc   :  { %2447 = vmatprep.subr.bf16.mxu0 %v6666_v63  ;;  %2488 = vmatprep.subr.bf16.mxu1 %v6667_v45  ;;  %v6677_v63 = vld [vmem:[#allocation47_spill] sm:$0xff]  ;;  %v6678_v45 = vld [vmem:[#allocation48_spill] sm:$0xff] }
 0x6ff   :  { %2448 = vmatpush1.bf16.msra.mxu0 %v6668_v57  ;;  %2489 = vmatpush1.bf16.msra.mxu1 %v6669_v4  ;;  %v6679_v57 = vld [vmem:[#allocation49_spill] sm:$0xff]  ;;  %v6680_v4 = vld [vmem:[#allocation50_spill] sm:$0xff] }
 0x700   :  { %2449 = vmatprep.subr.bf16.mxu0 %v6670_v33  ;;  %2490 = vmatprep.subr.bf16.mxu1 %v6671_v20  ;;  %v6681_v33 = vld [vmem:[#allocation51_spill] sm:$0xff]  ;;  %v6682_v20 = vld [vmem:[#allocation52_spill] sm:$0xff] }
 0x703   :  { %2450 = vmatpush1.bf16.msra.mxu0 %v6672_v12  ;;  %2491 = vmatpush1.bf16.msra.mxu1 %v6673_v0  ;;  %v6683_v12 = vld [vmem:[#allocation53_spill] sm:$0xff]  ;;  %v6684_v0 = vld [vmem:[#allocation54_spill] sm:$0xff] }
 0x704   :  { %2451 = vmatprep.subr.bf16.mxu0 %v6674_v10  ;;  %2492 = vmatprep.subr.bf16.mxu1 %v6675_v27  ;;  %v6685_v10 = vld [vmem:[#allocation55_spill] sm:$0xff]  ;;  %v6686_v27 = vld [vmem:[#allocation56_spill] sm:$0xff] }
 0x707   :  { %2452 = vmatpush1.bf16.msra.mxu0 %v6676_v16  ;;  %2493 = vmatpush1.bf16.msra.mxu1 %v6677_v63  ;;  %v6687_v16 = vld [vmem:[#allocation57_spill] sm:$0xff]  ;;  %v6688_v63 = vld [vmem:[#allocation58_spill] sm:$0xff] }
 0x708   :  { %2453 = vmatprep.subr.bf16.mxu0 %v6678_v45  ;;  %2494 = vmatprep.subr.bf16.mxu1 %v6679_v57  ;;  %v6689_v45 = vld [vmem:[#allocation59_spill] sm:$0xff]  ;;  %v6690_v57 = vld [vmem:[#allocation60_spill] sm:$0xff] }
 0x70b   :  { %2454 = vmatpush1.bf16.msra.mxu0 %v6680_v4  ;;  %2495 = vmatpush1.bf16.msra.mxu1 %v6681_v33  ;;  %v6691_v4 = vld [vmem:[#allocation61_spill] sm:$0xff]  ;;  %v6692_v33 = vld [vmem:[#allocation62_spill] sm:$0xff] }
 0x70c   :  { %2455 = vmatprep.subr.bf16.mxu0 %v6682_v20  ;;  %2496 = vmatprep.subr.bf16.mxu1 %v6683_v12  ;;  %v6693_v20 = vld [vmem:[#allocation63_spill] sm:$0xff]  ;;  %v6694_v12 = vld [vmem:[#allocation64_spill] sm:$0xff] }
 0x70f   :  { %2456 = vmatpush1.bf16.msra.mxu0 %v6684_v0  ;;  %2497 = vmatpush1.bf16.msra.mxu1 %v6685_v10  ;;  %v6695_v0 = vld [vmem:[#allocation65_spill] sm:$0xff]  ;;  %v6696_v10 = vld [vmem:[#allocation66_spill] sm:$0xff] }
 0x710   :  { %2457 = vmatprep.subr.bf16.mxu0 %v6686_v27  ;;  %2498 = vmatprep.subr.bf16.mxu1 %v6687_v16  ;;  %v6697_v27 = vld [vmem:[#allocation67_spill] sm:$0xff]  ;;  %v6698_v16 = vld [vmem:[#allocation68_spill] sm:$0xff] }
 0x713   :  { %2458 = vmatpush1.bf16.msra.mxu0 %v6688_v63  ;;  %2499 = vmatpush1.bf16.msra.mxu1 %v6689_v45  ;;  %v6699_v63 = vld [vmem:[#allocation69_spill] sm:$0xff]  ;;  %v6700_v45 = vld [vmem:[#allocation70_spill] sm:$0xff] }
 0x714   :  { %2459 = vmatprep.subr.bf16.mxu0 %v6690_v57  ;;  %2500 = vmatprep.subr.bf16.mxu1 %v6691_v4  ;;  %v6701_v57 = vld [vmem:[#allocation71_spill] sm:$0xff]  ;;  %v6702_v4 = vld [vmem:[#allocation72_spill] sm:$0xff] }
 0x717   :  { %2460 = vmatpush1.bf16.msra.mxu0 %v6692_v33  ;;  %2501 = vmatpush1.bf16.msra.mxu1 %v6693_v20  ;;  %v6703_v33 = vld [vmem:[#allocation73_spill] sm:$0xff]  ;;  %v6704_v20 = vld [vmem:[#allocation74_spill] sm:$0xff] }
 0x718   :  { %2461 = vmatprep.subr.bf16.mxu0 %v6694_v12  ;;  %2502 = vmatprep.subr.bf16.mxu1 %v6695_v0  ;;  %v6705_v12 = vld [vmem:[#allocation75_spill] sm:$0xff]  ;;  %v6706_v0 = vld [vmem:[#allocation76_spill] sm:$0xff] }
 0x71b   :  { %2462 = vmatpush1.bf16.msra.mxu0 %v6696_v10  ;;  %2503 = vmatpush1.bf16.msra.mxu1 %v6697_v27  ;;  %v6707_v10 = vld [vmem:[#allocation77_spill] sm:$0xff] }
 0x71c   :  { %2463 = vmatprep.subr.bf16.mxu0 %v6698_v16  ;;  %2504 = vmatprep.subr.bf16.mxu1 %v6699_v63 }
 0x71f   :  { %2464 = vmatpush1.bf16.msra.mxu0 %v6700_v45  ;;  %2505 = vmatpush1.bf16.msra.mxu1 %v6701_v57 }
 0x720   :  { %2465 = vmatprep.subr.bf16.mxu0 %v6702_v4  ;;  %2506 = vmatprep.subr.bf16.mxu1 %v6703_v33  ;;  %v6708_v4 = vld [vmem:[#allocation140_spill] sm:$0xff]  ;;  %v6709_v33 = vld [vmem:[#allocation141_spill] sm:$0xff] }
 0x721   :  { %v2172_v26 = vmul.f32 %v2170_v30, %v6708_v4  ;;  %v2174_v6 = vmul.f32 %v2170_v30, %v6709_v33 }
 0x723   :  { %2466 = vmatpush1.bf16.msra.mxu0 %v6704_v20  ;;  %2507 = vmatpush1.bf16.msra.mxu1 %v6705_v12  ;;  %v2173_v20 = vmul.f32 %v2170_v30, %v6390_v3  ;;  %v6710_v12 = vld [vmem:[#allocation143_spill] sm:$0xff] }
 0x724   :  { %2517 = vmatprep.subr.bf16.mxu0 %v6706_v0  ;;  %2558 = vmatprep.subr.bf16.mxu1 %v6707_v10  ;;  %v2175_v43 = vmul.f32 %v2170_v30, %v6710_v12  ;;  %v6711_v0 = vld [vmem:[#allocation144_spill] sm:$0xff]  ;;  %v2182_v10 = vadd.f32 %v2174_v6, %v6500_v14 }
 0x725   :  { %v2180_v18 = vadd.f32 %v2172_v26, %v6711_v0  ;;  %v2181_v11 = vadd.f32 %v2173_v20, %v6501_v44  ;;  %v2176_v20 = vmul.f32 %v2170_v30, %v6395_v8 }
 0x779   :  { %v2224_v27 = vpop.f32.mrb[40].mxu0  ;;  %v2265_v16 = vpop.f32.mrb[40].mxu1 }
 0x77a   :  { %v2226_v47 = vpop.f32.mrb[41].mxu0  ;;  %v2267_v63 = vpop.f32.mrb[41].mxu1  ;;  %v2354_v48 = vadd.f32 %v2224_v27, %v2180_v18 }
 0x77b   :  { %v2228_v55 = vpop.f32.mrb[42].mxu0  ;;  %v2269_v45 = vpop.f32.mrb[42].mxu1 }
 0x77c   :  { %v2229_v17 = vpop.f32.mrb[43].mxu0  ;;  %v2270_v57 = vpop.f32.mrb[43].mxu1  ;;  %v2356_v55 = vadd.f32 %v2265_v16, %v2182_v10  ;;  %v2355_v45 = vadd.f32 %v2226_v47, %v2181_v11  ;;  %v3368_v9 = vmul.f32 -1.442695, %v2354_v48  ;;  %v2178_v10 = vmul.f32 %v2170_v30, %v6396_v34 }
 0x77d   :  { %v2183_v17 = vadd.f32 %v2175_v43, %v6394_v54  ;;  %v2177_v11 = vmul.f32 %v2170_v30, %v6397_v42  ;;  %v2179_v48 = vmul.f32 %v2170_v30, %v4613_v61 }
 0x77e   :  { %v3370_v4 = vmul.f32 -1.442695, %v2356_v55  ;;  %v3369_v39 = vmul.f32 -1.442695, %v2355_v45  ;;  %3784 = vpow2.f32 %v3368_v9  ;;  %v2186_v9 = vadd.f32 %v2178_v10, %v6502_v38 }
 0x77f   :  { %v2357_v57 = vadd.f32 %v2267_v63, %v2183_v17 }
 0x780   :  { %3786 = vpow2.f32 %v3370_v4 }
 0x781   :  { %v3371_v33 = vmul.f32 -1.442695, %v2357_v57  ;;  %3788 = vpow2.f32 %v3369_v39  ;;  %v2184_v39 = vadd.f32 %v2176_v20, %v6293_v19 }
 0x783   :  { %3790 = vpow2.f32 %v3371_v33  ;;  %v2187_v33 = vadd.f32 %v2179_v48, %v4625_v25 }
 0x788   :  { %v3785_v12 = vpop.eup %3784 }
 0x789   :  { %v2380_v18 = vadd.f32 1.0, %v3785_v12  ;;  %v2185_v12 = vadd.f32 %v2177_v11, %v4622_v49 }
 0x78a   :  { %v3787_v26 = vpop.eup %3786 }
 0x78b   :  { %v3789_v0 = vpop.eup %3788  ;;  %v2382_v43 = vadd.f32 1.0, %v3787_v26  ;;  %3792 = vrcp.f32 %v2380_v18 }
 0x78c   :  { %v2381_v47 = vadd.f32 1.0, %v3789_v0 }
 0x78d   :  { %v3791_v6 = vpop.eup %3790  ;;  %3794 = vrcp.f32 %v2382_v43 }
 0x78e   :  { %v2383_v27 = vadd.f32 1.0, %v3791_v6  ;;  %3796 = vrcp.f32 %v2381_v47 }
 0x790   :  { %3798 = vrcp.f32 %v2383_v27 }
 0x795   :  { %v3793_v43 = vpop.eup %3792 }
 0x797   :  { %v3795_v11 = vpop.eup %3794 }
 0x798   :  { %v3797_v48 = vpop.eup %3796  ;;  %v2400_v27 = vmul.f32 %v3795_v11, %v5275_v29  ;;  %v6714_v11 = vld [vmem:[#allocation107_spill] sm:$0xff] }
 0x79a   :  { %v3799_v47 = vpop.eup %3798 }
 0x7b9   :  { %v2306_v63 = vpop.f32.mrb[44].mxu0  ;;  %v2347_v4 = vpop.f32.mrb[44].mxu1 }
 0x7ba   :  { %v2358_v16 = vadd.f32 %v2306_v63, %v2184_v39  ;;  %v2360_v55 = vadd.f32 %v2347_v4, %v2186_v9  ;;  %v2308_v17 = vpop.f32.mrb[45].mxu0  ;;  %v2349_v45 = vpop.f32.mrb[45].mxu1 }
 0x7bb   :  { %v2359_v30 = vadd.f32 %v2308_v17, %v2185_v12  ;;  %v2361_v0 = vadd.f32 %v2349_v45, %v2187_v33  ;;  %v2310_v57 = vpop.f32.mrb[46].mxu0  ;;  %v2351_v26 = vpop.f32.mrb[46].mxu1  ;;  %v2401_v12 = vmul.f32 %v3799_v47, %v5277_v53  ;;  %v6716_v47 = vld [vmem:[#allocation109_spill] sm:$0xff] }
 0x7bc   :  { %v3372_v6 = vmul.f32 -1.442695, %v2358_v16  ;;  %3800 = vtanh.f32 %v2360_v55  ;;  %v2311_v18 = vpop.f32.mrb[47].mxu0  ;;  %v2352_v20 = vpop.f32.mrb[47].mxu1 }
 0x7bd   :  { %v3373_v10 = vmul.f32 -1.442695, %v2359_v30  ;;  %3802 = vtanh.f32 %v2361_v0 }
 0x7be   :  { %3804 = vpow2.f32 %v3372_v6 }
 0x7bf   :  { %3806 = vpow2.f32 %v3373_v10  ;;  %v6712_v10 = vld [vmem:[#allocation105_spill] sm:$0xff] }
 0x7c6   :  { %v3801_v39 = vpop.eup %3800 }
 0x7c7   :  { %v3803_v9 = vpop.eup %3802  ;;  %v2402_v63 = vmul.f32 %v3801_v39, %v3793_v43  ;;  %v6713_v43 = vld [vmem:[#allocation106_spill] sm:$0xff] }
 0x7c8   :  { %v3805_v4 = vpop.eup %3804  ;;  %v2403_v33 = vmul.f32 %v3803_v9, %v3797_v48  ;;  %v6715_v48 = vld [vmem:[#allocation108_spill] sm:$0xff]  ;;  %v6717_v39 = vld [vmem:[#allocation110_spill] sm:$0xff]  ;;  %v6718_v9 = vld [vmem:[#allocation111_spill] sm:$0xff] }
 0x7c9   :  { %v3807_v16 = vpop.eup %3806  ;;  %v2384_v55 = vadd.f32 1.0, %v3805_v4  ;;  %v5433_v17 = vadd.f32 %v2402_v63, %v2400_v27  ;;  %v6719_v27 = vld [vmem:[#allocation112_spill] sm:$0xff]  ;;  %v6720_v63 = vld [vmem:[#allocation113_spill] sm:$0xff]  ;;  %v6721_v4 = vld [vmem:[#allocation114_spill] sm:$0xff] }
 0x7ca   :  { %v2385_v45 = vadd.f32 1.0, %v3807_v16  ;;  %v5435_v30 = vadd.f32 %v2403_v33, %v2401_v12  ;;  %v6722_v12 = vld [vmem:[#allocation115_spill] sm:$0xff]  ;;  %v6723_v33 = vld [vmem:[#allocation116_spill] sm:$0xff]  ;;  %v6724_v16 = vld [vmem:[#allocation117_spill] sm:$0xff] }
 0x7cb   :  { %3808 = vrcp.f32 %v2384_v55  ;;  %v6725_v55 = vld [vmem:[#allocation118_spill] sm:$0xff] }
 0x7cc   :  { %3810 = vtanh.f32 %v5433_v17 }
 0x7cd   :  { %3812 = vrcp.f32 %v2385_v45  ;;  %v6726_v45 = vld [vmem:[#allocation119_spill] sm:$0xff] }
 0x7ce   :  { %3814 = vtanh.f32 %v5435_v30 }
 0x7d5   :  { %v3809_v0 = vpop.eup %3808 }
 0x7d6   :  { %v3811_v29 = vpop.eup %3810 }
 0x7d7   :  { %v3813_v57 = vpop.eup %3812  ;;  %v2408_v6 = vmul.f32 %v3811_v29, %v3809_v0  ;;  %v6727_v0 = vld [vmem:[#allocation120_spill] sm:$0xff]  ;;  %v6728_v29 = vld [vmem:[#allocation121_spill] sm:$0xff] }
 0x7d8   :  { %v3815_v26 = vpop.eup %3814 }
 0x7d9   :  { %v2409_v53 = vmul.f32 %v3815_v26, %v3813_v57  ;;  %v5439_v20 = vpack.c.bf16 %v2408_v6, %v2408_v6  ;;  %v6729_v57 = vld [vmem:[#allocation122_spill] sm:$0xff]  ;;  %v6730_v26 = vld [vmem:[#allocation123_spill] sm:$0xff]  ;;  %v6731_v6 = vld [vmem:[#allocation124_spill] sm:$0xff] }
 0x7db   :  { %v2434_v18 = vpack.c.bf16 %v2409_v53, %v2409_v53  ;;  %v6732_v53 = vld [vmem:[#allocation125_spill] sm:$0xff] }
 0x7dd   :  { %2467 = vmatprep.mubr.bf16.mxu0 %v2434_v18  ;;  %2508 = vmatprep.mubr.bf16.mxu1 %v2434_v18 }
 0x7de   :  { %2468 = vmatmul.mubr.bf16.vlgmr.msra.gmra.mrb[48].mxu0 %v5439_v20  ;;  %2509 = vmatmul.mubr.bf16.vlgmr.msra.gmra.mrb[48].mxu1 %v5439_v20 }
 0x7df   :  { %2518 = vmatpush1.bf16.msra.mxu0 %v6192_v56  ;;  %2559 = vmatpush1.bf16.msra.mxu1 %v6193_v2 }
 0x7e0   :  { %2549 = vmatprep.mubr.bf16.mxu0 %v2434_v18  ;;  %2590 = vmatprep.mubr.bf16.mxu1 %v2434_v18  ;;  %v6733_v18 = vld [vmem:[#allocation126_spill] sm:$0xff] }
 0x7e1   :  { %2519 = vmatprep.subr.bf16.mxu0 %v6194_v40  ;;  %2560 = vmatprep.subr.bf16.mxu1 %v6195_v23 }
 0x7e3   :  { %2520 = vmatpush1.bf16.msra.mxu0 %v6196_v5  ;;  %2561 = vmatpush1.bf16.msra.mxu1 %v6197_v59 }
 0x7e4   :  { %2521 = vmatprep.subr.bf16.mxu0 %v6198_v50  ;;  %2562 = vmatprep.subr.bf16.mxu1 %v6199_v1 }
 0x7e7   :  { %2522 = vmatpush1.bf16.msra.mxu0 %v6200_v41  ;;  %2563 = vmatpush1.bf16.msra.mxu1 %v6295_v32 }
 0x7e8   :  { %2523 = vmatprep.subr.bf16.mxu0 %v6296_v35  ;;  %2564 = vmatprep.subr.bf16.mxu1 %v6297_v21 }
 0x7eb   :  { %2524 = vmatpush1.bf16.msra.mxu0 %v6298_v15  ;;  %2565 = vmatpush1.bf16.msra.mxu1 %v6299_v60 }
 0x7ec   :  { %2525 = vmatprep.subr.bf16.mxu0 %v6300_v28  ;;  %2566 = vmatprep.subr.bf16.mxu1 %v6301_v36 }
 0x7ef   :  { %2526 = vmatpush1.bf16.msra.mxu0 %v6302_v22  ;;  %2567 = vmatpush1.bf16.msra.mxu1 %v6303_v62 }
 0x7f0   :  { %2527 = vmatprep.subr.bf16.mxu0 %v6304_v7  ;;  %2568 = vmatprep.subr.bf16.mxu1 %v6399_v13 }
 0x7f3   :  { %2528 = vmatpush1.bf16.msra.mxu0 %v6400_v52  ;;  %2569 = vmatpush1.bf16.msra.mxu1 %v6401_v31 }
 0x7f4   :  { %2529 = vmatprep.subr.bf16.mxu0 %v6402_v58  ;;  %2570 = vmatprep.subr.bf16.mxu1 %v6403_v51 }
 0x7f7   :  { %2530 = vmatpush1.bf16.msra.mxu0 %v6404_v24  ;;  %2571 = vmatpush1.bf16.msra.mxu1 %v6405_v46 }
 0x7f8   :  { %2531 = vmatprep.subr.bf16.mxu0 %v6312_v37  ;;  %2572 = vmatprep.subr.bf16.mxu1 %v6712_v10 }
 0x7fb   :  { %2532 = vmatpush1.bf16.msra.mxu0 %v6713_v43  ;;  %2573 = vmatpush1.bf16.msra.mxu1 %v6714_v11 }
 0x7fc   :  { %2533 = vmatprep.subr.bf16.mxu0 %v6715_v48  ;;  %2574 = vmatprep.subr.bf16.mxu1 %v6716_v47 }
 0x7ff   :  { %2534 = vmatpush1.bf16.msra.mxu0 %v6717_v39  ;;  %2575 = vmatpush1.bf16.msra.mxu1 %v6718_v9 }
 0x800   :  { %2535 = vmatprep.subr.bf16.mxu0 %v6719_v27  ;;  %2576 = vmatprep.subr.bf16.mxu1 %v6720_v63  ;;  %v2415_v63 = vpop.permute.xlu0 %2414 }
 0x803   :  { %2536 = vmatpush1.bf16.msra.mxu0 %v6721_v4  ;;  %2577 = vmatpush1.bf16.msra.mxu1 %v6722_v12 }
 0x804   :  { %2537 = vmatprep.subr.bf16.mxu0 %v6723_v33  ;;  %2578 = vmatprep.subr.bf16.mxu1 %v6724_v16  ;;  %v6734_v33 = vld [vmem:[#allocation127_spill] sm:$0xff]  ;;  %v6735_v16 = vld [vmem:[#allocation128_spill] sm:$0xff] }
 0x807   :  { %2538 = vmatpush1.bf16.msra.mxu0 %v6725_v55  ;;  %2579 = vmatpush1.bf16.msra.mxu1 %v6726_v45  ;;  %v6736_v55 = vld [vmem:[#allocation129_spill] sm:$0xff]  ;;  %v6737_v45 = vld [vmem:[#allocation130_spill] sm:$0xff] }
 0x808   :  { %2539 = vmatprep.subr.bf16.mxu0 %v6727_v0  ;;  %2580 = vmatprep.subr.bf16.mxu1 %v6728_v29  ;;  %v6738_v0 = vld [vmem:[#allocation131_spill] sm:$0xff]  ;;  %v6739_v29 = vld [vmem:[#allocation132_spill] sm:$0xff] }
 0x80b   :  { %2540 = vmatpush1.bf16.msra.mxu0 %v6729_v57  ;;  %2581 = vmatpush1.bf16.msra.mxu1 %v6730_v26  ;;  %v6740_v57 = vld [vmem:[#allocation133_spill] sm:$0xff]  ;;  %v6741_v26 = vld [vmem:[#allocation134_spill] sm:$0xff] }
 0x80c   :  { %2541 = vmatprep.subr.bf16.mxu0 %v6731_v6  ;;  %2582 = vmatprep.subr.bf16.mxu1 %v6732_v53  ;;  %v6742_v6 = vld [vmem:[#allocation135_spill] sm:$0xff]  ;;  %v6743_v53 = vld [vmem:[#allocation136_spill] sm:$0xff] }
 0x80f   :  { %2542 = vmatpush1.bf16.msra.mxu0 %v6733_v18  ;;  %2583 = vmatpush1.bf16.msra.mxu1 %v6734_v33  ;;  %v6744_v18 = vld [vmem:[#allocation137_spill] sm:$0xff]  ;;  %v6745_v33 = vld [vmem:[#allocation138_spill] sm:$0xff] }
 0x810   :  { %2543 = vmatprep.subr.bf16.mxu0 %v6735_v16  ;;  %2584 = vmatprep.subr.bf16.mxu1 %v6736_v55  ;;  %v6746_v16 = vld [vmem:[#allocation139_spill] sm:$0xff]  ;;  %v6747_v55 = vld [vmem:[#allocation12_spill] sm:$0xff] }
 0x813   :  { %2544 = vmatpush1.bf16.msra.mxu0 %v6737_v45  ;;  %2585 = vmatpush1.bf16.msra.mxu1 %v6738_v0  ;;  %v6748_v45 = vld [vmem:[#allocation14_spill] sm:$0xff] }
 0x814   :  { %2545 = vmatprep.subr.bf16.mxu0 %v6739_v29  ;;  %2586 = vmatprep.subr.bf16.mxu1 %v6740_v57  ;;  %v6749_v57 = vld [vmem:[#allocation13_spill] sm:$0xff]  ;;  %v6758_v29 = vld [vmem:[#allocation23_spill] sm:$0xff] }
 0x817   :  { %2546 = vmatpush1.bf16.msra.mxu0 %v6741_v26  ;;  %2587 = vmatpush1.bf16.msra.mxu1 %v6742_v6  ;;  %v6750_v26 = vld [vmem:[#allocation15_spill] sm:$0xff]  ;;  %v6751_v6 = vld [vmem:[#allocation16_spill] sm:$0xff] }
 0x818   :  { %2547 = vmatprep.subr.bf16.mxu0 %v6743_v53  ;;  %2588 = vmatprep.subr.bf16.mxu1 %v6744_v18  ;;  %v6752_v53 = vld [vmem:[#allocation17_spill] sm:$0xff]  ;;  %v6753_v18 = vld [vmem:[#allocation18_spill] sm:$0xff] }
 0x81b   :  { %2548 = vmatpush1.bf16.msra.mxu0 %v6745_v33  ;;  %2589 = vmatpush1.bf16.msra.mxu1 %v6746_v16  ;;  %v6754_v33 = vld [vmem:[#allocation19_spill] sm:$0xff]  ;;  %v6755_v16 = vld [vmem:[#allocation20_spill] sm:$0xff] }
 0x81c   :  { %2680 = vmatprep.subr.bf16.mxu0 %v6747_v55  ;;  %2721 = vmatprep.subr.bf16.mxu1 %v6748_v45  ;;  %v6756_v55 = vld [vmem:[#allocation21_spill] sm:$0xff]  ;;  %v6757_v45 = vld [vmem:[#allocation22_spill] sm:$0xff] }
 0x81e   :  { %2550 = vmatmul.mubr.bf16.vlgmr.msra.gmra.mrb[52].mxu0 %v5439_v20  ;;  %2591 = vmatmul.mubr.bf16.vlgmr.msra.gmra.mrb[52].mxu1 %v5439_v20  ;;  %v6759_v20 = vld [vmem:[#allocation24_spill] sm:$0xff] }
 0x81f   :  { %2681 = vmatpush1.bf16.msra.mxu0 %v6749_v57  ;;  %2722 = vmatpush1.bf16.msra.mxu1 %v6750_v26  ;;  %v6760_v57 = vld [vmem:[#allocation25_spill] sm:$0xff]  ;;  %v6761_v26 = vld [vmem:[#allocation26_spill] sm:$0xff] }
 0x820   :  { %2682 = vmatprep.subr.bf16.mxu0 %v6751_v6  ;;  %2723 = vmatprep.subr.bf16.mxu1 %v6752_v53  ;;  %v6762_v6 = vld [vmem:[#allocation27_spill] sm:$0xff]  ;;  %v6763_v53 = vld [vmem:[#allocation28_spill] sm:$0xff] }
 0x823   :  { %2683 = vmatpush1.bf16.msra.mxu0 %v6753_v18  ;;  %2724 = vmatpush1.bf16.msra.mxu1 %v6754_v33  ;;  %v6764_v18 = vld [vmem:[#allocation29_spill] sm:$0xff]  ;;  %v6765_v33 = vld [vmem:[#allocation30_spill] sm:$0xff] }
 0x824   :  { %2684 = vmatprep.subr.bf16.mxu0 %v6755_v16  ;;  %2725 = vmatprep.subr.bf16.mxu1 %v6756_v55  ;;  %v6766_v16 = vld [vmem:[#allocation31_spill] sm:$0xff]  ;;  %v6767_v55 = vld [vmem:[#allocation32_spill] sm:$0xff] }
 0x827   :  { %2685 = vmatpush1.bf16.msra.mxu0 %v6757_v45  ;;  %2726 = vmatpush1.bf16.msra.mxu1 %v6758_v29  ;;  %v6768_v45 = vld [vmem:[#allocation33_spill] sm:$0xff]  ;;  %v6769_v29 = vld [vmem:[#allocation34_spill] sm:$0xff] }
 0x828   :  { %2686 = vmatprep.subr.bf16.mxu0 %v6759_v20  ;;  %2727 = vmatprep.subr.bf16.mxu1 %v6760_v57  ;;  %v6770_v20 = vld [vmem:[#allocation35_spill] sm:$0xff]  ;;  %v6771_v57 = vld [vmem:[#allocation36_spill] sm:$0xff] }
 0x82b   :  { %2687 = vmatpush1.bf16.msra.mxu0 %v6761_v26  ;;  %2728 = vmatpush1.bf16.msra.mxu1 %v6762_v6  ;;  %v6772_v26 = vld [vmem:[#allocation37_spill] sm:$0xff]  ;;  %v6773_v6 = vld [vmem:[#allocation38_spill] sm:$0xff] }
 0x82c   :  { %2688 = vmatprep.subr.bf16.mxu0 %v6763_v53  ;;  %2729 = vmatprep.subr.bf16.mxu1 %v6764_v18  ;;  %v6774_v53 = vld [vmem:[#allocation39_spill] sm:$0xff]  ;;  %v6775_v18 = vld [vmem:[#allocation40_spill] sm:$0xff] }
 0x82f   :  { %2689 = vmatpush1.bf16.msra.mxu0 %v6765_v33  ;;  %2730 = vmatpush1.bf16.msra.mxu1 %v6766_v16  ;;  %v6776_v33 = vld [vmem:[#allocation41_spill] sm:$0xff]  ;;  %v6777_v16 = vld [vmem:[#allocation42_spill] sm:$0xff] }
 0x830   :  { %2690 = vmatprep.subr.bf16.mxu0 %v6767_v55  ;;  %2731 = vmatprep.subr.bf16.mxu1 %v6768_v45  ;;  %v6778_v55 = vld [vmem:[#allocation43_spill] sm:$0xff]  ;;  %v6779_v45 = vld [vmem:[#allocation44_spill] sm:$0xff] }
 0x833   :  { %2691 = vmatpush1.bf16.msra.mxu0 %v6769_v29  ;;  %2732 = vmatpush1.bf16.msra.mxu1 %v6770_v20  ;;  %v6780_v29 = vld [vmem:[#allocation45_spill] sm:$0xff]  ;;  %v6781_v20 = vld [vmem:[#allocation46_spill] sm:$0xff] }
 0x834   :  { %2692 = vmatprep.subr.bf16.mxu0 %v6771_v57  ;;  %2733 = vmatprep.subr.bf16.mxu1 %v6772_v26  ;;  %v6782_v57 = vld [vmem:[#allocation47_spill] sm:$0xff]  ;;  %v6783_v26 = vld [vmem:[#allocation48_spill] sm:$0xff] }
 0x837   :  { %2693 = vmatpush1.bf16.msra.mxu0 %v6773_v6  ;;  %2734 = vmatpush1.bf16.msra.mxu1 %v6774_v53  ;;  %v6784_v6 = vld [vmem:[#allocation49_spill] sm:$0xff]  ;;  %v6785_v53 = vld [vmem:[#allocation50_spill] sm:$0xff] }
 0x838   :  { %2694 = vmatprep.subr.bf16.mxu0 %v6775_v18  ;;  %2735 = vmatprep.subr.bf16.mxu1 %v6776_v33  ;;  %v6786_v18 = vld [vmem:[#allocation51_spill] sm:$0xff]  ;;  %v6787_v33 = vld [vmem:[#allocation52_spill] sm:$0xff] }
 0x83b   :  { %2695 = vmatpush1.bf16.msra.mxu0 %v6777_v16  ;;  %2736 = vmatpush1.bf16.msra.mxu1 %v6778_v55  ;;  %v6788_v16 = vld [vmem:[#allocation53_spill] sm:$0xff]  ;;  %v6789_v55 = vld [vmem:[#allocation54_spill] sm:$0xff] }
 0x83c   :  { %2696 = vmatprep.subr.bf16.mxu0 %v6779_v45  ;;  %2737 = vmatprep.subr.bf16.mxu1 %v6780_v29  ;;  %v6790_v45 = vld [vmem:[#allocation55_spill] sm:$0xff]  ;;  %v6791_v29 = vld [vmem:[#allocation56_spill] sm:$0xff] }
 0x83f   :  { %2697 = vmatpush1.bf16.msra.mxu0 %v6781_v20  ;;  %2738 = vmatpush1.bf16.msra.mxu1 %v6782_v57  ;;  %v6792_v20 = vld [vmem:[#allocation57_spill] sm:$0xff]  ;;  %v6793_v57 = vld [vmem:[#allocation58_spill] sm:$0xff] }
 0x840   :  { %2698 = vmatprep.subr.bf16.mxu0 %v6783_v26  ;;  %2739 = vmatprep.subr.bf16.mxu1 %v6784_v6  ;;  %v6794_v26 = vld [vmem:[#allocation59_spill] sm:$0xff]  ;;  %v6795_v6 = vld [vmem:[#allocation60_spill] sm:$0xff] }
 0x843   :  { %2699 = vmatpush1.bf16.msra.mxu0 %v6785_v53  ;;  %2740 = vmatpush1.bf16.msra.mxu1 %v6786_v18  ;;  %v6796_v53 = vld [vmem:[#allocation61_spill] sm:$0xff]  ;;  %v6797_v18 = vld [vmem:[#allocation62_spill] sm:$0xff] }
 0x844   :  { %2700 = vmatprep.subr.bf16.mxu0 %v6787_v33  ;;  %2741 = vmatprep.subr.bf16.mxu1 %v6788_v16  ;;  %v6798_v33 = vld [vmem:[#allocation63_spill] sm:$0xff]  ;;  %v6799_v16 = vld [vmem:[#allocation64_spill] sm:$0xff] }
 0x847   :  { %2701 = vmatpush1.bf16.msra.mxu0 %v6789_v55  ;;  %2742 = vmatpush1.bf16.msra.mxu1 %v6790_v45  ;;  %v6800_v55 = vld [vmem:[#allocation65_spill] sm:$0xff]  ;;  %v6801_v45 = vld [vmem:[#allocation66_spill] sm:$0xff] }
 0x848   :  { %2702 = vmatprep.subr.bf16.mxu0 %v6791_v29  ;;  %2743 = vmatprep.subr.bf16.mxu1 %v6792_v20  ;;  %v6802_v29 = vld [vmem:[#allocation67_spill] sm:$0xff]  ;;  %v6803_v20 = vld [vmem:[#allocation68_spill] sm:$0xff] }
 0x84b   :  { %2703 = vmatpush1.bf16.msra.mxu0 %v6793_v57  ;;  %2744 = vmatpush1.bf16.msra.mxu1 %v6794_v26  ;;  %v6804_v57 = vld [vmem:[#allocation69_spill] sm:$0xff]  ;;  %v6805_v26 = vld [vmem:[#allocation70_spill] sm:$0xff] }
 0x84c   :  { %2704 = vmatprep.subr.bf16.mxu0 %v6795_v6  ;;  %2745 = vmatprep.subr.bf16.mxu1 %v6796_v53  ;;  %v6806_v6 = vld [vmem:[#allocation71_spill] sm:$0xff]  ;;  %v6807_v53 = vld [vmem:[#allocation72_spill] sm:$0xff] }
 0x84f   :  { %2705 = vmatpush1.bf16.msra.mxu0 %v6797_v18  ;;  %2746 = vmatpush1.bf16.msra.mxu1 %v6798_v33  ;;  %v6808_v18 = vld [vmem:[#allocation73_spill] sm:$0xff]  ;;  %v6809_v33 = vld [vmem:[#allocation74_spill] sm:$0xff] }
 0x850   :  { %2706 = vmatprep.subr.bf16.mxu0 %v6799_v16  ;;  %2747 = vmatprep.subr.bf16.mxu1 %v6800_v55  ;;  %v6810_v16 = vld [vmem:[#allocation75_spill] sm:$0xff]  ;;  %v6811_v55 = vld [vmem:[#allocation76_spill] sm:$0xff] }
 0x853   :  { %2707 = vmatpush1.bf16.msra.mxu0 %v6801_v45  ;;  %2748 = vmatpush1.bf16.msra.mxu1 %v6802_v29  ;;  %v6812_v45 = vld [vmem:[#allocation77_spill] sm:$0xff] }
 0x854   :  { %2708 = vmatprep.subr.bf16.mxu0 %v6803_v20  ;;  %2749 = vmatprep.subr.bf16.mxu1 %v6804_v57 }
 0x857   :  { %2709 = vmatpush1.bf16.msra.mxu0 %v6805_v26  ;;  %2750 = vmatpush1.bf16.msra.mxu1 %v6806_v6 }
 0x858   :  { %2710 = vmatprep.subr.bf16.mxu0 %v6807_v53  ;;  %2751 = vmatprep.subr.bf16.mxu1 %v6808_v18  ;;  %v6813_v53 = vld [vmem:[#allocation140_spill] sm:$0xff]  ;;  %v6814_v18 = vld [vmem:[#allocation141_spill] sm:$0xff] }
 0x859   :  { %v2417_v27 = vmul.f32 %v2415_v63, %v6813_v53  ;;  %v2419_v9 = vmul.f32 %v2415_v63, %v6814_v18 }
 0x85b   :  { %2711 = vmatpush1.bf16.msra.mxu0 %v6809_v33  ;;  %2752 = vmatpush1.bf16.msra.mxu1 %v6810_v16  ;;  %v2418_v33 = vmul.f32 %v2415_v63, %v6390_v3  ;;  %v6815_v16 = vld [vmem:[#allocation143_spill] sm:$0xff] }
 0x85c   :  { %2762 = vmatprep.subr.bf16.mxu0 %v6811_v55  ;;  %2803 = vmatprep.subr.bf16.mxu1 %v6812_v45  ;;  %v2420_v39 = vmul.f32 %v2415_v63, %v6815_v16  ;;  %v6816_v55 = vld [vmem:[#allocation144_spill] sm:$0xff]  ;;  %v2427_v45 = vadd.f32 %v2419_v9, %v6500_v14 }
 0x85d   :  { %v2425_v47 = vadd.f32 %v2417_v27, %v6816_v55  ;;  %v2426_v11 = vadd.f32 %v2418_v33, %v6501_v44 }
 0x8b1   :  { %v2469_v29 = vpop.f32.mrb[48].mxu0  ;;  %v2510_v20 = vpop.f32.mrb[48].mxu1 }
 0x8b2   :  { %v2471_v0 = vpop.f32.mrb[49].mxu0  ;;  %v2512_v57 = vpop.f32.mrb[49].mxu1  ;;  %v2599_v48 = vadd.f32 %v2469_v29, %v2425_v47  ;;  %v2421_v29 = vmul.f32 %v2415_v63, %v6395_v8 }
 0x8b3   :  { %v2473_v12 = vpop.f32.mrb[50].mxu0  ;;  %v2514_v26 = vpop.f32.mrb[50].mxu1 }
 0x8b4   :  { %v2474_v4 = vpop.f32.mrb[51].mxu0  ;;  %v2515_v6 = vpop.f32.mrb[51].mxu1  ;;  %v2601_v12 = vadd.f32 %v2510_v20, %v2427_v45  ;;  %v2600_v26 = vadd.f32 %v2471_v0, %v2426_v11  ;;  %v3375_v43 = vmul.f32 -1.442695, %v2599_v48  ;;  %v2423_v20 = vmul.f32 %v2415_v63, %v6396_v34 }
 0x8b5   :  { %v2428_v4 = vadd.f32 %v2420_v39, %v6394_v54  ;;  %v2422_v11 = vmul.f32 %v2415_v63, %v6397_v42  ;;  %v2424_v48 = vmul.f32 %v2415_v63, %v4613_v61 }
 0x8b6   :  { %v3377_v53 = vmul.f32 -1.442695, %v2601_v12  ;;  %v3376_v10 = vmul.f32 -1.442695, %v2600_v26  ;;  %3816 = vpow2.f32 %v3375_v43  ;;  %v2431_v43 = vadd.f32 %v2423_v20, %v6502_v38 }
 0x8b7   :  { %v2602_v6 = vadd.f32 %v2512_v57, %v2428_v4  ;;  %v2430_v33 = vadd.f32 %v2422_v11, %v4622_v49 }
 0x8b8   :  { %3818 = vpow2.f32 %v3377_v53 }
 0x8b9   :  { %v3378_v18 = vmul.f32 -1.442695, %v2602_v6  ;;  %3820 = vpow2.f32 %v3376_v10  ;;  %v2429_v10 = vadd.f32 %v2421_v29, %v6293_v19 }
 0x8bb   :  { %3822 = vpow2.f32 %v3378_v18 }
 0x8c0   :  { %v3817_v16 = vpop.eup %3816 }
 0x8c1   :  { %v2625_v47 = vadd.f32 1.0, %v3817_v16  ;;  %v2432_v16 = vadd.f32 %v2424_v48, %v4625_v25 }
 0x8c2   :  { %v3819_v27 = vpop.eup %3818 }
 0x8c3   :  { %v3821_v55 = vpop.eup %3820  ;;  %v2627_v39 = vadd.f32 1.0, %v3819_v27  ;;  %3824 = vrcp.f32 %v2625_v47 }
 0x8c4   :  { %v2626_v0 = vadd.f32 1.0, %v3821_v55 }
 0x8c5   :  { %v3823_v9 = vpop.eup %3822  ;;  %3826 = vrcp.f32 %v2627_v39 }
 0x8c6   :  { %v2628_v57 = vadd.f32 1.0, %v3823_v9  ;;  %3828 = vrcp.f32 %v2626_v0 }
 0x8c8   :  { %3830 = vrcp.f32 %v2628_v57 }
 0x8cd   :  { %v3825_v39 = vpop.eup %3824 }
 0x8cf   :  { %v3827_v11 = vpop.eup %3826 }
 0x8d0   :  { %v3829_v48 = vpop.eup %3828  ;;  %v2645_v57 = vmul.f32 %v3827_v11, %v5433_v17  ;;  %v6846_v11 = vld [vmem:[#allocation134_spill] sm:$0xff] }
 0x8d2   :  { %v3831_v0 = vpop.eup %3830 }
 0x8f1   :  { %v2551_v53 = vpop.f32.mrb[52].mxu0  ;;  %v2592_v18 = vpop.f32.mrb[52].mxu1 }
 0x8f2   :  { %v2603_v45 = vadd.f32 %v2551_v53, %v2429_v10  ;;  %v2605_v12 = vadd.f32 %v2592_v18, %v2431_v43  ;;  %v2553_v4 = vpop.f32.mrb[53].mxu0  ;;  %v2594_v26 = vpop.f32.mrb[53].mxu1 }
 0x8f3   :  { %v2604_v63 = vadd.f32 %v2553_v4, %v2430_v33  ;;  %v2606_v55 = vadd.f32 %v2594_v26, %v2432_v16  ;;  %v2555_v6 = vpop.f32.mrb[54].mxu0  ;;  %v2596_v27 = vpop.f32.mrb[54].mxu1  ;;  %v2646_v33 = vmul.f32 %v3831_v0, %v5435_v30  ;;  %v6848_v0 = vld [vmem:[#allocation136_spill] sm:$0xff] }
 0x8f4   :  { %v3379_v9 = vmul.f32 -1.442695, %v2603_v45  ;;  %3832 = vtanh.f32 %v2605_v12  ;;  %v2556_v47 = vpop.f32.mrb[55].mxu0  ;;  %v2597_v29 = vpop.f32.mrb[55].mxu1 }
 0x8f5   :  { %v3380_v20 = vmul.f32 -1.442695, %v2604_v63  ;;  %3834 = vtanh.f32 %v2606_v55 }
 0x8f6   :  { %3836 = vpow2.f32 %v3379_v9 }
 0x8f7   :  { %3838 = vpow2.f32 %v3380_v20  ;;  %v6844_v20 = vld [vmem:[#allocation132_spill] sm:$0xff] }
 0x8fe   :  { %v3833_v10 = vpop.eup %3832 }
 0x8ff   :  { %v3835_v43 = vpop.eup %3834  ;;  %v2647_v53 = vmul.f32 %v3833_v10, %v3825_v39  ;;  %v6845_v39 = vld [vmem:[#allocation133_spill] sm:$0xff] }
 0x900   :  { %v3837_v18 = vpop.eup %3836  ;;  %v2648_v16 = vmul.f32 %v3835_v43, %v3829_v48  ;;  %v6847_v48 = vld [vmem:[#allocation135_spill] sm:$0xff]  ;;  %v6849_v10 = vld [vmem:[#allocation137_spill] sm:$0xff]  ;;  %v6850_v43 = vld [vmem:[#allocation138_spill] sm:$0xff] }
 0x901   :  { %v3839_v45 = vpop.eup %3838  ;;  %v2629_v12 = vadd.f32 1.0, %v3837_v18  ;;  %v5591_v4 = vadd.f32 %v2647_v53, %v2645_v57  ;;  %v6851_v57 = vld [vmem:[#allocation139_spill] sm:$0xff]  ;;  %v2916_v53 = vld [vmem:[#allocation4 + $0x80] sm:$0xff]  ;;  %v2917_v18 = vld [vmem:[#allocation4 + $0x88] sm:$0xff] }
 0x902   :  { %v2630_v26 = vadd.f32 1.0, %v3839_v45  ;;  %v5593_v63 = vadd.f32 %v2648_v16, %v2646_v33  ;;  %v3530_v33 = vpack.c.bf16 %v2917_v18, %v2916_v53  ;;  %v2900_v16 = vld [vmem:[#allocation4] sm:$0xff]  ;;  %v2901_v45 = vld [vmem:[#allocation4 + $0x8] sm:$0xff]  ;;  %v3012_v53 = vld [vmem:[#allocation6 + $0x10] sm:$0xff]  ;;  %v3983_v18 = vmov 0.0|0.0  }
 0x903   :  { %3840 = vrcp.f32 %v2629_v12  ;;  %v3532_v12 = vpack.c.bf16 %v2901_v45, %v2900_v16  ;;  %v3013_v16 = vld [vmem:[#allocation6 + $0x18] sm:$0xff] }
 0x904   :  { %3842 = vtanh.f32 %v5591_v4  ;;  %v3566_v45 = vpack.c.bf16 %v3013_v16, %v3012_v53 }
 0x905   :  { %3844 = vrcp.f32 %v2630_v26  ;;  %v2918_v26 = vld [vmem:[#allocation4 + $0x90] sm:$0xff] }
 0x906   :  { %3846 = vtanh.f32 %v5593_v63 }
 0x90d   :  { %v3841_v55 = vpop.eup %3840 }
 0x90e   :  { %v3843_v17 = vpop.eup %3842 }
 0x90f   :  { %v3845_v6 = vpop.eup %3844  ;;  %v2653_v9 = vmul.f32 %v3843_v17, %v3841_v55  ;;  %v2919_v55 = vld [vmem:[#allocation4 + $0x98] sm:$0xff] }
 0x910   :  { %v3847_v27 = vpop.eup %3846  ;;  %v3534_v17 = vpack.c.bf16 %v2919_v55, %v2918_v26  ;;  %v3015_v26 = vld [vmem:[#allocation6 + $0x28] sm:$0xff] }
 0x911   :  { %v2654_v30 = vmul.f32 %v3847_v27, %v3845_v6  ;;  %v5597_v29 = vpack.c.bf16 %v2653_v9, %v2653_v9  ;;  %v2902_v6 = vld [vmem:[#allocation4 + $0x10] sm:$0xff]  ;;  %v2903_v27 = vld [vmem:[#allocation4 + $0x18] sm:$0xff] }
 0x912   :  { %v3536_v9 = vpack.c.bf16 %v2903_v27, %v2902_v6  ;;  %v3017_v6 = vld [vmem:[#allocation6 + $0x38] sm:$0xff] }
 0x913   :  { %v2679_v47 = vpack.c.bf16 %v2654_v30, %v2654_v30  ;;  %v2920_v30 = vld [vmem:[#allocation4 + $0xa0] sm:$0xff] }
 0x915   :  { %2712 = vmatprep.mubr.bf16.mxu0 %v2679_v47  ;;  %2753 = vmatprep.mubr.bf16.mxu1 %v2679_v47 }
 0x916   :  { %2713 = vmatmul.mubr.bf16.vlgmr.msra.gmra.mrb[56].mxu0 %v5597_v29  ;;  %2754 = vmatmul.mubr.bf16.vlgmr.msra.gmra.mrb[56].mxu1 %v5597_v29 }
 0x917   :  { %2763 = vmatpush1.bf16.msra.mxu0 %v6192_v56  ;;  %2804 = vmatpush1.bf16.msra.mxu1 %v6193_v2  ;;  %v6817_v56 = vld [vmem:[#allocation105_spill] sm:$0xff]  ;;  %v6818_v2 = vld [vmem:[#allocation106_spill] sm:$0xff] }
 0x918   :  { %2794 = vmatprep.mubr.bf16.mxu0 %v2679_v47  ;;  %2835 = vmatprep.mubr.bf16.mxu1 %v2679_v47  ;;  %v2921_v47 = vld [vmem:[#allocation4 + $0xa8] sm:$0xff] }
 0x919   :  { %2764 = vmatprep.subr.bf16.mxu0 %v6194_v40  ;;  %2805 = vmatprep.subr.bf16.mxu1 %v6195_v23  ;;  %v6819_v40 = vld [vmem:[#allocation107_spill] sm:$0xff]  ;;  %v6820_v23 = vld [vmem:[#allocation108_spill] sm:$0xff] }
 0x91b   :  { %2765 = vmatpush1.bf16.msra.mxu0 %v6196_v5  ;;  %2806 = vmatpush1.bf16.msra.mxu1 %v6197_v59  ;;  %v6821_v5 = vld [vmem:[#allocation109_spill] sm:$0xff]  ;;  %v6822_v59 = vld [vmem:[#allocation110_spill] sm:$0xff] }
 0x91c   :  { %2766 = vmatprep.subr.bf16.mxu0 %v6198_v50  ;;  %2807 = vmatprep.subr.bf16.mxu1 %v6199_v1  ;;  %v6823_v50 = vld [vmem:[#allocation111_spill] sm:$0xff]  ;;  %v6824_v1 = vld [vmem:[#allocation112_spill] sm:$0xff] }
 0x91f   :  { %2767 = vmatpush1.bf16.msra.mxu0 %v6200_v41  ;;  %2808 = vmatpush1.bf16.msra.mxu1 %v6295_v32  ;;  %v6825_v41 = vld [vmem:[#allocation113_spill] sm:$0xff]  ;;  %v6826_v32 = vld [vmem:[#allocation114_spill] sm:$0xff] }
 0x920   :  { %2768 = vmatprep.subr.bf16.mxu0 %v6296_v35  ;;  %2809 = vmatprep.subr.bf16.mxu1 %v6297_v21  ;;  %v6827_v35 = vld [vmem:[#allocation115_spill] sm:$0xff]  ;;  %v6828_v21 = vld [vmem:[#allocation116_spill] sm:$0xff] }
 0x923   :  { %2769 = vmatpush1.bf16.msra.mxu0 %v6298_v15  ;;  %2810 = vmatpush1.bf16.msra.mxu1 %v6299_v60  ;;  %v6829_v15 = vld [vmem:[#allocation117_spill] sm:$0xff]  ;;  %v6830_v60 = vld [vmem:[#allocation118_spill] sm:$0xff] }
 0x924   :  { %2770 = vmatprep.subr.bf16.mxu0 %v6300_v28  ;;  %2811 = vmatprep.subr.bf16.mxu1 %v6301_v36  ;;  %v6831_v28 = vld [vmem:[#allocation119_spill] sm:$0xff]  ;;  %v6832_v36 = vld [vmem:[#allocation120_spill] sm:$0xff] }
 0x927   :  { %2771 = vmatpush1.bf16.msra.mxu0 %v6302_v22  ;;  %2812 = vmatpush1.bf16.msra.mxu1 %v6303_v62  ;;  %v6833_v22 = vld [vmem:[#allocation121_spill] sm:$0xff]  ;;  %v6834_v62 = vld [vmem:[#allocation122_spill] sm:$0xff] }
 0x928   :  { %2772 = vmatprep.subr.bf16.mxu0 %v6304_v7  ;;  %2813 = vmatprep.subr.bf16.mxu1 %v6399_v13  ;;  %v6835_v7 = vld [vmem:[#allocation123_spill] sm:$0xff]  ;;  %v6837_v13 = vld [vmem:[#allocation125_spill] sm:$0xff] }
 0x92b   :  { %2773 = vmatpush1.bf16.msra.mxu0 %v6400_v52  ;;  %2814 = vmatpush1.bf16.msra.mxu1 %v6401_v31  ;;  %v6838_v52 = vld [vmem:[#allocation126_spill] sm:$0xff]  ;;  %v6839_v31 = vld [vmem:[#allocation127_spill] sm:$0xff] }
 0x92c   :  { %2774 = vmatprep.subr.bf16.mxu0 %v6402_v58  ;;  %2815 = vmatprep.subr.bf16.mxu1 %v6403_v51  ;;  %v6840_v58 = vld [vmem:[#allocation128_spill] sm:$0xff]  ;;  %v6841_v51 = vld [vmem:[#allocation129_spill] sm:$0xff] }
 0x92f   :  { %2775 = vmatpush1.bf16.msra.mxu0 %v6404_v24  ;;  %2816 = vmatpush1.bf16.msra.mxu1 %v6405_v46  ;;  %v6842_v24 = vld [vmem:[#allocation130_spill] sm:$0xff]  ;;  %v6843_v46 = vld [vmem:[#allocation131_spill] sm:$0xff] }
 0x930   :  { %2776 = vmatprep.subr.bf16.mxu0 %v6312_v37  ;;  %2817 = vmatprep.subr.bf16.mxu1 %v6817_v56  ;;  %v6836_v37 = vld [vmem:[#allocation124_spill] sm:$0xff]  ;;  %v3538_v56 = vpack.c.bf16 %v2921_v47, %v2920_v30  ;;  %v3019_v30 = vld [vmem:[#allocation6 + $0x48] sm:$0xff] }
 0x933   :  { %2777 = vmatpush1.bf16.msra.mxu0 %v6818_v2  ;;  %2818 = vmatpush1.bf16.msra.mxu1 %v6819_v40  ;;  %v2905_v2 = vld [vmem:[#allocation4 + $0x28] sm:$0xff] }
 0x934   :  { %2778 = vmatprep.subr.bf16.mxu0 %v6820_v23  ;;  %2819 = vmatprep.subr.bf16.mxu1 %v6821_v5  ;;  %v2922_v23 = vld [vmem:[#allocation4 + $0xb0] sm:$0xff]  ;;  %v2923_v5 = vld [vmem:[#allocation4 + $0xb8] sm:$0xff] }
 0x937   :  { %2779 = vmatpush1.bf16.msra.mxu0 %v6822_v59  ;;  %2820 = vmatpush1.bf16.msra.mxu1 %v6823_v50  ;;  %v3542_v59 = vpack.c.bf16 %v2923_v5, %v2922_v23  ;;  %v2906_v50 = vld [vmem:[#allocation4 + $0x30] sm:$0xff] }
 0x938   :  { %2780 = vmatprep.subr.bf16.mxu0 %v6824_v1  ;;  %2821 = vmatprep.subr.bf16.mxu1 %v6825_v41  ;;  %v2907_v1 = vld [vmem:[#allocation4 + $0x38] sm:$0xff] }
 0x939   :  { %v3544_v41 = vpack.c.bf16 %v2907_v1, %v2906_v50 }
 0x93b   :  { %2781 = vmatpush1.bf16.msra.mxu0 %v6826_v32  ;;  %2822 = vmatpush1.bf16.msra.mxu1 %v6827_v35  ;;  %v2924_v32 = vld [vmem:[#allocation4 + $0xc0] sm:$0xff]  ;;  %v2925_v35 = vld [vmem:[#allocation4 + $0xc8] sm:$0xff] }
 0x93c   :  { %2782 = vmatprep.subr.bf16.mxu0 %v6828_v21  ;;  %2823 = vmatprep.subr.bf16.mxu1 %v6829_v15  ;;  %v3546_v21 = vpack.c.bf16 %v2925_v35, %v2924_v32  ;;  %v2908_v15 = vld [vmem:[#allocation4 + $0x40] sm:$0xff]  ;;  %v2660_v35 = vpop.permute.xlu1 %2659 }
 0x93d   :  { %v2667_v53 = vmul.f32 %v2660_v35, %v6397_v42 }
 0x93f   :  { %2783 = vmatpush1.bf16.msra.mxu0 %v6830_v60  ;;  %2824 = vmatpush1.bf16.msra.mxu1 %v6831_v28  ;;  %v2909_v60 = vld [vmem:[#allocation4 + $0x48] sm:$0xff] }
 0x940   :  { %2784 = vmatprep.subr.bf16.mxu0 %v6832_v36  ;;  %2825 = vmatprep.subr.bf16.mxu1 %v6833_v22  ;;  %v3548_v28 = vpack.c.bf16 %v2909_v60, %v2908_v15  ;;  %v2926_v36 = vld [vmem:[#allocation4 + $0xd0] sm:$0xff]  ;;  %v2927_v22 = vld [vmem:[#allocation4 + $0xd8] sm:$0xff]  ;;  %v6853_v60 = vld [vmem:[#allocation141_spill] sm:$0xff] }
 0x943   :  { %2785 = vmatpush1.bf16.msra.mxu0 %v6834_v62  ;;  %2826 = vmatpush1.bf16.msra.mxu1 %v6835_v7  ;;  %v3550_v62 = vpack.c.bf16 %v2927_v22, %v2926_v36  ;;  %v2910_v7 = vld [vmem:[#allocation4 + $0x50] sm:$0xff]  ;;  %v2663_v36 = vmul.f32 %v2660_v35, %v6390_v3  ;;  %v6854_v22 = vld [vmem:[#allocation143_spill] sm:$0xff] }
 0x944   :  { %2786 = vmatprep.subr.bf16.mxu0 %v6836_v37  ;;  %2827 = vmatprep.subr.bf16.mxu1 %v6837_v13  ;;  %v2911_v37 = vld [vmem:[#allocation4 + $0x58] sm:$0xff]  ;;  %v2928_v13 = vld [vmem:[#allocation4 + $0xe0] sm:$0xff] }
 0x947   :  { %2787 = vmatpush1.bf16.msra.mxu0 %v6838_v52  ;;  %2828 = vmatpush1.bf16.msra.mxu1 %v6839_v31  ;;  %v3552_v52 = vpack.c.bf16 %v2911_v37, %v2910_v7  ;;  %v2929_v31 = vld [vmem:[#allocation4 + $0xe8] sm:$0xff]  ;;  %v6855_v7 = vld [vmem:[#allocation144_spill] sm:$0xff] }
 0x948   :  { %2788 = vmatprep.subr.bf16.mxu0 %v6840_v58  ;;  %2829 = vmatprep.subr.bf16.mxu1 %v6841_v51  ;;  %v2912_v58 = vld [vmem:[#allocation4 + $0x60] sm:$0xff]  ;;  %v2913_v51 = vld [vmem:[#allocation4 + $0x68] sm:$0xff] }
 0x94b   :  { %2789 = vmatpush1.bf16.msra.mxu0 %v6842_v24  ;;  %2830 = vmatpush1.bf16.msra.mxu1 %v6843_v46  ;;  %v3554_v24 = vpack.c.bf16 %v2929_v31, %v2928_v13  ;;  %v2930_v46 = vld [vmem:[#allocation4 + $0xf0] sm:$0xff]  ;;  %v2671_v31 = vadd.f32 %v2663_v36, %v6501_v44  ;;  %v2666_v44 = vmul.f32 %v2660_v35, %v6395_v8 }
 0x94c   :  { %2790 = vmatprep.subr.bf16.mxu0 %v6844_v20  ;;  %2831 = vmatprep.subr.bf16.mxu1 %v6845_v39  ;;  %v2931_v20 = vld [vmem:[#allocation4 + $0xf8] sm:$0xff]  ;;  %v3556_v39 = vpack.c.bf16 %v2913_v51, %v2912_v58 }
 0x94f   :  { %2791 = vmatpush1.bf16.msra.mxu0 %v6846_v11  ;;  %2832 = vmatpush1.bf16.msra.mxu1 %v6847_v48  ;;  %v3558_v11 = vpack.c.bf16 %v2931_v20, %v2930_v46  ;;  %v2914_v48 = vld [vmem:[#allocation4 + $0x70] sm:$0xff] }
 0x950   :  { %2792 = vmatprep.subr.bf16.mxu0 %v6848_v0  ;;  %2833 = vmatprep.subr.bf16.mxu1 %v6849_v10  ;;  %v2915_v0 = vld [vmem:[#allocation4 + $0x78] sm:$0xff] }
 0x951   :  { %v3560_v10 = vpack.c.bf16 %v2915_v0, %v2914_v48 }
 0x953   :  { %2793 = vmatpush1.bf16.msra.mxu0 %v6850_v43  ;;  %2834 = vmatpush1.bf16.msra.mxu1 %v6851_v57  ;;  %v3010_v43 = vld [vmem:[#allocation6] sm:$0xff]  ;;  %v3011_v57 = vld [vmem:[#allocation6 + $0x8] sm:$0xff] }
 0x954   :  { %3531 = vmatprep.subr.bf16.mxu0 %v3530_v33  ;;  %3562 = vmatprep.subr.bf16.mxu1 %v3983_v18  ;;  %v3563_v33 = vpack.c.bf16 %v3011_v57, %v3010_v43  ;;  %v2668_v57 = vmul.f32 %v2660_v35, %v6396_v34 }
 0x956   :  { %2795 = vmatmul.mubr.bf16.vlgmr.msra.gmra.mrb[60].mxu0 %v5597_v29  ;;  %2836 = vmatmul.mubr.bf16.vlgmr.msra.gmra.mrb[60].mxu1 %v5597_v29  ;;  %v2904_v29 = vld [vmem:[#allocation4 + $0x20] sm:$0xff] }
 0x957   :  { %3533 = vmatpush3.bf16.msra.mxu0 %v3532_v12  ;;  %v3540_v40 = vpack.c.bf16 %v2905_v2, %v2904_v29  ;;  %3564 = vmatpush3.bf16.msra.mxu1 %v3563_v33  ;;  %v3014_v12 = vld [vmem:[#allocation6 + $0x20] sm:$0xff]  ;;  %v3021_v29 = vld [vmem:[#allocation6 + $0x58] sm:$0xff]  ;;  %v2669_v33 = vmul.f32 %v2660_v35, %v4613_v61 }
 0x958   :  { %3535 = vmatprep.subr.bf16.mxu0 %v3534_v17  ;;  %3565 = vmatprep.subr.bf16.mxu1 %v3983_v18  ;;  %v3569_v55 = vpack.c.bf16 %v3015_v26, %v3014_v12  ;;  %v3016_v17 = vld [vmem:[#allocation6 + $0x30] sm:$0xff]  ;;  %v2674_v12 = vadd.f32 %v2666_v44, %v6293_v19  ;;  %v2676_v26 = vadd.f32 %v2668_v57, %v6502_v38  ;;  %v3111_v57 = vld [vmem:[#allocation7 + $0x38] sm:$0xff] }
 0x959   :  { %v3572_v27 = vpack.c.bf16 %v3017_v6, %v3016_v17  ;;  %v2675_v6 = vadd.f32 %v2667_v53, %v4622_v49  ;;  %v2677_v8 = vadd.f32 %v2669_v33, %v4625_v25  ;;  %v3110_v44 = vld [vmem:[#allocation7 + $0x30] sm:$0xff]  ;;  %v3112_v53 = vld [vmem:[#allocation7 + $0x40] sm:$0xff]  ;;  %v3113_v33 = vld [vmem:[#allocation7 + $0x48] sm:$0xff] }
 0x95b   :  { %3537 = vmatpush3.bf16.msra.mxu0 %v3536_v9  ;;  %3567 = vmatpush3.bf16.msra.mxu1 %v3566_v45  ;;  %v3018_v9 = vld [vmem:[#allocation6 + $0x40] sm:$0xff] }
 0x95c   :  { %3539 = vmatprep.subr.bf16.mxu0 %v3538_v56  ;;  %3568 = vmatprep.subr.bf16.mxu1 %v3983_v18  ;;  %v3575_v47 = vpack.c.bf16 %v3019_v30, %v3018_v9  ;;  %v3020_v56 = vld [vmem:[#allocation6 + $0x50] sm:$0xff] }
 0x95d   :  { %v3578_v2 = vpack.c.bf16 %v3021_v29, %v3020_v56 }
 0x95f   :  { %3541 = vmatpush3.bf16.msra.mxu0 %v3540_v40  ;;  %3570 = vmatpush3.bf16.msra.mxu1 %v3569_v55 }
 0x960   :  { %3543 = vmatprep.subr.bf16.mxu0 %v3542_v59  ;;  %3571 = vmatprep.subr.bf16.mxu1 %v3983_v18 }
 0x963   :  { %3545 = vmatpush3.bf16.msra.mxu0 %v3544_v41  ;;  %3573 = vmatpush3.bf16.msra.mxu1 %v3572_v27 }
 0x964   :  { %3547 = vmatprep.subr.bf16.mxu0 %v3546_v21  ;;  %3574 = vmatprep.subr.bf16.mxu1 %v3983_v18  ;;  %v6852_v21 = vld [vmem:[#allocation140_spill] sm:$0xff] }
 0x965   :  { %v2662_v15 = vmul.f32 %v2660_v35, %v6852_v21 }
 0x967   :  { %3549 = vmatpush3.bf16.msra.mxu0 %v3548_v28  ;;  %3576 = vmatpush3.bf16.msra.mxu1 %v3575_v47  ;;  %v2664_v28 = vmul.f32 %v2660_v35, %v6853_v60  ;;  %v2670_v37 = vadd.f32 %v2662_v15, %v6855_v7 }
 0x968   :  { %3551 = vmatprep.subr.bf16.mxu0 %v3550_v62  ;;  %3577 = vmatprep.subr.bf16.mxu1 %v3983_v18  ;;  %v2665_v62 = vmul.f32 %v2660_v35, %v6854_v22 }
 0x969   :  { %v2672_v13 = vadd.f32 %v2664_v28, %v6500_v14 }
 0x96a   :  { %v2673_v51 = vadd.f32 %v2665_v62, %v6394_v54 }
 0x96b   :  { %3553 = vmatpush3.bf16.msra.mxu0 %v3552_v52  ;;  %3579 = vmatpush3.bf16.msra.mxu1 %v3578_v2 }
 0x96c   :  { %3555 = vmatprep.subr.bf16.mxu0 %v3554_v24  ;;  %3580 = vmatprep.subr.bf16.mxu1 %v3983_v18 }
 0x96f   :  { %3557 = vmatpush3.bf16.msra.mxu0 %v3556_v39 }
 0x970   :  { %3559 = vmatprep.subr.bf16.mxu0 %v3558_v11 }
 0x973   :  { %3561 = vmatpush3.bf16.msra.mxu0 %v3560_v10 }
 0x974   :  { %3586 = vmatprep.subr.bf16.mxu0 %v3983_v18 }
 0x9e9   :  { %v2714_v40 = vpop.f32.mrb[56].mxu0  ;;  %v2755_v23 = vpop.f32.mrb[56].mxu1 }
 0x9ea   :  { %v2716_v5 = vpop.f32.mrb[57].mxu0  ;;  %v2757_v59 = vpop.f32.mrb[57].mxu1  ;;  %v2844_v52 = vadd.f32 %v2714_v40, %v2670_v37  ;;  %v2846_v58 = vadd.f32 %v2755_v23, %v2672_v13 }
 0x9eb   :  { %v2718_v50 = vpop.f32.mrb[58].mxu0  ;;  %v2759_v1 = vpop.f32.mrb[58].mxu1  ;;  %v2845_v24 = vadd.f32 %v2716_v5, %v2671_v31  ;;  %v2847_v46 = vadd.f32 %v2757_v59, %v2673_v51  ;;  %v3025_v51 = vld [vmem:[#allocation6 + $0x78] sm:$0xff] }
 0x9ec   :  { %v2719_v41 = vpop.f32.mrb[59].mxu0  ;;  %v2760_v32 = vpop.f32.mrb[59].mxu1  ;;  %v3382_v20 = vmul.f32 -1.442695, %v2844_v52  ;;  %v3384_v39 = vmul.f32 -1.442695, %v2846_v58 }
 0x9ed   :  { %v3383_v11 = vmul.f32 -1.442695, %v2845_v24  ;;  %v3385_v48 = vmul.f32 -1.442695, %v2847_v46  ;;  %v3022_v52 = vld [vmem:[#allocation6 + $0x60] sm:$0xff]  ;;  %v3024_v58 = vld [vmem:[#allocation6 + $0x70] sm:$0xff] }
 0x9ee   :  { %3848 = vpow2.f32 %v3382_v20  ;;  %v3584_v24 = vpack.c.bf16 %v3025_v51, %v3024_v58  ;;  %v3985_v46 = vmov 0.0   ;;  %v3104_v20 = vld [vmem:[#allocation7] sm:$0xff] }
 0x9ef   :  { %3850 = vpow2.f32 %v3384_v39  ;;  %3492 = vmatprep.mubr.msk.f32.mxu1 %vm3984_vm0, %v3985_v46  ;;  %v3105_v39 = vld [vmem:[#allocation7 + $0x8] sm:$0xff] }
 0x9f0   :  { %3852 = vpow2.f32 %v3383_v11  ;;  %v3106_v11 = vld [vmem:[#allocation7 + $0x10] sm:$0xff] }
 0x9f1   :  { %3854 = vpow2.f32 %v3385_v48  ;;  %v3587_v48 = vpack.c.bf16 %v3105_v39, %v3104_v20 }
 0x9f8   :  { %v3849_v3 = vpop.eup %3848 }
 0x9f9   :  { %v3851_v0 = vpop.eup %3850  ;;  %v2870_v43 = vadd.f32 1.0, %v3849_v3  ;;  %v3107_v3 = vld [vmem:[#allocation7 + $0x18] sm:$0xff] }
 0x9fa   :  { %v3853_v10 = vpop.eup %3852  ;;  %v2872_v54 = vadd.f32 1.0, %v3851_v0  ;;  %v3590_v0 = vpack.c.bf16 %v3107_v3, %v3106_v11 }
 0x9fb   :  { %v3855_v14 = vpop.eup %3854  ;;  %v2871_v16 = vadd.f32 1.0, %v3853_v10  ;;  %3856 = vrcp.f32 %v2870_v43  ;;  %v3108_v10 = vld [vmem:[#allocation7 + $0x20] sm:$0xff] }
 0x9fc   :  { %v2873_v45 = vadd.f32 1.0, %v3855_v14  ;;  %3858 = vrcp.f32 %v2872_v54  ;;  %v3109_v14 = vld [vmem:[#allocation7 + $0x28] sm:$0xff]  ;;  %v3596_v54 = vpack.c.bf16 %v3111_v57, %v3110_v44 }
 0x9fd   :  { %3860 = vrcp.f32 %v2871_v16  ;;  %v3593_v43 = vpack.c.bf16 %v3109_v14, %v3108_v10  ;;  %v3599_v16 = vpack.c.bf16 %v3113_v33, %v3112_v53 }
 0x9fe   :  { %3862 = vrcp.f32 %v2873_v45  ;;  %v3114_v45 = vld [vmem:[#allocation7 + $0x50] sm:$0xff] }
 0xa05   :  { %v3857_v49 = vpop.eup %3856 }
 0xa06   :  { %v3859_v25 = vpop.eup %3858 }
 0xa07   :  { %v3861_v40 = vpop.eup %3860  ;;  %v2890_v50 = vmul.f32 %v3859_v25, %v5591_v4 }
 0xa08   :  { %v3863_v23 = vpop.eup %3862 }
 0xa09   :  { %v2891_v32 = vmul.f32 %v3863_v23, %v5593_v63  ;;  %v3023_v63 = vld [vmem:[#allocation6 + $0x68] sm:$0xff] }
 0xa0a   :  { %v3581_v31 = vpack.c.bf16 %v3023_v63, %v3022_v52 }
 0xa0c   :  { %3582 = vmatpush3.bf16.msra.mxu1 %v3581_v31 }
 0xa0d   :  { %3583 = vmatprep.subr.bf16.mxu1 %v3983_v18 }
 0xa10   :  { %3585 = vmatpush3.bf16.msra.mxu1 %v3584_v24 }
 0xa29   :  { %v2796_v55 = vpop.f32.mrb[60].mxu0  ;;  %v2837_v17 = vpop.f32.mrb[60].mxu1 }
 0xa2a   :  { %v2848_v34 = vadd.f32 %v2796_v55, %v2674_v12  ;;  %v2850_v27 = vadd.f32 %v2837_v17, %v2676_v26  ;;  %v2798_v42 = vpop.f32.mrb[61].mxu0  ;;  %v2839_v9 = vpop.f32.mrb[61].mxu1  ;;  %v3115_v12 = vld [vmem:[#allocation7 + $0x58] sm:$0xff]  ;;  %v3116_v55 = vld [vmem:[#allocation7 + $0x60] sm:$0xff]  ;;  %v3117_v17 = vld [vmem:[#allocation7 + $0x68] sm:$0xff] }
 0xa2b   :  { %v2849_v61 = vadd.f32 %v2798_v42, %v2675_v6  ;;  %v2851_v30 = vadd.f32 %v2839_v9, %v2677_v8  ;;  %v2800_v47 = vpop.f32.mrb[62].mxu0  ;;  %v2841_v56 = vpop.f32.mrb[62].mxu1  ;;  %v3602_v26 = vpack.c.bf16 %v3115_v12, %v3114_v45  ;;  %v3605_v6 = vpack.c.bf16 %v3117_v17, %v3116_v55 }
 0xa2c   :  { %v3386_v19 = vmul.f32 -1.442695, %v2848_v34  ;;  %3864 = vtanh.f32 %v2850_v27  ;;  %v2801_v38 = vpop.f32.mrb[63].mxu0  ;;  %v2842_v29 = vpop.f32.mrb[63].mxu1  ;;  %v3388_v34 = vld [vmem:[%s5716_s5] ss:$0 sm:$0xff] }
 0xa2d   :  { %v3387_v2 = vmul.f32 -1.442695, %v2849_v61  ;;  %3866 = vtanh.f32 %v2851_v30  ;;  %v3118_v30 = vld [vmem:[#allocation7 + $0x70] sm:$0xff]  ;;  %v3119_v47 = vld [vmem:[#allocation7 + $0x78] sm:$0xff] }
 0xa2e   :  { %3868 = vpow2.f32 %v3386_v19  ;;  %v3608_v56 = vpack.c.bf16 %v3119_v47, %v3118_v30  ;;  %v3389_v19 = vld [vmem:[%s5718_s7] ss:$0 sm:$0xff] }
 0xa2f   :  { %3870 = vpow2.f32 %v3387_v2 }
 0xa36   :  { %v3865_v5 = vpop.eup %3864 }
 0xa37   :  { %v3867_v59 = vpop.eup %3866  ;;  %v2892_v1 = vmul.f32 %v3865_v5, %v3857_v49  ;;  %v3390_v49 = vld [vmem:[%s5720_s9] ss:$0 sm:$0xff] }
 0xa38   :  { %v3869_v41 = vpop.eup %3868  ;;  %v2893_v35 = vmul.f32 %v3867_v59, %v3861_v40 }
 0xa39   :  { %v3871_v21 = vpop.eup %3870  ;;  %v2874_v15 = vadd.f32 1.0, %v3869_v41  ;;  %v2894_v60 = vadd.f32 %v2892_v1, %v2890_v50 }
 0xa3a   :  { %v2875_v28 = vadd.f32 1.0, %v3871_v21  ;;  %v2895_v36 = vadd.f32 %v2893_v35, %v2891_v32 }
 0xa3b   :  { %3872 = vrcp.f32 %v2874_v15 }
 0xa3c   :  { %3874 = vtanh.f32 %v2894_v60 }
 0xa3d   :  { %3876 = vrcp.f32 %v2875_v28 }
 0xa3e   :  { %3878 = vtanh.f32 %v2895_v36 }
 0xa45   :  { %v3873_v22 = vpop.eup %3872 }
 0xa46   :  { %v3875_v62 = vpop.eup %3874 }
 0xa47   :  { %v3877_v7 = vpop.eup %3876  ;;  %v2898_v37 = vmul.f32 %v3875_v62, %v3873_v22 }
 0xa48   :  { %v3879_v13 = vpop.eup %3878 }
 0xa49   :  { %v2899_v4 = vmul.f32 %v3879_v13, %v3877_v7 }
 0xa4b   :  { %3003 = vmatprep.mubr.f32.mxu0 %v2899_v4 }
 0xa4c   :  { %3004 = vmatmul.mubr.f32.vlgmr.msra.gmra.mrb[64].mxu0 %v2898_v37 }
 0xa4d   :  { %3527 = vmatprep.mubr.msk.f32.mxu0 %vm3984_vm0, %v3985_v46  ;;  %3588 = vmatpush3.bf16.msra.mxu0 %v3587_v48 }
 0xa4e   :  { %3589 = vmatprep.subr.bf16.mxu0 %v3983_v18 }
 0xa51   :  { %3591 = vmatpush3.bf16.msra.mxu0 %v3590_v0 }
 0xa52   :  { %3592 = vmatprep.subr.bf16.mxu0 %v3983_v18 }
 0xa55   :  { %3594 = vmatpush3.bf16.msra.mxu0 %v3593_v43 }
 0xa56   :  { %3595 = vmatprep.subr.bf16.mxu0 %v3983_v18 }
 0xa59   :  { %3597 = vmatpush3.bf16.msra.mxu0 %v3596_v54 }
 0xa5a   :  { %3598 = vmatprep.subr.bf16.mxu0 %v3983_v18 }
 0xa5d   :  { %3600 = vmatpush3.bf16.msra.mxu0 %v3599_v16 }
 0xa5e   :  { %3601 = vmatprep.subr.bf16.mxu0 %v3983_v18 }
 0xa61   :  { %3603 = vmatpush3.bf16.msra.mxu0 %v3602_v26 }
 0xa62   :  { %3604 = vmatprep.subr.bf16.mxu0 %v3983_v18 }
 0xa65   :  { %3606 = vmatpush3.bf16.msra.mxu0 %v3605_v6 }
 0xa66   :  { %3607 = vmatprep.subr.bf16.mxu0 %v3983_v18 }
 0xa69   :  { %3609 = vmatpush3.bf16.msra.mxu0 %v3608_v56 }
 0xb1f   :  { %v3423_v8 = vpop.f32.mrb[64].mxu0 }
 0xb20   :  { %v3424_v27 = vpop.f32.mrb[65].mxu0 }
 0xb21   :  { %v3425_v42 = vadd.f32 %v3424_v27, %v3423_v8 }
 0xb23   :  { %v3006_v9 = vadd.f32 %v3425_v42, %v3388_v34 }
 0xb25   :  { %v3009_v61 = vmax.f32 %v3006_v9, 0.0 }
 0xb27   :  { %3493 = vmatmul.mubr.f32.vlgmr.msra.gmra.mrb[64].mxu1 %v3009_v61 }
 0xbfa   :  { %v3099_v38 = vpop.f32.mrb[64].mxu1 }
 0xbfb   :  { %v3100_v18 = vadd.f32 %v3389_v19, %v3099_v38  ;;  %v3494_v29 = vpop.f32.mrb[65].mxu1 }
 0xbfd   :  { %v3103_v2 = vmax.f32 %v3100_v18, 0.0 }
 0xbff   :  { %3528 = vmatmul.mubr.f32.vlgmr.msra.gmra.mrb[66].mxu0 %v3103_v2 }
 0xcd2   :  { %v3193_v25 = vpop.f32.mrb[66].mxu0 }
 0xcd3   :  { %v3194_v40 = vadd.f32 %v3390_v49, %v3193_v25  ;;  %v3529_v23 = vpop.f32.mrb[67].mxu0 }
 0xcd5   :  { %3197 = vst [vmem:[%s5721_s10] sm:$0x3] %v3194_v40 }
 0xcd6   :  { %3202 = vsyncpa [#allocation3], 1 }
 0xcd7   :  { %3203 = vsyncpa [#allocation5], 1 }
 0xcd8   :  { %3204 = vsyncpa [#allocation8], 1 }

</bundles_post_ra>
